<compile_context>
chip_gen: v7x
topology: tpu7x:2x2x1
jax: 0.10.0
libtpu: 0.0.40
codegen_flags: <defaults>
</compile_context>

<pallas_src>
import functools

import jax
import jax.numpy as jnp
import numpy as np
from jax.experimental import pallas as pl
from jax.experimental.pallas import tpu as pltpu

CIN1_G = 8    # conv1 input lane group: 3 real channels zero-padded to 8
C1_G = 8      # conv1 output lane group: 6 real channels zero-padded to 8
C2_G = 16     # conv2 output lane group: 16 real channels (no padding)
FC_W = 128    # fc1 / fc2 hidden widths padded to 128


def _round_up(x, m):
    return (x + m - 1) // m * m


def _pick_bt(batch):
    """Images per conv grid step: amortize the ~0.35us per-step overhead while
    keeping grid length >= 2 so v7x's two TensorCores split the batch."""
    for bt in (8, 4, 2, 1):
        if batch % bt == 0 and batch // bt >= 2:
            return bt
    return batch


# ----------------------------------------------------------------------------
# Fused conv(valid, stride 1) + bias + ReLU + maxpool(2,2) kernel.
# Packed activation layout: (B, H, L) with lane index = w * group + channel.
# Weights are banded (k, L_in, L_out) matrices so one matmul per kernel row
# contracts over the full W*C lane width.
# ----------------------------------------------------------------------------
def _conv_relu_pool_kernel(x_ref, w_ref, b_ref, o_ref):
    bt, H, l_in = x_ref.shape
    k, _, l_out = w_ref.shape
    Ho = H - k + 1            # valid-conv output height (== output width)
    hp = Ho // 2              # pooled height
    g_out = l_out // Ho       # output channels per lane group

    # Conv: k chained MXU matmuls (K = l_in), accumulated in registers.
    acc = jnp.dot(x_ref[:, pl.ds(0, Ho), :].reshape(bt * Ho, l_in),
                  w_ref[0], preferred_element_type=jnp.float32)
    for i in range(1, k):
        xi = x_ref[:, pl.ds(i, Ho), :].reshape(bt * Ho, l_in)
        acc = acc + jnp.dot(xi, w_ref[i], preferred_element_type=jnp.float32)

    # Bias + ReLU in f32.
    y = jnp.maximum(acc + b_ref[...], 0.0)                  # (bt*Ho, l_out)

    # 2x2 max-pool in vregs:
    #  rows: adjacent output-row pairs via a sublane-pair reduce,
    #  cols: adjacent lane groups via an XLU roll + max.  The pooled value for
    #  column 2*wp lands in lane group 2*wp; odd groups become dead lanes that
    #  downstream banded / FC weights map to zero.
    y = jnp.max(y.reshape(bt * hp, 2, l_out), axis=1)       # (bt*hp, l_out)
    y = jnp.maximum(y, pltpu.roll(y, l_out - g_out, 1))
    o_ref[...] = y.reshape(bt, hp, l_out).astype(o_ref.dtype)


def conv_relu_pool(x, w, b):
    """x: (B, H, L_in) bf16 packed activations; w: (k, L_in, L_out) bf16 banded
    weights; b: (1, L_out) f32 packed bias.
    Returns maxpool2x2(relu(conv_valid(x) + b)) as (B, (H-k+1)//2, L_out) bf16
    in the same packed-lane layout (odd lane groups are dead)."""
    B, H, l_in = x.shape
    k, _, l_out = w.shape
    Ho = H - k + 1
    hp = Ho // 2
    bt = _pick_bt(B)

    flops = 2 * B * k * Ho * l_in * l_out           # actual MXU work
    bytes_accessed = (B * H * l_in * 2 + k * l_in * l_out * 2 + l_out * 4
                      + B * hp * l_out * 2)

    return pl.pallas_call(
        _conv_relu_pool_kernel,
        out_shape=jax.ShapeDtypeStruct((B, hp, l_out), jnp.bfloat16),
        grid_spec=pltpu.PrefetchScalarGridSpec(
            num_scalar_prefetch=0,
            grid=(B // bt,),
            in_specs=[
                pl.BlockSpec((bt, H, l_in), lambda i: (i, 0, 0)),
                pl.BlockSpec((k, l_in, l_out), lambda i: (0, 0, 0)),
                pl.BlockSpec((1, l_out), lambda i: (0, 0)),
            ],
            out_specs=pl.BlockSpec((bt, hp, l_out), lambda i: (i, 0, 0)),
        ),
        compiler_params=pltpu.CompilerParams(
            dimension_semantics=("parallel",),
        ),
        cost_estimate=pl.CostEstimate(flops=flops, transcendentals=0,
                                      bytes_accessed=bytes_accessed),
    )(x, w, b)


# ----------------------------------------------------------------------------
# Fused fc1(ReLU) -> fc2(ReLU) -> fc3 kernel (one weight DMA, bf16 input).
# ----------------------------------------------------------------------------
def _fc_stack_kernel(x_ref, w1_ref, b1_ref, w2_ref, b2_ref, w3_ref, b3_ref,
                     o_ref):
    h = jnp.dot(x_ref[...], w1_ref[...], preferred_element_type=jnp.float32)
    h = jnp.maximum(h + b1_ref[...], 0.0).astype(jnp.bfloat16)
    h = jnp.dot(h, w2_ref[...], preferred_element_type=jnp.float32)
    h = jnp.maximum(h + b2_ref[...], 0.0).astype(jnp.bfloat16)
    h = jnp.dot(h, w3_ref[...], preferred_element_type=jnp.float32)
    o_ref[...] = (h + b3_ref[...]).astype(o_ref.dtype)


def fc_stack(x, w1, b1, w2, b2, w3, b3):
    """Whole FC head in one Pallas call; a single grid step for small batches
    so all three weight sets are DMA'd exactly once."""
    B, K1 = x.shape
    H1, H2, NO = w1.shape[1], w2.shape[1], w3.shape[1]
    bp8 = _round_up(B, 8)
    tm = bp8 if bp8 <= 1024 else 256
    Bp = _round_up(B, tm)
    if Bp != B:
        x = jnp.pad(x, ((0, Bp - B), (0, 0)))

    flops = 2 * Bp * (K1 * H1 + H1 * H2 + H2 * NO)
    bytes_accessed = (Bp * K1 * 2 + (w1.size + w2.size + w3.size) * 2
                      + (b1.size + b2.size + b3.size) * 4 + Bp * NO * 4)

    out = pl.pallas_call(
        _fc_stack_kernel,
        out_shape=jax.ShapeDtypeStruct((Bp, NO), jnp.float32),
        grid_spec=pltpu.PrefetchScalarGridSpec(
            num_scalar_prefetch=0,
            grid=(Bp // tm,),
            in_specs=[
                pl.BlockSpec((tm, K1), lambda i: (i, 0)),
                pl.BlockSpec((K1, H1), lambda i: (0, 0)),
                pl.BlockSpec((1, H1), lambda i: (0, 0)),
                pl.BlockSpec((H1, H2), lambda i: (0, 0)),
                pl.BlockSpec((1, H2), lambda i: (0, 0)),
                pl.BlockSpec((H2, NO), lambda i: (0, 0)),
                pl.BlockSpec((1, NO), lambda i: (0, 0)),
            ],
            out_specs=pl.BlockSpec((tm, NO), lambda i: (i, 0)),
        ),
        compiler_params=pltpu.CompilerParams(
            dimension_semantics=("parallel",),
        ),
        cost_estimate=pl.CostEstimate(flops=flops, transcendentals=0,
                                      bytes_accessed=bytes_accessed),
    )(x, w1, b1, w2, b2, w3, b3)
    return out[:B]


# ----------------------------------------------------------------------------
# Parameters: PyTorch layouts -> packed-lane / banded kernel layouts.
# ----------------------------------------------------------------------------
def init_torch_params(key, num_classes):
    """Random parameters in the exact PyTorch layouts of the reference CNN."""
    ks = jax.random.split(key, 10)

    def u(k, shape, fan_in):
        bound = 1.0 / (fan_in ** 0.5)
        return jax.random.uniform(k, shape, jnp.float32, -bound, bound)

    return {
        "conv1_w": u(ks[0], (6, 3, 5, 5), 3 * 5 * 5),
        "conv1_b": u(ks[1], (6,), 3 * 5 * 5),
        "conv2_w": u(ks[2], (16, 6, 5, 5), 6 * 5 * 5),
        "conv2_b": u(ks[3], (16,), 6 * 5 * 5),
        "fc1_w": u(ks[4], (120, 16 * 5 * 5), 16 * 5 * 5),
        "fc1_b": u(ks[5], (120,), 16 * 5 * 5),
        "fc2_w": u(ks[6], (84, 120), 120),
        "fc2_b": u(ks[7], (84,), 120),
        "fc3_w": u(ks[8], (num_classes, 84), 84),
        "fc3_b": u(ks[9], (num_classes,), 84),
    }


def _banded_conv_weights(w_torch, b_torch, g_in, g_out, wo):
    """Pack a (cout, cin, k, k) PyTorch conv weight into k banded (L_in, L_out)
    matrices for the packed-lane layout (input lane = w*g_in + c, output lane
    = wo*g_out + co).  Dead / padded lanes get zero weight rows."""
    w = np.asarray(w_torch, np.float32)
    b = np.asarray(b_torch, np.float32)
    cout, cin, k, _ = w.shape
    l_in = (wo + k - 1) * g_in
    l_out = wo * g_out
    wt = np.transpose(w, (2, 3, 1, 0))               # (k, k, cin, cout)
    band = np.zeros((k, l_in, l_out), np.float32)
    for i in range(k):
        for j in range(k):
            for o in range(wo):
                band[i,
                     (o + j) * g_in:(o + j) * g_in + cin,
                     o * g_out:o * g_out + cout] = wt[i, j]
    bias = np.zeros((wo, g_out), np.float32)
    bias[:, :cout] = b[None, :]
    return (jnp.asarray(band, jnp.bfloat16),
            jnp.asarray(bias.reshape(1, l_out), jnp.float32))


def prepare_params(tp, num_classes):
    """One-time host-side conversion to the kernel layouts."""
    ncp = _round_up(max(num_classes, 1), 128)

    # conv1: input packed (32, 32*8), output packed (14, 28*8).
    c1_w, c1_b = _banded_conv_weights(tp["conv1_w"], tp["conv1_b"],
                                      g_in=CIN1_G, g_out=C1_G, wo=28)
    # conv2: input packed (14, 14*16), output packed (5, 10*16).
    c2_w, c2_b = _banded_conv_weights(tp["conv2_w"], tp["conv2_b"],
                                      g_in=2 * C1_G, g_out=C2_G, wo=10)

    # fc1: PyTorch flattens (c=16, h=5, w=5).  Our activation flattens the
    # packed (h=5, lane = w*32 + c) layout, where lanes w*32+16 .. w*32+31 are
    # dead pooling lanes -> zero weight rows.
    f1 = np.asarray(tp["fc1_w"], np.float32).reshape(120, 16, 5, 5)
    f1 = np.transpose(f1, (2, 3, 1, 0))              # (h, w, c, out)
    f1 = np.pad(f1, ((0, 0), (0, 0), (0, 0), (0, FC_W - 120)))
    f1 = np.pad(f1[:, :, None], ((0, 0), (0, 0), (0, 1), (0, 0), (0, 0)))
    f1 = f1.reshape(5 * 5 * 2 * 16, FC_W)            # (800, 128)

    f2 = np.zeros((FC_W, FC_W), np.float32)
    f2[:120, :84] = np.asarray(tp["fc2_w"], np.float32).T
    f3 = np.zeros((FC_W, ncp), np.float32)
    f3[:84, :num_classes] = np.asarray(tp["fc3_w"], np.float32).T

    def fc_bias(b, width):
        out = np.zeros((1, width), np.float32)
        b = np.asarray(b, np.float32)
        out[0, :b.shape[0]] = b
        return jnp.asarray(out, jnp.float32)

    return {
        "conv1_w": c1_w, "conv1_b": c1_b,
        "conv2_w": c2_w, "conv2_b": c2_b,
        "fc1_w": jnp.asarray(f1, jnp.bfloat16), "fc1_b": fc_bias(tp["fc1_b"], FC_W),
        "fc2_w": jnp.asarray(f2, jnp.bfloat16), "fc2_b": fc_bias(tp["fc2_b"], FC_W),
        "fc3_w": jnp.asarray(f3, jnp.bfloat16), "fc3_b": fc_bias(tp["fc3_b"], ncp),
    }


# ----------------------------------------------------------------------------
# Full forward pass (PyTorch semantics: NCHW f32 input, f32 logits out).
# ----------------------------------------------------------------------------
@functools.partial(jax.jit, static_argnames=("num_classes",))
def cnn_forward(params, x, *, num_classes):
    # x: (B, 3, 32, 32) NCHW, as in the PyTorch module.
    B = x.shape[0]
    x = jnp.transpose(x, (0, 2, 3, 1))                         # (B, 32, 32, 3)
    x = jnp.pad(x, ((0, 0), (0, 0), (0, 0), (0, CIN1_G - 3)))
    x = x.reshape(B, 32, 32 * CIN1_G).astype(jnp.bfloat16)     # packed lanes
    x = conv_relu_pool(x, params["conv1_w"], params["conv1_b"])  # (B, 14, 224)
    x = conv_relu_pool(x, params["conv2_w"], params["conv2_b"])  # (B, 5, 160)
    x = x.reshape(B, 5 * 160)                                   # tiny flatten
    x = fc_stack(x, params["fc1_w"], params["fc1_b"],
                 params["fc2_w"], params["fc2_b"],
                 params["fc3_w"], params["fc3_b"])              # (B, ncp) f32
    return x[:, :num_classes]


if __name__ == "__main__":
    num_classes = 10
    batch = 2
    key = jax.random.PRNGKey(0)
    pkey, xkey = jax.random.split(key)

    torch_params = init_torch_params(pkey, num_classes)
    params = prepare_params(torch_params, num_classes)
    x = jax.random.normal(xkey, (batch, 3, 32, 32), jnp.float32)

    out = cnn_forward(params, x, num_classes=num_classes)
    out = jax.block_until_ready(out)
    assert out.shape == (batch, num_classes), out.shape
    assert out.dtype == jnp.float32
    assert bool(jnp.all(jnp.isfinite(out)))
    print("KERNEL_OK")
</pallas_src>

<mosaic_0001>
module attributes {stable_mosaic.version = 11 : i64} {
  func.func @_conv_relu_pool_kernel(%arg0: i32, %arg1: memref<1x14x224xbf16, #tpu.memory_space<vmem>>, %arg2: memref<5x224x160xbf16, #tpu.memory_space<vmem>>, %arg3: memref<1x160xf32, #tpu.memory_space<vmem>>, %arg4: memref<1x5x160xbf16, #tpu.memory_space<vmem>>) attributes {dimension_semantics = [#tpu.dimension_semantics<parallel>], iteration_bounds = array<i64: 2>, scalar_prefetch = 0 : i64, scratch_operands = 0 : i64, tpu.core_type = #tpu.core_type<tc>, window_params = [{transform_indices = @transform_0, window_bounds = array<i64: 1, 14, 224>}, {pipeline_mode = #tpu.pipeline_mode<synchronous>, transform_indices = @transform_1, window_bounds = array<i64: 5, 224, 160>}, {pipeline_mode = #tpu.pipeline_mode<synchronous>, transform_indices = @transform_2, window_bounds = array<i64: 1, 160>}, {transform_indices = @transform_3, window_bounds = array<i64: 1, 5, 160>}]} {
    %c0 = arith.constant 0 : index
    %c0_0 = arith.constant 0 : index
    %c0_1 = arith.constant 0 : index
    %0 = vector.load %arg1[%c0, %c0_0, %c0_1] : memref<1x14x224xbf16, #tpu.memory_space<vmem>>, vector<1x10x224xbf16>
    %1 = vector.shape_cast %0 : vector<1x10x224xbf16> to vector<10x224xbf16>
    %c0_2 = arith.constant 0 : index
    %c0_3 = arith.constant 0 : index
    %c0_4 = arith.constant 0 : index
    %2 = vector.load %arg2[%c0_2, %c0_3, %c0_4] : memref<5x224x160xbf16, #tpu.memory_space<vmem>>, vector<1x224x160xbf16>
    %3 = vector.shape_cast %2 : vector<1x224x160xbf16> to vector<224x160xbf16>
    %cst = arith.constant dense<0.000000e+00> : vector<10x160xf32>
    %4 = tpu.matmul %1, %3, %cst {dimension_numbers = #tpu.dot_dimension_numbers<[1], [0], [0], [1], [0, 0, 1, 1], [], []>} : vector<10x224xbf16>, vector<224x160xbf16>, vector<10x160xf32> -> vector<10x160xf32>
    %c0_5 = arith.constant 0 : index
    %c1 = arith.constant 1 : index
    %c0_6 = arith.constant 0 : index
    %5 = vector.load %arg1[%c0_5, %c1, %c0_6] : memref<1x14x224xbf16, #tpu.memory_space<vmem>>, vector<1x10x224xbf16>
    %6 = vector.shape_cast %5 : vector<1x10x224xbf16> to vector<10x224xbf16>
    %c1_7 = arith.constant 1 : index
    %c0_8 = arith.constant 0 : index
    %c0_9 = arith.constant 0 : index
    %7 = vector.load %arg2[%c1_7, %c0_8, %c0_9] : memref<5x224x160xbf16, #tpu.memory_space<vmem>>, vector<1x224x160xbf16>
    %8 = vector.shape_cast %7 : vector<1x224x160xbf16> to vector<224x160xbf16>
    %cst_10 = arith.constant dense<0.000000e+00> : vector<10x160xf32>
    %9 = tpu.matmul %6, %8, %cst_10 {dimension_numbers = #tpu.dot_dimension_numbers<[1], [0], [0], [1], [0, 0, 1, 1], [], []>} : vector<10x224xbf16>, vector<224x160xbf16>, vector<10x160xf32> -> vector<10x160xf32>
    %10 = arith.addf %4, %9 : vector<10x160xf32>
    %c0_11 = arith.constant 0 : index
    %c2 = arith.constant 2 : index
    %c0_12 = arith.constant 0 : index
    %11 = vector.load %arg1[%c0_11, %c2, %c0_12] : memref<1x14x224xbf16, #tpu.memory_space<vmem>>, vector<1x10x224xbf16>
    %12 = vector.shape_cast %11 : vector<1x10x224xbf16> to vector<10x224xbf16>
    %c2_13 = arith.constant 2 : index
    %c0_14 = arith.constant 0 : index
    %c0_15 = arith.constant 0 : index
    %13 = vector.load %arg2[%c2_13, %c0_14, %c0_15] : memref<5x224x160xbf16, #tpu.memory_space<vmem>>, vector<1x224x160xbf16>
    %14 = vector.shape_cast %13 : vector<1x224x160xbf16> to vector<224x160xbf16>
    %cst_16 = arith.constant dense<0.000000e+00> : vector<10x160xf32>
    %15 = tpu.matmul %12, %14, %cst_16 {dimension_numbers = #tpu.dot_dimension_numbers<[1], [0], [0], [1], [0, 0, 1, 1], [], []>} : vector<10x224xbf16>, vector<224x160xbf16>, vector<10x160xf32> -> vector<10x160xf32>
    %16 = arith.addf %10, %15 : vector<10x160xf32>
    %c0_17 = arith.constant 0 : index
    %c3 = arith.constant 3 : index
    %c0_18 = arith.constant 0 : index
    %17 = vector.load %arg1[%c0_17, %c3, %c0_18] : memref<1x14x224xbf16, #tpu.memory_space<vmem>>, vector<1x10x224xbf16>
    %18 = vector.shape_cast %17 : vector<1x10x224xbf16> to vector<10x224xbf16>
    %c3_19 = arith.constant 3 : index
    %c0_20 = arith.constant 0 : index
    %c0_21 = arith.constant 0 : index
    %19 = vector.load %arg2[%c3_19, %c0_20, %c0_21] : memref<5x224x160xbf16, #tpu.memory_space<vmem>>, vector<1x224x160xbf16>
    %20 = vector.shape_cast %19 : vector<1x224x160xbf16> to vector<224x160xbf16>
    %cst_22 = arith.constant dense<0.000000e+00> : vector<10x160xf32>
    %21 = tpu.matmul %18, %20, %cst_22 {dimension_numbers = #tpu.dot_dimension_numbers<[1], [0], [0], [1], [0, 0, 1, 1], [], []>} : vector<10x224xbf16>, vector<224x160xbf16>, vector<10x160xf32> -> vector<10x160xf32>
    %22 = arith.addf %16, %21 : vector<10x160xf32>
    %c0_23 = arith.constant 0 : index
    %c4 = arith.constant 4 : index
    %c0_24 = arith.constant 0 : index
    %23 = vector.load %arg1[%c0_23, %c4, %c0_24] : memref<1x14x224xbf16, #tpu.memory_space<vmem>>, vector<1x10x224xbf16>
    %24 = vector.shape_cast %23 : vector<1x10x224xbf16> to vector<10x224xbf16>
    %c4_25 = arith.constant 4 : index
    %c0_26 = arith.constant 0 : index
    %c0_27 = arith.constant 0 : index
    %25 = vector.load %arg2[%c4_25, %c0_26, %c0_27] : memref<5x224x160xbf16, #tpu.memory_space<vmem>>, vector<1x224x160xbf16>
    %26 = vector.shape_cast %25 : vector<1x224x160xbf16> to vector<224x160xbf16>
    %cst_28 = arith.constant dense<0.000000e+00> : vector<10x160xf32>
    %27 = tpu.matmul %24, %26, %cst_28 {dimension_numbers = #tpu.dot_dimension_numbers<[1], [0], [0], [1], [0, 0, 1, 1], [], []>} : vector<10x224xbf16>, vector<224x160xbf16>, vector<10x160xf32> -> vector<10x160xf32>
    %28 = arith.addf %22, %27 : vector<10x160xf32>
    %c0_29 = arith.constant 0 : index
    %c0_30 = arith.constant 0 : index
    %29 = vector.load %arg3[%c0_29, %c0_30] : memref<1x160xf32, #tpu.memory_space<vmem>>, vector<1x160xf32>
    %30 = vector.broadcast %29 : vector<1x160xf32> to vector<10x160xf32>
    %31 = arith.addf %28, %30 : vector<10x160xf32>
    %cst_31 = arith.constant 0.000000e+00 : f32
    %32 = vector.broadcast %cst_31 : f32 to vector<10x160xf32>
    %33 = arith.maximumf %31, %32 : vector<10x160xf32>
    %34 = vector.shape_cast %33 : vector<10x160xf32> to vector<5x2x160xf32>
    %cst_32 = arith.constant dense<0xFF800000> : vector<5x160xf32>
    %35 = vector.multi_reduction <maximumf>, %34, %cst_32 [1] : vector<5x2x160xf32> to vector<5x160xf32>
    %c144_i32 = arith.constant 144 : i32
    %36 = tpu.dynamic_rotate %35 by %c144_i32 dim 1 : vector<5x160xf32>, i32 -> vector<5x160xf32>
    %37 = arith.maximumf %35, %36 : vector<5x160xf32>
    %38 = vector.shape_cast %37 : vector<5x160xf32> to vector<1x5x160xf32>
    %39 = arith.truncf %38 : vector<1x5x160xf32> to vector<1x5x160xbf16>
    %c0_33 = arith.constant 0 : index
    %c0_34 = arith.constant 0 : index
    %c0_35 = arith.constant 0 : index
    %40 = vector.load %arg4[%c0_33, %c0_34, %c0_35] : memref<1x5x160xbf16, #tpu.memory_space<vmem>>, vector<1x5x160xbf16>
    tpu.vector_store %arg4[%c0_33, %c0_34, %c0_35], %39 {strides = array<i32>} : memref<1x5x160xbf16, #tpu.memory_space<vmem>>, vector<1x5x160xbf16>,
    return
  }
  func.func @transform_0(%arg0: i32) -> (i32, i32, i32) {
    %c0_i32 = arith.constant 0 : i32
    %c0_i32_0 = arith.constant 0 : i32
    %c0_i32_1 = arith.constant 0 : i32
    return %arg0, %c0_i32, %c0_i32_0 : i32, i32, i32
  }
  func.func @transform_1(%arg0: i32) -> (i32, i32, i32) {
    %c0_i32 = arith.constant 0 : i32
    %c0_i32_0 = arith.constant 0 : i32
    %c0_i32_1 = arith.constant 0 : i32
    %c0_i32_2 = arith.constant 0 : i32
    return %c0_i32, %c0_i32_0, %c0_i32_1 : i32, i32, i32
  }
  func.func @transform_2(%arg0: i32) -> (i32, i32) {
    %c0_i32 = arith.constant 0 : i32
    %c0_i32_0 = arith.constant 0 : i32
    %c0_i32_1 = arith.constant 0 : i32
    return %c0_i32, %c0_i32_0 : i32, i32
  }
  func.func @transform_3(%arg0: i32) -> (i32, i32, i32) {
    %c0_i32 = arith.constant 0 : i32
    %c0_i32_0 = arith.constant 0 : i32
    %c0_i32_1 = arith.constant 0 : i32
    return %arg0, %c0_i32, %c0_i32_0 : i32, i32, i32
  }
}

module attributes {stable_mosaic.version = 11 : i64} {
  func.func @_conv_relu_pool_kernel(%arg0: i32, %arg1: memref<1x32x256xbf16, #tpu.memory_space<vmem>>, %arg2: memref<5x256x224xbf16, #tpu.memory_space<vmem>>, %arg3: memref<1x224xf32, #tpu.memory_space<vmem>>, %arg4: memref<1x14x224xbf16, #tpu.memory_space<vmem>>) attributes {dimension_semantics = [#tpu.dimension_semantics<parallel>], iteration_bounds = array<i64: 2>, scalar_prefetch = 0 : i64, scratch_operands = 0 : i64, tpu.core_type = #tpu.core_type<tc>, window_params = [{transform_indices = @transform_0, window_bounds = array<i64: 1, 32, 256>}, {pipeline_mode = #tpu.pipeline_mode<synchronous>, transform_indices = @transform_1, window_bounds = array<i64: 5, 256, 224>}, {pipeline_mode = #tpu.pipeline_mode<synchronous>, transform_indices = @transform_2, window_bounds = array<i64: 1, 224>}, {transform_indices = @transform_3, window_bounds = array<i64: 1, 14, 224>}]} {
    %c0 = arith.constant 0 : index
    %c0_0 = arith.constant 0 : index
    %c0_1 = arith.constant 0 : index
    %0 = vector.load %arg1[%c0, %c0_0, %c0_1] : memref<1x32x256xbf16, #tpu.memory_space<vmem>>, vector<1x28x256xbf16>
    %1 = vector.shape_cast %0 : vector<1x28x256xbf16> to vector<28x256xbf16>
    %c0_2 = arith.constant 0 : index
    %c0_3 = arith.constant 0 : index
    %c0_4 = arith.constant 0 : index
    %2 = vector.load %arg2[%c0_2, %c0_3, %c0_4] : memref<5x256x224xbf16, #tpu.memory_space<vmem>>, vector<1x256x224xbf16>
    %3 = vector.shape_cast %2 : vector<1x256x224xbf16> to vector<256x224xbf16>
    %cst = arith.constant dense<0.000000e+00> : vector<28x224xf32>
    %4 = tpu.matmul %1, %3, %cst {dimension_numbers = #tpu.dot_dimension_numbers<[1], [0], [0], [1], [0, 0, 1, 1], [], []>} : vector<28x256xbf16>, vector<256x224xbf16>, vector<28x224xf32> -> vector<28x224xf32>
    %c0_5 = arith.constant 0 : index
    %c1 = arith.constant 1 : index
    %c0_6 = arith.constant 0 : index
    %5 = vector.load %arg1[%c0_5, %c1, %c0_6] : memref<1x32x256xbf16, #tpu.memory_space<vmem>>, vector<1x28x256xbf16>
    %6 = vector.shape_cast %5 : vector<1x28x256xbf16> to vector<28x256xbf16>
    %c1_7 = arith.constant 1 : index
    %c0_8 = arith.constant 0 : index
    %c0_9 = arith.constant 0 : index
    %7 = vector.load %arg2[%c1_7, %c0_8, %c0_9] : memref<5x256x224xbf16, #tpu.memory_space<vmem>>, vector<1x256x224xbf16>
    %8 = vector.shape_cast %7 : vector<1x256x224xbf16> to vector<256x224xbf16>
    %cst_10 = arith.constant dense<0.000000e+00> : vector<28x224xf32>
    %9 = tpu.matmul %6, %8, %cst_10 {dimension_numbers = #tpu.dot_dimension_numbers<[1], [0], [0], [1], [0, 0, 1, 1], [], []>} : vector<28x256xbf16>, vector<256x224xbf16>, vector<28x224xf32> -> vector<28x224xf32>
    %10 = arith.addf %4, %9 : vector<28x224xf32>
    %c0_11 = arith.constant 0 : index
    %c2 = arith.constant 2 : index
    %c0_12 = arith.constant 0 : index
    %11 = vector.load %arg1[%c0_11, %c2, %c0_12] : memref<1x32x256xbf16, #tpu.memory_space<vmem>>, vector<1x28x256xbf16>
    %12 = vector.shape_cast %11 : vector<1x28x256xbf16> to vector<28x256xbf16>
    %c2_13 = arith.constant 2 : index
    %c0_14 = arith.constant 0 : index
    %c0_15 = arith.constant 0 : index
    %13 = vector.load %arg2[%c2_13, %c0_14, %c0_15] : memref<5x256x224xbf16, #tpu.memory_space<vmem>>, vector<1x256x224xbf16>
    %14 = vector.shape_cast %13 : vector<1x256x224xbf16> to vector<256x224xbf16>
    %cst_16 = arith.constant dense<0.000000e+00> : vector<28x224xf32>
    %15 = tpu.matmul %12, %14, %cst_16 {dimension_numbers = #tpu.dot_dimension_numbers<[1], [0], [0], [1], [0, 0, 1, 1], [], []>} : vector<28x256xbf16>, vector<256x224xbf16>, vector<28x224xf32> -> vector<28x224xf32>
    %16 = arith.addf %10, %15 : vector<28x224xf32>
    %c0_17 = arith.constant 0 : index
    %c3 = arith.constant 3 : index
    %c0_18 = arith.constant 0 : index
    %17 = vector.load %arg1[%c0_17, %c3, %c0_18] : memref<1x32x256xbf16, #tpu.memory_space<vmem>>, vector<1x28x256xbf16>
    %18 = vector.shape_cast %17 : vector<1x28x256xbf16> to vector<28x256xbf16>
    %c3_19 = arith.constant 3 : index
    %c0_20 = arith.constant 0 : index
    %c0_21 = arith.constant 0 : index
    %19 = vector.load %arg2[%c3_19, %c0_20, %c0_21] : memref<5x256x224xbf16, #tpu.memory_space<vmem>>, vector<1x256x224xbf16>
    %20 = vector.shape_cast %19 : vector<1x256x224xbf16> to vector<256x224xbf16>
    %cst_22 = arith.constant dense<0.000000e+00> : vector<28x224xf32>
    %21 = tpu.matmul %18, %20, %cst_22 {dimension_numbers = #tpu.dot_dimension_numbers<[1], [0], [0], [1], [0, 0, 1, 1], [], []>} : vector<28x256xbf16>, vector<256x224xbf16>, vector<28x224xf32> -> vector<28x224xf32>
    %22 = arith.addf %16, %21 : vector<28x224xf32>
    %c0_23 = arith.constant 0 : index
    %c4 = arith.constant 4 : index
    %c0_24 = arith.constant 0 : index
    %23 = vector.load %arg1[%c0_23, %c4, %c0_24] : memref<1x32x256xbf16, #tpu.memory_space<vmem>>, vector<1x28x256xbf16>
    %24 = vector.shape_cast %23 : vector<1x28x256xbf16> to vector<28x256xbf16>
    %c4_25 = arith.constant 4 : index
    %c0_26 = arith.constant 0 : index
    %c0_27 = arith.constant 0 : index
    %25 = vector.load %arg2[%c4_25, %c0_26, %c0_27] : memref<5x256x224xbf16, #tpu.memory_space<vmem>>, vector<1x256x224xbf16>
    %26 = vector.shape_cast %25 : vector<1x256x224xbf16> to vector<256x224xbf16>
    %cst_28 = arith.constant dense<0.000000e+00> : vector<28x224xf32>
    %27 = tpu.matmul %24, %26, %cst_28 {dimension_numbers = #tpu.dot_dimension_numbers<[1], [0], [0], [1], [0, 0, 1, 1], [], []>} : vector<28x256xbf16>, vector<256x224xbf16>, vector<28x224xf32> -> vector<28x224xf32>
    %28 = arith.addf %22, %27 : vector<28x224xf32>
    %c0_29 = arith.constant 0 : index
    %c0_30 = arith.constant 0 : index
    %29 = vector.load %arg3[%c0_29, %c0_30] : memref<1x224xf32, #tpu.memory_space<vmem>>, vector<1x224xf32>
    %30 = vector.broadcast %29 : vector<1x224xf32> to vector<28x224xf32>
    %31 = arith.addf %28, %30 : vector<28x224xf32>
    %cst_31 = arith.constant 0.000000e+00 : f32
    %32 = vector.broadcast %cst_31 : f32 to vector<28x224xf32>
    %33 = arith.maximumf %31, %32 : vector<28x224xf32>
    %34 = vector.shape_cast %33 : vector<28x224xf32> to vector<14x2x224xf32>
    %cst_32 = arith.constant dense<0xFF800000> : vector<14x224xf32>
    %35 = vector.multi_reduction <maximumf>, %34, %cst_32 [1] : vector<14x2x224xf32> to vector<14x224xf32>
    %c216_i32 = arith.constant 216 : i32
    %36 = tpu.dynamic_rotate %35 by %c216_i32 dim 1 : vector<14x224xf32>, i32 -> vector<14x224xf32>
    %37 = arith.maximumf %35, %36 : vector<14x224xf32>
    %38 = vector.shape_cast %37 : vector<14x224xf32> to vector<1x14x224xf32>
    %39 = arith.truncf %38 : vector<1x14x224xf32> to vector<1x14x224xbf16>
    %c0_33 = arith.constant 0 : index
    %c0_34 = arith.constant 0 : index
    %c0_35 = arith.constant 0 : index
    %40 = vector.load %arg4[%c0_33, %c0_34, %c0_35] : memref<1x14x224xbf16, #tpu.memory_space<vmem>>, vector<1x14x224xbf16>
    tpu.vector_store %arg4[%c0_33, %c0_34, %c0_35], %39 {strides = array<i32>} : memref<1x14x224xbf16, #tpu.memory_space<vmem>>, vector<1x14x224xbf16>,
    return
  }
  func.func @transform_0(%arg0: i32) -> (i32, i32, i32) {
    %c0_i32 = arith.constant 0 : i32
    %c0_i32_0 = arith.constant 0 : i32
    %c0_i32_1 = arith.constant 0 : i32
    return %arg0, %c0_i32, %c0_i32_0 : i32, i32, i32
  }
  func.func @transform_1(%arg0: i32) -> (i32, i32, i32) {
    %c0_i32 = arith.constant 0 : i32
    %c0_i32_0 = arith.constant 0 : i32
    %c0_i32_1 = arith.constant 0 : i32
    %c0_i32_2 = arith.constant 0 : i32
    return %c0_i32, %c0_i32_0, %c0_i32_1 : i32, i32, i32
  }
  func.func @transform_2(%arg0: i32) -> (i32, i32) {
    %c0_i32 = arith.constant 0 : i32
    %c0_i32_0 = arith.constant 0 : i32
    %c0_i32_1 = arith.constant 0 : i32
    return %c0_i32, %c0_i32_0 : i32, i32
  }
  func.func @transform_3(%arg0: i32) -> (i32, i32, i32) {
    %c0_i32 = arith.constant 0 : i32
    %c0_i32_0 = arith.constant 0 : i32
    %c0_i32_1 = arith.constant 0 : i32
    return %arg0, %c0_i32, %c0_i32_0 : i32, i32, i32
  }
}

module attributes {stable_mosaic.version = 11 : i64} {
  func.func @_fc_stack_kernel(%arg0: i32, %arg1: memref<8x800xbf16, #tpu.memory_space<vmem>>, %arg2: memref<800x128xbf16, #tpu.memory_space<vmem>>, %arg3: memref<1x128xf32, #tpu.memory_space<vmem>>, %arg4: memref<128x128xbf16, #tpu.memory_space<vmem>>, %arg5: memref<1x128xf32, #tpu.memory_space<vmem>>, %arg6: memref<128x128xbf16, #tpu.memory_space<vmem>>, %arg7: memref<1x128xf32, #tpu.memory_space<vmem>>, %arg8: memref<8x128xf32, #tpu.memory_space<vmem>>) attributes {dimension_semantics = [#tpu.dimension_semantics<parallel>], iteration_bounds = array<i64: 1>, scalar_prefetch = 0 : i64, scratch_operands = 0 : i64, tpu.core_type = #tpu.core_type<tc>, window_params = [{transform_indices = @transform_0, window_bounds = array<i64: 8, 800>}, {pipeline_mode = #tpu.pipeline_mode<synchronous>, transform_indices = @transform_1, window_bounds = array<i64: 800, 128>}, {pipeline_mode = #tpu.pipeline_mode<synchronous>, transform_indices = @transform_2, window_bounds = array<i64: 1, 128>}, {pipeline_mode = #tpu.pipeline_mode<synchronous>, transform_indices = @transform_3, window_bounds = array<i64: 128, 128>}, {pipeline_mode = #tpu.pipeline_mode<synchronous>, transform_indices = @transform_4, window_bounds = array<i64: 1, 128>}, {pipeline_mode = #tpu.pipeline_mode<synchronous>, transform_indices = @transform_5, window_bounds = array<i64: 128, 128>}, {pipeline_mode = #tpu.pipeline_mode<synchronous>, transform_indices = @transform_6, window_bounds = array<i64: 1, 128>}, {transform_indices = @transform_7, window_bounds = array<i64: 8, 128>}]} {
    %c0 = arith.constant 0 : index
    %c0_0 = arith.constant 0 : index
    %0 = vector.load %arg1[%c0, %c0_0] : memref<8x800xbf16, #tpu.memory_space<vmem>>, vector<8x800xbf16>
    %c0_1 = arith.constant 0 : index
    %c0_2 = arith.constant 0 : index
    %1 = vector.load %arg2[%c0_1, %c0_2] : memref<800x128xbf16, #tpu.memory_space<vmem>>, vector<800x128xbf16>
    %cst = arith.constant dense<0.000000e+00> : vector<8x128xf32>
    %2 = tpu.matmul %0, %1, %cst {dimension_numbers = #tpu.dot_dimension_numbers<[1], [0], [0], [1], [0, 0, 1, 1], [], []>} : vector<8x800xbf16>, vector<800x128xbf16>, vector<8x128xf32> -> vector<8x128xf32>
    %c0_3 = arith.constant 0 : index
    %c0_4 = arith.constant 0 : index
    %3 = vector.load %arg3[%c0_3, %c0_4] : memref<1x128xf32, #tpu.memory_space<vmem>>, vector<1x128xf32>
    %4 = vector.broadcast %3 : vector<1x128xf32> to vector<8x128xf32>
    %5 = arith.addf %2, %4 : vector<8x128xf32>
    %cst_5 = arith.constant 0.000000e+00 : f32
    %6 = vector.broadcast %cst_5 : f32 to vector<8x128xf32>
    %7 = arith.maximumf %5, %6 : vector<8x128xf32>
    %8 = arith.truncf %7 : vector<8x128xf32> to vector<8x128xbf16>
    %c0_6 = arith.constant 0 : index
    %c0_7 = arith.constant 0 : index
    %9 = vector.load %arg4[%c0_6, %c0_7] : memref<128x128xbf16, #tpu.memory_space<vmem>>, vector<128x128xbf16>
    %cst_8 = arith.constant dense<0.000000e+00> : vector<8x128xf32>
    %10 = tpu.matmul %8, %9, %cst_8 {dimension_numbers = #tpu.dot_dimension_numbers<[1], [0], [0], [1], [0, 0, 1, 1], [], []>} : vector<8x128xbf16>, vector<128x128xbf16>, vector<8x128xf32> -> vector<8x128xf32>
    %c0_9 = arith.constant 0 : index
    %c0_10 = arith.constant 0 : index
    %11 = vector.load %arg5[%c0_9, %c0_10] : memref<1x128xf32, #tpu.memory_space<vmem>>, vector<1x128xf32>
    %12 = vector.broadcast %11 : vector<1x128xf32> to vector<8x128xf32>
    %13 = arith.addf %10, %12 : vector<8x128xf32>
    %cst_11 = arith.constant 0.000000e+00 : f32
    %14 = vector.broadcast %cst_11 : f32 to vector<8x128xf32>
    %15 = arith.maximumf %13, %14 : vector<8x128xf32>
    %16 = arith.truncf %15 : vector<8x128xf32> to vector<8x128xbf16>
    %c0_12 = arith.constant 0 : index
    %c0_13 = arith.constant 0 : index
    %17 = vector.load %arg6[%c0_12, %c0_13] : memref<128x128xbf16, #tpu.memory_space<vmem>>, vector<128x128xbf16>
    %cst_14 = arith.constant dense<0.000000e+00> : vector<8x128xf32>
    %18 = tpu.matmul %16, %17, %cst_14 {dimension_numbers = #tpu.dot_dimension_numbers<[1], [0], [0], [1], [0, 0, 1, 1], [], []>} : vector<8x128xbf16>, vector<128x128xbf16>, vector<8x128xf32> -> vector<8x128xf32>
    %c0_15 = arith.constant 0 : index
    %c0_16 = arith.constant 0 : index
    %19 = vector.load %arg7[%c0_15, %c0_16] : memref<1x128xf32, #tpu.memory_space<vmem>>, vector<1x128xf32>
    %20 = vector.broadcast %19 : vector<1x128xf32> to vector<8x128xf32>
    %21 = arith.addf %18, %20 : vector<8x128xf32>
    %c0_17 = arith.constant 0 : index
    %c0_18 = arith.constant 0 : index
    %22 = vector.load %arg8[%c0_17, %c0_18] : memref<8x128xf32, #tpu.memory_space<vmem>>, vector<8x128xf32>
    tpu.vector_store %arg8[%c0_17, %c0_18], %21 {strides = array<i32>} : memref<8x128xf32, #tpu.memory_space<vmem>>, vector<8x128xf32>,
    return
  }
  func.func @transform_0(%arg0: i32) -> (i32, i32) {
    %c0_i32 = arith.constant 0 : i32
    %c0_i32_0 = arith.constant 0 : i32
    return %arg0, %c0_i32 : i32, i32
  }
  func.func @transform_1(%arg0: i32) -> (i32, i32) {
    %c0_i32 = arith.constant 0 : i32
    %c0_i32_0 = arith.constant 0 : i32
    %c0_i32_1 = arith.constant 0 : i32
    return %c0_i32, %c0_i32_0 : i32, i32
  }
  func.func @transform_2(%arg0: i32) -> (i32, i32) {
    %c0_i32 = arith.constant 0 : i32
    %c0_i32_0 = arith.constant 0 : i32
    %c0_i32_1 = arith.constant 0 : i32
    return %c0_i32, %c0_i32_0 : i32, i32
  }
  func.func @transform_3(%arg0: i32) -> (i32, i32) {
    %c0_i32 = arith.constant 0 : i32
    %c0_i32_0 = arith.constant 0 : i32
    %c0_i32_1 = arith.constant 0 : i32
    return %c0_i32, %c0_i32_0 : i32, i32
  }
  func.func @transform_4(%arg0: i32) -> (i32, i32) {
    %c0_i32 = arith.constant 0 : i32
    %c0_i32_0 = arith.constant 0 : i32
    %c0_i32_1 = arith.constant 0 : i32
    return %c0_i32, %c0_i32_0 : i32, i32
  }
  func.func @transform_5(%arg0: i32) -> (i32, i32) {
    %c0_i32 = arith.constant 0 : i32
    %c0_i32_0 = arith.constant 0 : i32
    %c0_i32_1 = arith.constant 0 : i32
    return %c0_i32, %c0_i32_0 : i32, i32
  }
  func.func @transform_6(%arg0: i32) -> (i32, i32) {
    %c0_i32 = arith.constant 0 : i32
    %c0_i32_0 = arith.constant 0 : i32
    %c0_i32_1 = arith.constant 0 : i32
    return %c0_i32, %c0_i32_0 : i32, i32
  }
  func.func @transform_7(%arg0: i32) -> (i32, i32) {
    %c0_i32 = arith.constant 0 : i32
    %c0_i32_0 = arith.constant 0 : i32
    return %arg0, %c0_i32 : i32, i32
  }
}

</mosaic_0001>

<bundles_post_ra>
// kernel: cnn_forward.4
= control target key start
LH: loop header
LB: loop body
LE: loop exit
PB: predicated region body
PF: predicated region fallthrough
CT: control target
= control target key end

     0   :  { %s2308_s12 = smov 0   ;;  %s2855_s0 = inlined_call_operand.vmem [shape: bf16[2,14,224], index: 0, kind: input, shape index: {}]   ;;  %s2856_s1 = inlined_call_operand.vmem [shape: bf16[5,224,160], index: 1, kind: input, shape index: {}]   ;;  %s2857_s2 = inlined_call_operand.vmem [shape: f32[1,160], index: 2, kind: input, shape index: {}]   ;;  %s2858_s3 = inlined_call_operand.vmem [shape: bf16[2,5,160], index: 3, kind: output, shape index: {}]  }
   0x1 LB: > { %s1715_s13 = sadd.s32 4294967295, %s2283_s12   ;;  %p1719_p0 = scmp.ge.s32.totalorder %s2283_s12, 1  ;;  %s2283_s12 = sphi %s2308_s12, %s13_s12  }
   0x2   : > { %p137_p1 = scmp.lt.s32.totalorder %s2283_s12, 3 }
   0x4   : > { %p138_p2 = pnand %p1719_p0, %p137_p1 }
   0x5   : > { %v2057_v0 = vld [vmem:[%s2856_s1 + $0xe4] ss:$8 sps:$4 sm:$0xff] (!%p138_p2)   ;;  %v2061_v2 = vld [vmem:[%s2856_s1 + $0xe0] ss:$8 sps:$4 sm:$0xff] (!%p138_p2)   ;;  %v2063_v4 = vld [vmem:[%s2856_s1 + $0xf4] ss:$8 sps:$4 sm:$0xff] (!%p138_p2)  }
   0x6   : > { %141 = sbr.rel (%p138_p2) target bundleno = 677 (0x2a5), region = 32  ;;  %v2059_v1 = vld [vmem:[%s2856_s1 + $0x1c4] ss:$8 sps:$4 sm:$0xff] (!%p138_p2)   ;;  %399 = vmatprep.subr.bf16.mxu1 (!%p138_p2), %v2057_v0  ;;  %v2062_v3 = vld [vmem:[%s2856_s1 + $0x1c0] ss:$8 sps:$4 sm:$0xff] (!%p138_p2)   ;;  %p161_p3 = scmp.lt.s32.totalorder (!%p138_p2), %s1715_s13, 1 }
   0x7   : > { %815 = vmatprep.subr.bf16.mxu0 (!%p138_p2), %v2059_v1  ;;  %400 = vmatpush1.bf16.msra.mxu1 (!%p138_p2), %v2061_v2  ;;  %v2065_v5 = vld [vmem:[%s2856_s1 + $0x1d4] ss:$8 sps:$4 sm:$0xff] (!%p138_p2)   ;;  %v2067_v6 = vld [vmem:[%s2856_s1 + $0xf0] ss:$8 sps:$4 sm:$0xff] (!%p138_p2)   ;;  %v2069_v8 = vld [vmem:[%s2856_s1 + $0x104] ss:$8 sps:$4 sm:$0xff] (!%p138_p2)  }
   0x8   : > { %816 = vmatpush1.bf16.msra.mxu0 (!%p138_p2), %v2062_v3  ;;  %401 = vmatprep.subr.bf16.mxu1 (!%p138_p2), %v2063_v4  ;;  %v2068_v7 = vld [vmem:[%s2856_s1 + $0x1d0] ss:$8 sps:$4 sm:$0xff] (!%p138_p2)   ;;  %v2071_v9 = vld [vmem:[%s2856_s1 + $0x1e4] ss:$8 sps:$4 sm:$0xff] (!%p138_p2)   ;;  %v2073_v10 = vld [vmem:[%s2856_s1 + $0x100] ss:$8 sps:$4 sm:$0xff] (!%p138_p2)  }
   0x9   : > { %817 = vmatprep.subr.bf16.mxu0 (!%p138_p2), %v2065_v5  ;;  %v2074_v11 = vld [vmem:[%s2856_s1 + $0x1e0] ss:$8 sps:$4 sm:$0xff] (!%p138_p2)   ;;  %v2075_v12 = vld [vmem:[%s2856_s1 + $0x114] ss:$8 sps:$4 sm:$0xff] (!%p138_p2)   ;;  %v2079_v14 = vld [vmem:[%s2856_s1 + $0x110] ss:$8 sps:$4 sm:$0xff] (!%p138_p2)  }
   0xa   : > { %v2077_v13 = vld [vmem:[%s2856_s1 + $0x1f4] ss:$8 sps:$4 sm:$0xff] (!%p138_p2)   ;;  %v2080_v15 = vld [vmem:[%s2856_s1 + $0x1f0] ss:$8 sps:$4 sm:$0xff] (!%p138_p2)   ;;  %v2081_v16 = vld [vmem:[%s2856_s1 + $0x124] ss:$8 sps:$4 sm:$0xff] (!%p138_p2)  }
   0xb   : > { %402 = vmatpush1.bf16.msra.mxu1 (!%p138_p2), %v2067_v6  ;;  %v2083_v17 = vld [vmem:[%s2856_s1 + $0x204] ss:$8 sps:$4 sm:$0xff] (!%p138_p2)   ;;  %v2085_v18 = vld [vmem:[%s2856_s1 + $0x120] ss:$8 sps:$4 sm:$0xff] (!%p138_p2)   ;;  %v2087_v20 = vld [vmem:[%s2856_s1 + $0x134] ss:$8 sps:$4 sm:$0xff] (!%p138_p2)  }
   0xc   : > { %818 = vmatpush1.bf16.msra.mxu0 (!%p138_p2), %v2068_v7  ;;  %403 = vmatprep.subr.bf16.mxu1 (!%p138_p2), %v2069_v8  ;;  %v2086_v19 = vld [vmem:[%s2856_s1 + $0x200] ss:$8 sps:$4 sm:$0xff] (!%p138_p2)   ;;  %v2089_v21 = vld [vmem:[%s2856_s1 + $0x214] ss:$8 sps:$4 sm:$0xff] (!%p138_p2)   ;;  %v2091_v22 = vld [vmem:[%s2856_s1 + $0x130] ss:$8 sps:$4 sm:$0xff] (!%p138_p2)  }
   0xd   : > { %819 = vmatprep.subr.bf16.mxu0 %v2071_v9  ;;  %v2092_v23 = vld [vmem:[%s2856_s1 + $0x210] ss:$8 sps:$4 sm:$0xff]   ;;  %v2093_v24 = vld [vmem:[%s2856_s1 + $0x144] ss:$8 sps:$4 sm:$0xff]   ;;  %v2097_v26 = vld [vmem:[%s2856_s1 + $0x140] ss:$8 sps:$4 sm:$0xff]  }
   0xe   : > { %v2095_v25 = vld [vmem:[%s2856_s1 + $0x224] ss:$8 sps:$4 sm:$0xff]   ;;  %v2098_v27 = vld [vmem:[%s2856_s1 + $0x220] ss:$8 sps:$4 sm:$0xff]   ;;  %v2099_v28 = vld [vmem:[%s2856_s1 + $0x154] ss:$8 sps:$4 sm:$0xff]  }
   0xf   : > { %404 = vmatpush1.bf16.msra.mxu1 %v2073_v10  ;;  %v2101_v29 = vld [vmem:[%s2856_s1 + $0x234] ss:$8 sps:$4 sm:$0xff]   ;;  %v2103_v30 = vld [vmem:[%s2856_s1 + $0x150] ss:$8 sps:$4 sm:$0xff]   ;;  %s2860_s13 = smov (!%p161_p3, %s1715_s13), 1  ;;  %vm395_vm0 = vcmask 785408  }
  0x10   : > { %820 = vmatpush1.bf16.msra.mxu0 %v2074_v11  ;;  %405 = vmatprep.subr.bf16.mxu1 %v2075_v12  ;;  %v2104_v31 = vld [vmem:[%s2856_s1 + $0x230] ss:$8 sps:$4 sm:$0xff]   ;;  %v2105_v32 = vld [vmem:[%s2856_s1 + $0x164] ss:$8 sps:$4 sm:$0xff]   ;;  %v2109_v34 = vld [vmem:[%s2856_s1 + $0x160] ss:$8 sps:$4 sm:$0xff]  }
  0x11   : > { %821 = vmatprep.subr.bf16.mxu0 %v2077_v13  ;;  %v2107_v33 = vld [vmem:[%s2856_s1 + $0x244] ss:$8 sps:$4 sm:$0xff]   ;;  %v2110_v35 = vld [vmem:[%s2856_s1 + $0x240] ss:$8 sps:$4 sm:$0xff]   ;;  %s1998_s9 = sshll.u32 %s2860_s13, 4  ;;  %vm1432_vm1 = vcmask 1041408  }
  0x12   : > { %v2111_v36 = vld [vmem:[%s2856_s1 + $0x174] ss:$8 sps:$4 sm:$0xff]   ;;  %s2440_s18 = scalar_lea.vmem %s2855_s0, %s1998_s9  ;;  %v2115_v38 = vld [vmem:[%s2856_s1 + $0x170] ss:$8 sps:$4 sm:$0xff]   ;;  %v2117_v40 = vld [vmem:[%s2856_s1 + $0x184] ss:$8 sps:$4 sm:$0xff]  }
  0x13   : > { %406 = vmatpush1.bf16.msra.mxu1 %v2079_v14  ;;  %v2113_v37 = vld [vmem:[%s2856_s1 + $0x254] ss:$8 sps:$4 sm:$0xff]   ;;  %v2116_v39 = vld [vmem:[%s2856_s1 + $0x250] ss:$8 sps:$4 sm:$0xff]   ;;  %v2119_v41 = vld [vmem:[%s2856_s1 + $0x264] ss:$8 sps:$4 sm:$0xff]  }
  0x14   : > { %822 = vmatpush1.bf16.msra.mxu0 %v2080_v15  ;;  %407 = vmatprep.subr.bf16.mxu1 %v2081_v16  ;;  %v2455_v42 = vld [vmem:[%s2440_s18] sm:$0xff]  ;;  %v202_v43 = vld [vmem:[%s2440_s18 + $0x8] sm:$0x33]  ;;  %v2123_v48 = vld [vmem:[%s2856_s1 + $0x194] ss:$8 sps:$4 sm:$0xff]   ;;  %vm1514_vm2 = vcmask 1041409  }
  0x15   : > { %823 = vmatprep.subr.bf16.mxu0 %v2083_v17  ;;  %v1753_v44 = vcombine.high %v2455_v42, %v202_v43  ;;  %v2121_v45 = vld [vmem:[%s2856_s1 + $0x180] ss:$8 sps:$4 sm:$0xff]   ;;  %v2125_v52 = vld [vmem:[%s2856_s1 + $0x274] ss:$8 sps:$4 sm:$0xff]   ;;  %v2127_v53 = vld [vmem:[%s2856_s1 + $0x190] ss:$8 sps:$4 sm:$0xff]   ;;  %v1752_v57 = vcombine.low %v2455_v42, %v202_v43 }
  0x16   : > { %v2122_v46 = vld [vmem:[%s2856_s1 + $0x260] ss:$8 sps:$4 sm:$0xff]   ;;  %v2128_v58 = vld [vmem:[%s2856_s1 + $0x270] ss:$8 sps:$4 sm:$0xff]   ;;  %v2129_v60 = vld [vmem:[%s2856_s1 + $0x1a4] ss:$8 sps:$4 sm:$0xff]  }
  0x17   : > { %408 = vmatpush1.bf16.msra.mxu1 %v2085_v18  ;;  %v2466_v47 = vld [vmem:[%s2440_s18] sm:$0xee]  ;;  %v248_v49 = vshrl.u32 %v1753_v44, 16  ;;  %v250_v50 = vshll.u32 %v1753_v44, 16  ;;  %v2479_v56 = vld [vmem:[%s2440_s18 + $0x8] sm:$0x77] }
  0x18   : > { %824 = vmatpush1.bf16.msra.mxu0 %v2086_v19  ;;  %409 = vmatprep.subr.bf16.mxu1 %v2087_v20  ;;  %v1843_v51 = vcombine.high %v2466_v47, %v202_v43  ;;  %v2131_v61 = vld [vmem:[%s2856_s1 + $0x284] ss:$8 sps:$4 sm:$0xff]   ;;  %v1902_v62 = vcombine.high %v2466_v47, %v2479_v56  ;;  %v2133_v63 = vld [vmem:[%s2856_s1 + $0x1a0] ss:$8 sps:$4 sm:$0xff]   ;;  %v243_v0 = vshll.u32 %v1752_v57, 16  ;;  %v241_v7 = vshrl.u32 %v1752_v57, 16 }
  0x19   : > { %825 = vmatprep.subr.bf16.mxu0 %v2089_v21  ;;  %v252_v54 = vrot.slane %v250_v50, 1  ;;  %v2134_v1 = vld [vmem:[%s2856_s1 + $0x280] ss:$8 sps:$4 sm:$0xff]   ;;  %v2135_v2 = vld [vmem:[%s2856_s1 + $0x1b4] ss:$8 sps:$4 sm:$0xff]   ;;  %v1842_v9 = vcombine.low %v2466_v47, %v202_v43  ;;  %vm1516_vm3 = vcmask 1042434  }
  0x1a   : > { %v670_v55 = vrot.slane %v1843_v51, 1  ;;  %v2137_v3 = vld [vmem:[%s2856_s1 + $0x294] ss:$8 sps:$4 sm:$0xff]   ;;  %v906_v4 = vshrl.u32 %v1902_v62, 16  ;;  %v909_v5 = vshll.u32 %v1902_v62, 16  ;;  %v245_v8 = vrot.slane %v243_v0, 1 }
  0x1b   : > { %410 = vmatpush1.bf16.msra.mxu1 %v2091_v22  ;;  %v253_v59 = vor.u32 %v252_v54, %v248_v49  ;;  %v2139_v6 = vld [vmem:[%s2856_s1 + $0x1b0] ss:$8 sps:$4 sm:$0xff]   ;;  %v2144_v11 = vld [vmem:[%s2856_s1 + $0x4] ss:$8 sps:$4 sm:$0xff]   ;;  %v2142_v15 = vld [vmem:[%s2856_s1] ss:$8 sps:$4 sm:$0xff]  }
  0x1c   : > { %826 = vmatpush1.bf16.msra.mxu0 %v2092_v23  ;;  %411 = vmatprep.subr.bf16.mxu1 %v2093_v24  ;;  %v2140_v10 = vld [vmem:[%s2856_s1 + $0x290] ss:$8 sps:$4 sm:$0xff]   ;;  %v2150_v12 = vld [vmem:[%s2856_s1 + $0x2a4] ss:$8 sps:$4 sm:$0xff]   ;;  %v908_v13 = vrot.slane %v906_v4, 1  ;;  %v911_v14 = vrot.slane %v909_v5, 2  ;;  %v246_v16 = vor.u32 %v245_v8, %v241_v7  ;;  %v1901_v5 = vcombine.low %v2466_v47, %v2479_v56 }
  0x1d   : > { %827 = vmatprep.subr.bf16.mxu0 %v2095_v25  ;;  %1782 = vmatprep.mubr.msk.bf16.mxu1 %vm395_vm0, %v253_v59  ;;  %v669_v17 = vrot.slane %v1842_v9, 1  ;;  %v2148_v18 = vld [vmem:[%s2856_s1 + $0x2a0] ss:$8 sps:$4 sm:$0xff]   ;;  %v2155_v19 = vld [vmem:[%s2856_s1 + $0x14] ss:$8 sps:$4 sm:$0xff]   ;;  %vm1518_vm4 = vcmask 1043459  }
  0x1e   : > { %1872 = vmatprep.mubr.msk.bf16.mxu0 %vm395_vm0, %v670_v55  ;;  %v2158_v20 = vld [vmem:[%s2856_s1 + $0x2b4] ss:$8 sps:$4 sm:$0xff]   ;;  %v912_v21 = vor.u32 %v911_v14, %v908_v13  ;;  %v2153_v22 = vld [vmem:[%s2856_s1 + $0x10] ss:$8 sps:$4 sm:$0xff]   ;;  %v2161_v24 = vld [vmem:[%s2856_s1 + $0x24] ss:$8 sps:$4 sm:$0xff]  }
  0x1f   : > { %412 = vmatpush1.bf16.msra.mxu1 %v2097_v26  ;;  %v2156_v23 = vld [vmem:[%s2856_s1 + $0x2b0] ss:$8 sps:$4 sm:$0xff]   ;;  %v2164_v25 = vld [vmem:[%s2856_s1 + $0x2c4] ss:$8 sps:$4 sm:$0xff]   ;;  %v2159_v26 = vld [vmem:[%s2856_s1 + $0x20] ss:$8 sps:$4 sm:$0xff]  }
  0x20   : > { %828 = vmatpush1.bf16.msra.mxu0 %v2098_v27  ;;  %413 = vmatprep.subr.bf16.mxu1 %v2099_v28  ;;  %v2162_v27 = vld [vmem:[%s2856_s1 + $0x2c0] ss:$8 sps:$4 sm:$0xff]   ;;  %v2167_v28 = vld [vmem:[%s2856_s1 + $0x34] ss:$8 sps:$4 sm:$0xff]   ;;  %v2188_v43 = vld [vmem:[%s2856_s1 + $0x304] ss:$8 sps:$4 sm:$0xff]  }
  0x21   : > { %829 = vmatprep.subr.bf16.mxu0 %v2101_v29  ;;  %v2170_v29 = vld [vmem:[%s2856_s1 + $0x2d4] ss:$8 sps:$4 sm:$0xff]   ;;  %v2189_v50 = vld [vmem:[%s2856_s1 + $0x70] ss:$8 sps:$4 sm:$0xff]   ;;  %v2195_v54 = vld [vmem:[%s2856_s1 + $0x80] ss:$8 sps:$4 sm:$0xff]  }
  0x22   : > { %v2194_v49 = vld [vmem:[%s2856_s1 + $0x314] ss:$8 sps:$4 sm:$0xff]   ;;  %v2192_v51 = vld [vmem:[%s2856_s1 + $0x310] ss:$8 sps:$4 sm:$0xff]   ;;  %v2198_v55 = vld [vmem:[%s2856_s1 + $0x320] ss:$8 sps:$4 sm:$0xff]  }
  0x23   : > { %414 = vmatpush1.bf16.msra.mxu1 %v2103_v30  ;;  %v2165_v30 = vld [vmem:[%s2856_s1 + $0x30] ss:$8 sps:$4 sm:$0xff]   ;;  %v2203_v57 = vld [vmem:[%s2856_s1 + $0x94] ss:$8 sps:$4 sm:$0xff]   ;;  %v2212_v62 = vld [vmem:[%s2856_s1 + $0x344] ss:$8 sps:$4 sm:$0xff]  }
  0x24   : > { %830 = vmatpush1.bf16.msra.mxu0 %v2104_v31  ;;  %415 = vmatprep.subr.bf16.mxu1 %v2105_v32  ;;  %v2168_v31 = vld [vmem:[%s2856_s1 + $0x2d0] ss:$8 sps:$4 sm:$0xff]   ;;  %v2173_v32 = vld [vmem:[%s2856_s1 + $0x44] ss:$8 sps:$4 sm:$0xff]   ;;  %v2207_v0 = vld [vmem:[%s2856_s1 + $0xa0] ss:$8 sps:$4 sm:$0xff]  }
  0x25   : > { %831 = vmatprep.subr.bf16.mxu0 %v2107_v33  ;;  %v2176_v33 = vld [vmem:[%s2856_s1 + $0x2e4] ss:$8 sps:$4 sm:$0xff]   ;;  %v2201_v59 = vld [vmem:[%s2856_s1 + $0x90] ss:$8 sps:$4 sm:$0xff]   ;;  %v2218_v4 = vld [vmem:[%s2856_s1 + $0x354] ss:$8 sps:$4 sm:$0xff]  }
  0x26   : > { %v2216_v7 = vld [vmem:[%s2856_s1 + $0x350] ss:$8 sps:$4 sm:$0xff]   ;;  %v2221_v8 = vld [vmem:[%s2856_s1 + $0xc4] ss:$8 sps:$4 sm:$0xff]   ;;  %v898_v9 = vshrl.u32 %v1901_v5, 16  ;;  %vm1520_vm5 = vcmask 1044484  }
  0x27   : > { %416 = vmatpush1.bf16.msra.mxu1 %v2109_v34  ;;  %v2171_v34 = vld [vmem:[%s2856_s1 + $0x40] ss:$8 sps:$4 sm:$0xff]   ;;  %v2224_v47 = vld [vmem:[%s2856_s1 + $0x364] ss:$8 sps:$4 sm:$0xff]   ;;  %v2227_v13 = vld [vmem:[%s2856_s1 + $0xd4] ss:$8 sps:$4 sm:$0xff]  }
  0x28   : > { %832 = vmatpush1.bf16.msra.mxu0 %v2110_v35  ;;  %417 = vmatprep.subr.bf16.mxu1 %v2111_v36  ;;  %v2174_v35 = vld [vmem:[%s2856_s1 + $0x2e0] ss:$8 sps:$4 sm:$0xff]   ;;  %v2179_v36 = vld [vmem:[%s2856_s1 + $0x54] ss:$8 sps:$4 sm:$0xff]   ;;  %s2286_s29 = smov 32   ;;  %vm1440_vm6 = vcmask 254976  }
  0x29   : > { %833 = vmatprep.subr.bf16.mxu0 %v2113_v37  ;;  %v2182_v37 = vld [vmem:[%s2856_s1 + $0x2f4] ss:$8 sps:$4 sm:$0xff]   ;;  %vm1528_vm7 = vcmask 1047808   ;;  %s2287_s30 = smov 112   ;;  %vm1561_vm8 = vcmask 916480   ;;  %vm1650_vm9 = vcmask 1042432  }
  0x2a   : > { %v2230_v14 = vld [vmem:[%s2856_s1 + $0x374] ss:$8 sps:$4 sm:$0xff]   ;;  %vm1651_vm10 = vsmask.f32 2304  ;;  %vm1653_vm11 = vcmask 260100   ;;  %s1999_s4 = sshll.u32 %s2860_s13, 3 }
  0x2b   : > { %418 = vmatpush1.bf16.msra.mxu1 %v2115_v38  ;;  %v2177_v38 = vld [vmem:[%s2856_s1 + $0x50] ss:$8 sps:$4 sm:$0xff]   ;;  %vm1654_vm12 = vsmask.f32 6400  ;;  %vm1652_vm13 = vmand %vm1650_vm9, %vm1651_vm10  ;;  %s170_s7 = scalar_lea.vmem %s2858_s3, %s1999_s4 }
  0x2c   : > { %834 = vmatpush1.bf16.msra.mxu0 %v2116_v39  ;;  %419 = vmatprep.subr.bf16.mxu1 %v2117_v40  ;;  %v2180_v39 = vld [vmem:[%s2856_s1 + $0x2f0] ss:$8 sps:$4 sm:$0xff]   ;;  %v2588_v40 = vld [vmem:[%s2440_s18 + $0x8] sm:$0x11]  ;;  %vm1655_vm14 = vmand %vm1653_vm11, %vm1654_vm12 }
  0x2d   : > { %835 = vmatprep.subr.bf16.mxu0 %v2119_v41  ;;  %v2185_v41 = vld [vmem:[%s2856_s1 + $0x64] ss:$8 sps:$4 sm:$0xff]   ;;  %v1784_v44 = vcombine.high %v2455_v42, %v2588_v40  ;;  %vm1656_vm15 = vmor %vm1655_vm14, %vm1652_vm13 }
  0x2f   : > { %420 = vmatpush1.bf16.msra.mxu1 %v2121_v45  ;;  %v2183_v45 = vld [vmem:[%s2856_s1 + $0x60] ss:$8 sps:$4 sm:$0xff]  }
  0x30   : > { %836 = vmatpush1.bf16.msra.mxu0 %v2122_v46  ;;  %421 = vmatprep.subr.bf16.mxu1 %v2123_v48  ;;  %v2186_v46 = vld [vmem:[%s2856_s1 + $0x300] ss:$8 sps:$4 sm:$0xff]   ;;  %v2191_v48 = vld [vmem:[%s2856_s1 + $0x74] ss:$8 sps:$4 sm:$0xff]  }
  0x31   : > { %837 = vmatprep.subr.bf16.mxu0 %v2125_v52  ;;  %v2197_v52 = vld [vmem:[%s2856_s1 + $0x84] ss:$8 sps:$4 sm:$0xff]  }
  0x33   : > { %422 = vmatpush1.bf16.msra.mxu1 %v2127_v53  ;;  %v2200_v53 = vld [vmem:[%s2856_s1 + $0x324] ss:$8 sps:$4 sm:$0xff]  }
  0x34   : > { %838 = vmatpush1.bf16.msra.mxu0 %v2128_v58  ;;  %423 = vmatprep.subr.bf16.mxu1 %v2129_v60  ;;  %v2206_v58 = vld [vmem:[%s2856_s1 + $0x334] ss:$8 sps:$4 sm:$0xff]   ;;  %v2204_v60 = vld [vmem:[%s2856_s1 + $0x330] ss:$8 sps:$4 sm:$0xff]  }
  0x35   : > { %839 = vmatprep.subr.bf16.mxu0 %v2131_v61  ;;  %v2209_v61 = vld [vmem:[%s2856_s1 + $0xa4] ss:$8 sps:$4 sm:$0xff]  }
  0x37   : > { %424 = vmatpush1.bf16.msra.mxu1 %v2133_v63  ;;  %v2648_v63 = vld [vmem:[%s2440_s18] sm:$0xcc] }
  0x38   : > { %840 = vmatpush1.bf16.msra.mxu0 %v2134_v1  ;;  %425 = vmatprep.subr.bf16.mxu1 %v2135_v2  ;;  %v2210_v1 = vld [vmem:[%s2856_s1 + $0x340] ss:$8 sps:$4 sm:$0xff]   ;;  %v1960_v2 = vcombine.low %v2648_v63, %v2479_v56 }
  0x39   : > { %841 = vmatprep.subr.bf16.mxu0 %v2137_v3  ;;  %v2215_v3 = vld [vmem:[%s2856_s1 + $0xb4] ss:$8 sps:$4 sm:$0xff]  }
  0x3b   : > { %426 = vmatpush1.bf16.msra.mxu1 %v2139_v6  ;;  %v2213_v6 = vld [vmem:[%s2856_s1 + $0xb0] ss:$8 sps:$4 sm:$0xff]  }
  0x3c   : > { %842 = vmatpush1.bf16.msra.mxu0 %v2140_v10  ;;  %591 = vmatprep.subr.bf16.mxu1 %v2144_v11  ;;  %v901_v10 = vshll.u32 %v1901_v5, 16  ;;  %v2219_v11 = vld [vmem:[%s2856_s1 + $0xc0] ss:$8 sps:$4 sm:$0xff]  }
  0x3d   : > { %1057 = vmatprep.subr.bf16.mxu0 %v2150_v12  ;;  %v2222_v12 = vld [vmem:[%s2856_s1 + $0x360] ss:$8 sps:$4 sm:$0xff]  }
  0x3e   : > { %432 = vmatmul.mubr.bf16.vlgmr.msra.gmra.mrb[0].mxu1 %v246_v16  ;;  %v903_v16 = vrot.slane %v901_v10, 2 }
  0x3f   : > { %848 = vmatmul.mubr.bf16.vlgmr.msra.gmra.mrb[0].mxu0 %v669_v17  ;;  %592 = vmatpush1.bf16.msra.mxu1 %v2142_v15  ;;  %v900_v15 = vrot.slane %v898_v9, 1  ;;  %v2225_v17 = vld [vmem:[%s2856_s1 + $0xd0] ss:$8 sps:$4 sm:$0xff]  }
  0x40   : > { %1058 = vmatpush1.bf16.msra.mxu0 %v2148_v18  ;;  %593 = vmatprep.subr.bf16.mxu1 %v2155_v19  ;;  %v2228_v18 = vld [vmem:[%s2856_s1 + $0x370] ss:$8 sps:$4 sm:$0xff]   ;;  %v1961_v19 = vcombine.high %v2648_v63, %v2479_v56 }
  0x41   : > { %1059 = vmatprep.subr.bf16.mxu0 %v2158_v20  ;;  %1931 = vmatprep.mubr.msk.bf16.mxu0 %vm395_vm0, %v912_v21  ;;  %v2235_v20 = vld [vmem:[%s2856_s1 + $0x384] ss:$8 sps:$4 sm:$0xff]   ;;  %v1783_v21 = vcombine.low %v2455_v42, %v2588_v40  ;;  %v2236_v42 = vld [vmem:[%s2856_s1 + $0x390] ss:$8 sps:$4 sm:$0xff]   ;;  %v2262_v40 = vld [vmem:[%s2856_s1 + $0x414] ss:$8 sps:$4 sm:$0xff]  }
  0x42   : > { %1813 = vmatprep.mubr.msk.bf16.mxu1 %vm395_vm0, %v1784_v44  ;;  %v2263_v44 = vld [vmem:[%s2856_s1 + $0x420] ss:$8 sps:$4 sm:$0xff]  }
  0x43   : > { %594 = vmatpush1.bf16.msra.mxu1 %v2153_v22  ;;  %v904_v22 = vor.u32 %v903_v16, %v900_v15 }
  0x44   : > { %1060 = vmatpush1.bf16.msra.mxu0 %v2156_v23  ;;  %595 = vmatprep.subr.bf16.mxu1 %v2161_v24  ;;  %v2233_v23 = vld [vmem:[%s2856_s1 + $0x380] ss:$8 sps:$4 sm:$0xff]   ;;  %v1140_v24 = vrot.slane %v1961_v19, 2 }
  0x45   : > { %1061 = vmatprep.subr.bf16.mxu0 %v2164_v25  ;;  %v2238_v25 = vld [vmem:[%s2856_s1 + $0x394] ss:$8 sps:$4 sm:$0xff]  }
  0x47   : > { %596 = vmatpush1.bf16.msra.mxu1 %v2159_v26  ;;  %v2241_v26 = vld [vmem:[%s2856_s1 + $0x3a4] ss:$8 sps:$4 sm:$0xff]  }
  0x48   : > { %1062 = vmatpush1.bf16.msra.mxu0 %v2162_v27  ;;  %597 = vmatprep.subr.bf16.mxu1 %v2167_v28  ;;  %v2239_v27 = vld [vmem:[%s2856_s1 + $0x3a0] ss:$8 sps:$4 sm:$0xff]   ;;  %v2244_v28 = vld [vmem:[%s2856_s1 + $0x3b4] ss:$8 sps:$4 sm:$0xff]  }
  0x49   : > { %1063 = vmatprep.subr.bf16.mxu0 %v2170_v29  ;;  %v2242_v29 = vld [vmem:[%s2856_s1 + $0x3b0] ss:$8 sps:$4 sm:$0xff]  }
  0x4b   : > { %598 = vmatpush1.bf16.msra.mxu1 %v2165_v30  ;;  %v2247_v30 = vld [vmem:[%s2856_s1 + $0x3c4] ss:$8 sps:$4 sm:$0xff]  }
  0x4c   : > { %1064 = vmatpush1.bf16.msra.mxu0 %v2168_v31  ;;  %599 = vmatprep.subr.bf16.mxu1 %v2173_v32  ;;  %v2245_v31 = vld [vmem:[%s2856_s1 + $0x3c0] ss:$8 sps:$4 sm:$0xff]   ;;  %v2250_v32 = vld [vmem:[%s2856_s1 + $0x3d4] ss:$8 sps:$4 sm:$0xff]  }
  0x4d   : > { %1065 = vmatprep.subr.bf16.mxu0 %v2176_v33  ;;  %v2248_v33 = vld [vmem:[%s2856_s1 + $0x3d0] ss:$8 sps:$4 sm:$0xff]  }
  0x4f   : > { %600 = vmatpush1.bf16.msra.mxu1 %v2171_v34  ;;  %v2253_v34 = vld [vmem:[%s2856_s1 + $0x3e4] ss:$8 sps:$4 sm:$0xff]  }
  0x50   : > { %1066 = vmatpush1.bf16.msra.mxu0 %v2174_v35  ;;  %601 = vmatprep.subr.bf16.mxu1 %v2179_v36  ;;  %v2251_v35 = vld [vmem:[%s2856_s1 + $0x3e0] ss:$8 sps:$4 sm:$0xff]   ;;  %v2256_v36 = vld [vmem:[%s2856_s1 + $0x3f4] ss:$8 sps:$4 sm:$0xff]  }
  0x51   : > { %1067 = vmatprep.subr.bf16.mxu0 %v2182_v37  ;;  %v2254_v37 = vld [vmem:[%s2856_s1 + $0x3f0] ss:$8 sps:$4 sm:$0xff]  }
  0x53   : > { %602 = vmatpush1.bf16.msra.mxu1 %v2177_v38  ;;  %v2259_v38 = vld [vmem:[%s2856_s1 + $0x404] ss:$8 sps:$4 sm:$0xff]  }
  0x54   : > { %1068 = vmatpush1.bf16.msra.mxu0 %v2180_v39  ;;  %603 = vmatprep.subr.bf16.mxu1 %v2185_v41  ;;  %v2257_v39 = vld [vmem:[%s2856_s1 + $0x400] ss:$8 sps:$4 sm:$0xff]   ;;  %v2260_v41 = vld [vmem:[%s2856_s1 + $0x410] ss:$8 sps:$4 sm:$0xff]  }
  0x55   : > { %1069 = vmatprep.subr.bf16.mxu0 %v2188_v43  ;;  %v2265_v43 = vld [vmem:[%s2856_s1 + $0x424] ss:$8 sps:$4 sm:$0xff]  }
  0x57   : > { %604 = vmatpush1.bf16.msra.mxu1 %v2183_v45  ;;  %v2268_v45 = vld [vmem:[%s2856_s1 + $0x434] ss:$8 sps:$4 sm:$0xff]  }
  0x58   : > { %1070 = vmatpush1.bf16.msra.mxu0 %v2186_v46  ;;  %605 = vmatprep.subr.bf16.mxu1 %v2191_v48  ;;  %v2266_v46 = vld [vmem:[%s2856_s1 + $0x430] ss:$8 sps:$4 sm:$0xff]   ;;  %v2271_v48 = vld [vmem:[%s2856_s1 + $0x444] ss:$8 sps:$4 sm:$0xff]  }
  0x59   : > { %1071 = vmatprep.subr.bf16.mxu0 %v2194_v49  ;;  %v2269_v49 = vld [vmem:[%s2856_s1 + $0x440] ss:$8 sps:$4 sm:$0xff]  }
  0x5b   : > { %606 = vmatpush1.bf16.msra.mxu1 %v2189_v50  ;;  %v2274_v50 = vld [vmem:[%s2856_s1 + $0x454] ss:$8 sps:$4 sm:$0xff]  }
  0x5c   : > { %1072 = vmatpush1.bf16.msra.mxu0 %v2192_v51  ;;  %607 = vmatprep.subr.bf16.mxu1 %v2197_v52  ;;  %v2272_v51 = vld [vmem:[%s2856_s1 + $0x450] ss:$8 sps:$4 sm:$0xff]   ;;  %v1139_v52 = vrot.slane %v1960_v2, 2 }
  0x5d   : > { %1073 = vmatprep.subr.bf16.mxu0 %v2200_v53 }
  0x5f   : > { %608 = vmatpush1.bf16.msra.mxu1 %v2195_v54 }
  0x60   : > { %1074 = vmatpush1.bf16.msra.mxu0 %v2198_v55  ;;  %609 = vmatprep.subr.bf16.mxu1 %v2203_v57 }
  0x61   : > { %1075 = vmatprep.subr.bf16.mxu0 %v2206_v58  ;;  %v1334_v58 = vlaneseq }
  0x63   : > { %610 = vmatpush1.bf16.msra.mxu1 %v2201_v59  ;;  %v1335_v59 = vshrl.u32 %v1334_v58, 7 }
  0x64   : > { %1076 = vmatpush1.bf16.msra.mxu0 %v2204_v60  ;;  %611 = vmatprep.subr.bf16.mxu1 %v2209_v61  ;;  %v1332_v61 = vld [vmem:[%s2857_s2] sm:$0x3] }
  0x65   : > { %1077 = vmatprep.subr.bf16.mxu0 %v2212_v62  ;;  %v1336_v60 = vsub.s32 0, %v1335_v59  ;;  %v1340_v62 = vsub.s32 1, %v1335_v59 }
  0x67   : > { %612 = vmatpush1.bf16.msra.mxu1 %v2207_v0  ;;  %v2285_v0 = vmov 1983009808   ;;  %v1341_v56 = vrot.slane %v1332_v61, %v1340_v62 }
  0x68   : > { %1078 = vmatpush1.bf16.msra.mxu0 %v2210_v1  ;;  %613 = vmatprep.subr.bf16.mxu1 %v2215_v3  ;;  %v1359_v1 = vunpack.c.l.s4 %v2285_v0  ;;  %v1337_v3 = vrot.slane %v1332_v61, %v1336_v60 }
  0x69   : > { %1079 = vmatprep.subr.bf16.mxu0 %v2218_v4 }
  0x6a   : > { %v1360_v5 = vunpack.c.0.s8 %v1359_v1 }
  0x6b   : > { %614 = vmatpush1.bf16.msra.mxu1 %v2213_v6 }
  0x6c   : > { %1080 = vmatpush1.bf16.msra.mxu0 %v2216_v7  ;;  %615 = vmatprep.subr.bf16.mxu1 %v2221_v8 }
  0x6d   : > { %1081 = vmatprep.subr.bf16.mxu0 %v2224_v47 }
  0x6f   : > { %616 = vmatpush1.bf16.msra.mxu1 %v2219_v11 }
  0x70   : > { %1082 = vmatpush1.bf16.msra.mxu0 %v2222_v12  ;;  %617 = vmatprep.subr.bf16.mxu1 %v2227_v13 }
  0x71   : > { %1083 = vmatprep.subr.bf16.mxu0 %v2230_v14  ;;  %v1363_v14 = vsub.s32 %v1360_v5, %v1335_v59 }
  0x73   : > { %618 = vmatpush1.bf16.msra.mxu1 %v2225_v17 }
  0x74   : > { %1084 = vmatpush1.bf16.msra.mxu0 %v2228_v18 }
  0x75   : > { %1285 = vmatprep.subr.bf16.mxu0 %v2235_v20 }
  0x76   : > { %624 = vmatmul.mubr.bf16.vlgmr.msra.gmra.mrb[0].mxu1 %v1783_v21 }
  0x77   : > { %1090 = vmatmul.mubr.bf16.vlgmr.msra.gmra.mrb[0].mxu0 %v904_v22 }
  0x78   : > { %1286 = vmatpush1.bf16.msra.mxu0 %v2233_v23  ;;  %1990 = vmatprep.mubr.msk.bf16.mxu0 %vm395_vm0, %v1140_v24 }
  0x79   : > { %1287 = vmatprep.subr.bf16.mxu0 %v2238_v25 }
  0x7c   : > { %1288 = vmatpush1.bf16.msra.mxu0 %v2236_v42 }
  0x7d   : > { %1289 = vmatprep.subr.bf16.mxu0 %v2241_v26 }
  0x80   : > { %1290 = vmatpush1.bf16.msra.mxu0 %v2239_v27 }
  0x81   : > { %1291 = vmatprep.subr.bf16.mxu0 %v2244_v28 }
  0x84   : > { %1292 = vmatpush1.bf16.msra.mxu0 %v2242_v29 }
  0x85   : > { %1293 = vmatprep.subr.bf16.mxu0 %v2247_v30 }
  0x88   : > { %1294 = vmatpush1.bf16.msra.mxu0 %v2245_v31 }
  0x89   : > { %1295 = vmatprep.subr.bf16.mxu0 %v2250_v32 }
  0x8c   : > { %1296 = vmatpush1.bf16.msra.mxu0 %v2248_v33 }
  0x8d   : > { %1297 = vmatprep.subr.bf16.mxu0 %v2253_v34 }
  0x90   : > { %1298 = vmatpush1.bf16.msra.mxu0 %v2251_v35 }
  0x91   : > { %1299 = vmatprep.subr.bf16.mxu0 %v2256_v36 }
  0x94   : > { %1300 = vmatpush1.bf16.msra.mxu0 %v2254_v37 }
  0x95   : > { %1301 = vmatprep.subr.bf16.mxu0 %v2259_v38 }
  0x98   : > { %1302 = vmatpush1.bf16.msra.mxu0 %v2257_v39 }
  0x99   : > { %1303 = vmatprep.subr.bf16.mxu0 %v2262_v40 }
  0x9c   : > { %1304 = vmatpush1.bf16.msra.mxu0 %v2260_v41 }
  0x9d   : > { %1305 = vmatprep.subr.bf16.mxu0 %v2265_v43 }
  0xa0   : > { %1306 = vmatpush1.bf16.msra.mxu0 %v2263_v44 }
  0xa1   : > { %1307 = vmatprep.subr.bf16.mxu0 %v2268_v45 }
  0xa4   : > { %1308 = vmatpush1.bf16.msra.mxu0 %v2266_v46 }
  0xa5   : > { %1309 = vmatprep.subr.bf16.mxu0 %v2271_v48 }
  0xa8   : > { %1310 = vmatpush1.bf16.msra.mxu0 %v2269_v49 }
  0xa9   : > { %1311 = vmatprep.subr.bf16.mxu0 %v2274_v50 }
  0xac   : > { %1312 = vmatpush1.bf16.msra.mxu0 %v2272_v51 }
  0xaf   : > { %1318 = vmatmul.mubr.bf16.vlgmr.msra.gmra.mrb[0].mxu0 %v1139_v52 }
 0x149   : > { %v625_v53 = vpop.f32.mrb[0].mxu1 }
 0x14a   : > { %v627_v54 = vpop.f32.mrb[1].mxu1 }
 0x14b   : > { %v629_v55 = vpop.f32.mrb[2].mxu1 }
 0x14c   : > { %v631_v57 = vpop.f32.mrb[3].mxu1 }
 0x182   : > { %v1319_v4 = vpop.f32.mrb[0].mxu0 }
 0x183   : > { %v2005_v63 = vadd.f32 %v1319_v4, %v625_v53  ;;  %v1321_v2 = vpop.f32.mrb[1].mxu0 }
 0x184   : > { %v2006_v6 = vadd.f32 %v1321_v2, %v627_v54  ;;  %v1323_v7 = vpop.f32.mrb[2].mxu0 }
 0x185   : > { %v1344_v8 = vadd.f32 %v2005_v63, %v1337_v3  ;;  %v2007_v47 = vadd.f32 %v1323_v7, %v629_v55  ;;  %v1325_v9 = vpop.f32.mrb[3].mxu0 }
 0x186   : > { %v1345_v10 = vadd.f32 %v2006_v6, %v1341_v56  ;;  %v2008_v11 = vadd.f32 %v1325_v9, %v631_v57 }
 0x187   : > { %v1348_v12 = vmax.f32 %v1344_v8, 0.0  ;;  %v1346_v13 = vadd.f32 %v2007_v47, %v1337_v3 }
 0x188   : > { %v1349_v15 = vmax.f32 %v1345_v10, 0.0  ;;  %v1347_v16 = vadd.f32 %v2008_v11, %v1341_v56 }
 0x189   : > { %v1350_v17 = vmax.f32 %v1346_v13, 0.0 }
 0x18a   : > { %v1356_v18 = vcombine.low %v1348_v12, %v1349_v15  ;;  %v1357_v19 = vcombine.high %v1348_v12, %v1349_v15  ;;  %v1351_v20 = vmax.f32 %v1347_v16, 0.0 }
 0x18c   : > { %v1364_v21 = vrot.slane %v1356_v18, %v1363_v14  ;;  %v1371_v22 = vrot.slane %v1357_v19, %v1363_v14  ;;  %v1374_v23 = vcombine.low %v1350_v17, %v1351_v20 }
 0x18e   : > { %v1372_v24 = vcombine.high %v1364_v21, %v1364_v21  ;;  %v1373_v25 = vcombine.high %v1371_v22, %v1371_v22  ;;  %v1388_v42 = vrot.slane %v1364_v21, %v1363_v14  ;;  %v1404_v26 = vrot.slane %v1371_v22, %v1363_v14 }
 0x18f   : > { %v1381_v34 = vrot.slane %v1374_v23, %v1363_v14 }
 0x190   : > { %v1396_v27 = vrot.slane %v1372_v24, %v1363_v14  ;;  %v1412_v28 = vrot.slane %v1373_v25, %v1363_v14  ;;  %v1433_v29 = vsel %vm1432_vm1, %v1388_v42, -inf  ;;  %v1462_v30 = vsel %vm1432_vm1, %v1404_v26, -inf }
 0x191   : > { %v1434_v31 = vrot.slane %v1433_v29, 4  ;;  %v1463_v33 = vrot.slane %v1462_v30, 4  ;;  %v1420_v44 = vrot.slane %v1381_v34, %v1363_v14  ;;  %v1389_v47 = vcombine.high %v1388_v42, %v1388_v42 }
 0x192   : > { %v1448_v32 = vsel %vm1432_vm1, %v1396_v27, -inf  ;;  %v1476_v38 = vsel %vm1432_vm1, %v1412_v28, -inf  ;;  %v1397_v8 = vcombine.high %v1396_v27, %v1396_v27  ;;  %v1405_v10 = vcombine.high %v1404_v26, %v1404_v26 }
 0x193   : > { %v1435_v35 = vmax.f32 %v1433_v29, %v1434_v31  ;;  %v1449_v36 = vrot.slane %v1448_v32, 4  ;;  %v1464_v37 = vmax.f32 %v1462_v30, %v1463_v33  ;;  %v1477_v41 = vrot.slane %v1476_v38, 4 }
 0x194   : > { %v1490_v53 = vsel %vm1432_vm1, %v1420_v44, -inf  ;;  %v1455_v9 = vsel %vm1440_vm6, %v1397_v8, -inf  ;;  %v1441_v11 = vsel %vm1440_vm6, %v1389_v47, -inf  ;;  %v1413_v13 = vcombine.high %v1412_v28, %v1412_v28 }
 0x195   : > { %v1436_v39 = vrot.slane %v1435_v35, 2  ;;  %v1450_v40 = vmax.f32 %v1448_v32, %v1449_v36  ;;  %v1465_v43 = vrot.slane %v1464_v37, 2  ;;  %v1478_v48 = vmax.f32 %v1476_v38, %v1477_v41 }
 0x196   : > { %v1491_v58 = vrot.slane %v1490_v53, 4  ;;  %v1456_v12 = vrot.slane %v1455_v9, 4  ;;  %v1442_v14 = vrot.slane %v1441_v11, 4  ;;  %v1469_v15 = vsel %vm1440_vm6, %v1405_v10, -inf }
 0x197   : > { %v1437_v45 = vmax.f32 %v1435_v35, %v1436_v39  ;;  %v1451_v46 = vrot.slane %v1450_v40, 2  ;;  %v1466_v49 = vmax.f32 %v1464_v37, %v1465_v43  ;;  %v1479_v52 = vrot.slane %v1478_v48, 2 }
 0x198   : > { %v1492_v61 = vmax.f32 %v1490_v53, %v1491_v58  ;;  %v1457_v16 = vmax.f32 %v1455_v9, %v1456_v12  ;;  %v1421_v17 = vcombine.high %v1420_v44, %v1420_v44  ;;  %v1470_v18 = vrot.slane %v1469_v15, 4 }
 0x199   : > { %v1438_v50 = vrot.slane %v1437_v45, 1  ;;  %v1452_v51 = vmax.f32 %v1450_v40, %v1451_v46  ;;  %v1467_v55 = vrot.slane %v1466_v49, 1  ;;  %v1480_v57 = vmax.f32 %v1478_v48, %v1479_v52 }
 0x19a   : > { %v1493_v1 = vrot.slane %v1492_v61, 2  ;;  %v1483_v19 = vsel %vm1440_vm6, %v1413_v13, -inf  ;;  %v1443_v20 = vmax.f32 %v1441_v11, %v1442_v14  ;;  %v1458_v21 = vrot.slane %v1457_v16, 2 }
 0x19b   : > { %v1453_v54 = vrot.slane %v1452_v51, 1  ;;  %v2796_v59 = vmax.f32 %v1437_v45, %v1438_v50  ;;  %v1481_v62 = vrot.slane %v1480_v57, 1  ;;  %v2800_v0 = vmax.f32 %v1466_v49, %v1467_v55 }
 0x19c   : > { %v1494_v4 = vmax.f32 %v1492_v61, %v1493_v1  ;;  %v1484_v22 = vrot.slane %v1483_v19, 4  ;;  %v1497_v23 = vsel %vm1440_vm6, %v1421_v17, -inf  ;;  %v1471_v24 = vmax.f32 %v1469_v15, %v1470_v18 }
 0x19d   : > { %v2798_v60 = vmax.f32 %v1452_v51, %v1453_v54  ;;  %v2807_v63 = vmax.f32 %v1480_v57, %v1481_v62  ;;  %v1444_v25 = vrot.slane %v1443_v20, 2  ;;  %v1498_v27 = vrot.slane %v1497_v23, 4 }
 0x19e   : > { %v1495_v2 = vrot.slane %v1494_v4, 1  ;;  %v1459_v42 = vmax.f32 %v1457_v16, %v1458_v21  ;;  %v1485_v29 = vmax.f32 %v1483_v19, %v1484_v22  ;;  %v1472_v30 = vrot.slane %v1471_v24, 2 }
 0x19f   : > { %v1515_v3 = vsel %vm1514_vm2, %v2798_v60, %v2796_v59  ;;  %v1445_v26 = vmax.f32 %v1443_v20, %v1444_v25  ;;  %v1499_v31 = vmax.f32 %v1497_v23, %v1498_v27 }
 0x1a0   : > { %v1517_v56 = vsel %vm1516_vm3, %v2800_v0, %v1515_v3  ;;  %v2811_v6 = vmax.f32 %v1494_v4, %v1495_v2  ;;  %v1460_v32 = vrot.slane %v1459_v42, 1  ;;  %v1486_v28 = vrot.slane %v1485_v29, 2 }
 0x1a1   : > { %v1519_v5 = vsel %vm1518_vm4, %v2807_v63, %v1517_v56  ;;  %v1473_v33 = vmax.f32 %v1471_v24, %v1472_v30  ;;  %v1446_v34 = vrot.slane %v1445_v26, 1  ;;  %v1500_v35 = vrot.slane %v1499_v31, 2 }
 0x1a2   : > { %v2815_v7 = vsel %vm1520_vm5, %v2811_v6, %v1519_v5  ;;  %v1461_v36 = vmax.f32 %v1459_v42, %v1460_v32  ;;  %v1487_v37 = vmax.f32 %v1485_v29, %v1486_v28 }
 0x1a3   : > { %1529 = vrot.lane.b32.xlu0 %v2815_v7, %s2286_s29  ;;  %v1474_v38 = vrot.slane %v1473_v33, 1  ;;  %v1447_v39 = vmax.f32 %v1445_v26, %v1446_v34  ;;  %v1501_v40 = vmax.f32 %v1499_v31, %v1500_v35  ;;  %v1533_v55 = vrot.slane %v2815_v7, 1 }
 0x1a4   : > { %v1488_v41 = vrot.slane %v1487_v37, 1  ;;  %v1535_v62 = vrot.slane %v2815_v7, 2  ;;  %v1537_v4 = vrot.slane %v2815_v7, 3  ;;  %v1539_v5 = vrot.slane %v2815_v7, 4 }
 0x1a5   : > { %v1522_v43 = vsel %vm1514_vm2, %v1461_v36, %v1447_v39  ;;  %v1475_v44 = vmax.f32 %v1473_v33, %v1474_v38  ;;  %v1502_v46 = vrot.slane %v1501_v40, 1 }
 0x1a6   : > { %v1489_v48 = vmax.f32 %v1487_v37, %v1488_v41 }
 0x1a7   : > { %v1523_v45 = vsel %vm1516_vm3, %v1475_v44, %v1522_v43  ;;  %v1503_v50 = vmax.f32 %v1501_v40, %v1502_v46 }
 0x1a8   : > { %v1524_v49 = vsel %vm1518_vm4, %v1489_v48, %v1523_v45 }
 0x1a9   : > { %v1525_v52 = vsel %vm1520_vm5, %v1503_v50, %v1524_v49 }
 0x215   : > { %v1530_v51 = vpop.permute.xlu0 %1529 }
 0x216   : > { %v1531_v53 = vsel %vm1528_vm7, %v1530_v51, %v1525_v52 }
 0x217   : > { %v2032_v54 = vpack.i.bf16 %v1531_v53, %v2815_v7  ;;  %v1534_v57 = vrot.slane %v1531_v53, 1  ;;  %v1536_v58 = vrot.slane %v1531_v53, 2  ;;  %v1538_v1 = vrot.slane %v1531_v53, 3 }
 0x218   : > { %v1540_v56 = vrot.slane %v1531_v53, 4 }
 0x219   : > { %2033 = vrot.lane.b32.xlu1 %v2032_v54, %s2287_s30  ;;  %v2037_v61 = vpack.i.bf16 %v1534_v57, %v1533_v55  ;;  %v2042_v3 = vpack.i.bf16 %v1536_v58, %v1535_v62  ;;  %v2047_v2 = vpack.i.bf16 %v1538_v1, %v1537_v4  ;;  %v1657_v4 = vld [vmem:[%s170_s7] sm:$0x77] }
 0x21a   : > { %v2052_v8 = vpack.i.bf16 %v1540_v56, %v1539_v5 }
 0x21b   : > { %2038 = vrot.lane.b32.xlu0 %v2037_v61, %s2287_s30 }
 0x21d   : > { %2043 = vrot.lane.b32.xlu1 %v2042_v3, %s2287_s30 }
 0x21f   : > { %2048 = vrot.lane.b32.xlu0 %v2047_v2, %s2287_s30 }
 0x221   : > { %2053 = vrot.lane.b32.xlu1 %v2052_v8, %s2287_s30 }
 0x28b   : > { %v2034_v47 = vpop.permute.xlu1 %2033 }
 0x28c   : > { %v2036_v9 = vunpack.i.h.bf16 %v2034_v47  ;;  %v2035_v10 = vunpack.i.l.bf16 %v2034_v47 }
 0x28d   : > { %v2039_v11 = vpop.permute.xlu0 %2038 }
 0x28e   : > { %v1578_v12 = vmax.f32 %v1447_v39, %v2036_v9  ;;  %v1562_v13 = vsel %vm1561_vm8, %v2035_v10, %v2036_v9  ;;  %v2041_v14 = vunpack.i.h.bf16 %v2039_v11  ;;  %v2040_v15 = vunpack.i.l.bf16 %v2039_v11 }
 0x28f   : > { %v1577_v16 = vmax.f32 %v2796_v59, %v1562_v13  ;;  %v2044_v17 = vpop.permute.xlu1 %2043 }
 0x290   : > { %v1580_v18 = vmax.f32 %v1461_v36, %v2041_v14  ;;  %v1563_v19 = vsel %vm1561_vm8, %v2040_v15, %v2041_v14  ;;  %v2046_v7 = vunpack.i.h.bf16 %v2044_v17  ;;  %v2045_v20 = vunpack.i.l.bf16 %v2044_v17 }
 0x291   : > { %v2000_v21 = vpack.c.bf16 %v1578_v12, %v1577_v16  ;;  %v1579_v22 = vmax.f32 %v2798_v60, %v1563_v19  ;;  %v2049_v23 = vpop.permute.xlu0 %2048 }
 0x292   : > { %v1582_v24 = vmax.f32 %v1475_v44, %v2046_v7  ;;  %v1564_v25 = vsel %vm1561_vm8, %v2045_v20, %v2046_v7  ;;  %v2051_v27 = vunpack.i.h.bf16 %v2049_v23  ;;  %v2050_v42 = vunpack.i.l.bf16 %v2049_v23 }
 0x293   : > { %v2001_v29 = vpack.c.bf16 %v1580_v18, %v1579_v22  ;;  %v1581_v30 = vmax.f32 %v2800_v0, %v1564_v25  ;;  %v2054_v59 = vpop.permute.xlu1 %2053  ;;  %v1622_v36 = vunpack.c.l.b16 %v2000_v21  ;;  %v1623_v37 = vunpack.c.h.b16 %v2000_v21 }
 0x294   : > { %v1584_v26 = vmax.f32 %v1489_v48, %v2051_v27  ;;  %v1565_v31 = vsel %vm1561_vm8, %v2050_v42, %v2051_v27  ;;  %v2056_v32 = vunpack.i.h.bf16 %v2054_v59  ;;  %v2055_v28 = vunpack.i.l.bf16 %v2054_v59 }
 0x295   : > { %v1624_v33 = vunpack.c.l.b16 %v2001_v29  ;;  %v1625_v34 = vunpack.c.h.b16 %v2001_v29  ;;  %v2002_v35 = vpack.c.bf16 %v1582_v24, %v1581_v30  ;;  %v1583_v60 = vmax.f32 %v2807_v63, %v1565_v31 }
 0x296   : > { %v1586_v38 = vmax.f32 %v1503_v50, %v2056_v32  ;;  %v1566_v39 = vsel %vm1561_vm8, %v2055_v28, %v2056_v32 }
 0x297   : > { %v1632_v40 = vrot.slane %v1624_v33, 7  ;;  %v1640_v0 = vrot.slane %v1625_v34, 7  ;;  %v1626_v41 = vunpack.c.l.b16 %v2002_v35  ;;  %v1627_v43 = vunpack.c.h.b16 %v2002_v35 }
 0x298   : > { %v2003_v44 = vpack.c.bf16 %v1584_v26, %v1583_v60  ;;  %v1585_v45 = vmax.f32 %v2811_v6, %v1566_v39 }
 0x299   : > { %v1633_v46 = vsel %vm1514_vm2, %v1632_v40, %v1622_v36  ;;  %v1641_v48 = vsel %vm1514_vm2, %v1640_v0, %v1623_v37  ;;  %v1634_v63 = vrot.slane %v1626_v41, 6  ;;  %v1642_v49 = vrot.slane %v1627_v43, 6 }
 0x29a   : > { %v1628_v51 = vunpack.c.l.b16 %v2003_v44  ;;  %v1629_v50 = vunpack.c.h.b16 %v2003_v44  ;;  %v2004_v52 = vpack.c.bf16 %v1586_v38, %v1585_v45 }
 0x29b   : > { %v1635_v53 = vsel %vm1516_vm3, %v1634_v63, %v1633_v46  ;;  %v1643_v54 = vsel %vm1516_vm3, %v1642_v49, %v1641_v48 }
 0x29c   : > { %v1636_v55 = vrot.slane %v1628_v51, 5  ;;  %v1644_v57 = vrot.slane %v1629_v50, 5  ;;  %v1630_v6 = vunpack.c.l.b16 %v2004_v52  ;;  %v1631_v58 = vunpack.c.h.b16 %v2004_v52 }
 0x29e   : > { %v1637_v61 = vsel %vm1518_vm4, %v1636_v55, %v1635_v53  ;;  %v1645_v62 = vsel %vm1518_vm4, %v1644_v57, %v1643_v54  ;;  %v1638_v1 = vrot.slane %v1630_v6, 4  ;;  %v1646_v3 = vrot.slane %v1631_v58, 4 }
 0x2a0   : > { %v1639_v56 = vsel %vm1520_vm5, %v1638_v1, %v1637_v61  ;;  %v1647_v2 = vsel %vm1520_vm5, %v1646_v3, %v1645_v62 }
 0x2a1   : > { %v1648_v5 = vpack.c.b16 %v1647_v2, %v1639_v56 }
 0x2a3   : > { %v1658_v8 = vsel %vm1656_vm15, %v1648_v5, %v1657_v4 }
 0x2a4   : > { %1659 = vst [vmem:[%s170_s7] sm:$0x77] %v1658_v8 }
 0x2a5 PF: > { %s13_s12 = sadd.s32 1, %s2283_s12  }
 0x2a6   : > { %p10_p4 = scmp.ge.s32.totalorder %s13_s12, 4  }
 0x2a8   :  { %12 = sbr.rel (!%p10_p4) target bundleno = 1 (0x1), region = 66 }

// kernel: cnn_forward.3
= control target key start
LH: loop header
LB: loop body
LE: loop exit
PB: predicated region body
PF: predicated region fallthrough
CT: control target
= control target key end

     0   :  { %s3238_s12 = smov 0   ;;  %s4184_s0 = inlined_call_operand.vmem [shape: bf16[2,32,256], index: 0, kind: input, shape index: {}]   ;;  %s4185_s1 = inlined_call_operand.vmem [shape: bf16[5,256,224], index: 1, kind: input, shape index: {}]   ;;  %s4186_s2 = inlined_call_operand.vmem [shape: f32[1,224], index: 2, kind: input, shape index: {}]   ;;  %s4187_s3 = inlined_call_operand.vmem [shape: bf16[2,14,224], index: 3, kind: output, shape index: {}]  }
   0x1 LB: > { %s2469_s13 = sadd.s32 4294967295, %s3213_s12   ;;  %p2473_p0 = scmp.ge.s32.totalorder %s3213_s12, 1  ;;  %s3213_s12 = sphi %s3238_s12, %s13_s12  }
   0x2   : > { %p137_p1 = scmp.lt.s32.totalorder %s3213_s12, 3 }
   0x4   : > { %p138_p2 = pnand %p2473_p0, %p137_p1 }
   0x5   : > { %v2955_v0 = vld [vmem:[%s4185_s1 + $0x104] ss:$8 sps:$4 sm:$0xff] (!%p138_p2)   ;;  %v2959_v2 = vld [vmem:[%s4185_s1 + $0x100] ss:$8 sps:$4 sm:$0xff] (!%p138_p2)   ;;  %v2961_v4 = vld [vmem:[%s4185_s1 + $0x114] ss:$8 sps:$4 sm:$0xff] (!%p138_p2)  }
   0x6   : > { %141 = sbr.rel (%p138_p2) target bundleno = 741 (0x2e5), region = 32  ;;  %v2957_v1 = vld [vmem:[%s4185_s1 + $0x204] ss:$8 sps:$4 sm:$0xff] (!%p138_p2)   ;;  %452 = vmatprep.subr.bf16.mxu1 (!%p138_p2), %v2955_v0  ;;  %v2960_v3 = vld [vmem:[%s4185_s1 + $0x200] ss:$8 sps:$4 sm:$0xff] (!%p138_p2)   ;;  %p161_p3 = scmp.lt.s32.totalorder (!%p138_p2), %s2469_s13, 1 }
   0x7   : > { %937 = vmatprep.subr.bf16.mxu0 (!%p138_p2), %v2957_v1  ;;  %453 = vmatpush1.bf16.msra.mxu1 (!%p138_p2), %v2959_v2  ;;  %v2963_v5 = vld [vmem:[%s4185_s1 + $0x214] ss:$8 sps:$4 sm:$0xff] (!%p138_p2)   ;;  %v2965_v6 = vld [vmem:[%s4185_s1 + $0x110] ss:$8 sps:$4 sm:$0xff] (!%p138_p2)   ;;  %v2967_v8 = vld [vmem:[%s4185_s1 + $0x124] ss:$8 sps:$4 sm:$0xff] (!%p138_p2)  }
   0x8   : > { %938 = vmatpush1.bf16.msra.mxu0 (!%p138_p2), %v2960_v3  ;;  %454 = vmatprep.subr.bf16.mxu1 (!%p138_p2), %v2961_v4  ;;  %v2966_v7 = vld [vmem:[%s4185_s1 + $0x210] ss:$8 sps:$4 sm:$0xff] (!%p138_p2)   ;;  %v2969_v9 = vld [vmem:[%s4185_s1 + $0x224] ss:$8 sps:$4 sm:$0xff] (!%p138_p2)   ;;  %v2971_v10 = vld [vmem:[%s4185_s1 + $0x120] ss:$8 sps:$4 sm:$0xff] (!%p138_p2)  }
   0x9   : > { %939 = vmatprep.subr.bf16.mxu0 (!%p138_p2), %v2963_v5  ;;  %v2972_v11 = vld [vmem:[%s4185_s1 + $0x220] ss:$8 sps:$4 sm:$0xff] (!%p138_p2)   ;;  %v2973_v12 = vld [vmem:[%s4185_s1 + $0x134] ss:$8 sps:$4 sm:$0xff] (!%p138_p2)   ;;  %v2977_v14 = vld [vmem:[%s4185_s1 + $0x130] ss:$8 sps:$4 sm:$0xff] (!%p138_p2)  }
   0xa   : > { %v2975_v13 = vld [vmem:[%s4185_s1 + $0x234] ss:$8 sps:$4 sm:$0xff] (!%p138_p2)   ;;  %v2978_v15 = vld [vmem:[%s4185_s1 + $0x230] ss:$8 sps:$4 sm:$0xff] (!%p138_p2)   ;;  %v2979_v16 = vld [vmem:[%s4185_s1 + $0x144] ss:$8 sps:$4 sm:$0xff] (!%p138_p2)  }
   0xb   : > { %455 = vmatpush1.bf16.msra.mxu1 (!%p138_p2), %v2965_v6  ;;  %v2981_v17 = vld [vmem:[%s4185_s1 + $0x244] ss:$8 sps:$4 sm:$0xff] (!%p138_p2)   ;;  %v2983_v18 = vld [vmem:[%s4185_s1 + $0x140] ss:$8 sps:$4 sm:$0xff] (!%p138_p2)   ;;  %v2985_v20 = vld [vmem:[%s4185_s1 + $0x154] ss:$8 sps:$4 sm:$0xff] (!%p138_p2)  }
   0xc   : > { %940 = vmatpush1.bf16.msra.mxu0 (!%p138_p2), %v2966_v7  ;;  %456 = vmatprep.subr.bf16.mxu1 (!%p138_p2), %v2967_v8  ;;  %v2984_v19 = vld [vmem:[%s4185_s1 + $0x240] ss:$8 sps:$4 sm:$0xff] (!%p138_p2)   ;;  %v2987_v21 = vld [vmem:[%s4185_s1 + $0x254] ss:$8 sps:$4 sm:$0xff] (!%p138_p2)   ;;  %v2989_v22 = vld [vmem:[%s4185_s1 + $0x150] ss:$8 sps:$4 sm:$0xff] (!%p138_p2)  }
   0xd   : > { %941 = vmatprep.subr.bf16.mxu0 %v2969_v9  ;;  %v2990_v23 = vld [vmem:[%s4185_s1 + $0x250] ss:$8 sps:$4 sm:$0xff]   ;;  %v2991_v24 = vld [vmem:[%s4185_s1 + $0x164] ss:$8 sps:$4 sm:$0xff]   ;;  %v2995_v26 = vld [vmem:[%s4185_s1 + $0x160] ss:$8 sps:$4 sm:$0xff]  }
   0xe   : > { %v2993_v25 = vld [vmem:[%s4185_s1 + $0x264] ss:$8 sps:$4 sm:$0xff]   ;;  %v2996_v27 = vld [vmem:[%s4185_s1 + $0x260] ss:$8 sps:$4 sm:$0xff]   ;;  %v2997_v28 = vld [vmem:[%s4185_s1 + $0x174] ss:$8 sps:$4 sm:$0xff]  }
   0xf   : > { %457 = vmatpush1.bf16.msra.mxu1 %v2971_v10  ;;  %v2999_v29 = vld [vmem:[%s4185_s1 + $0x274] ss:$8 sps:$4 sm:$0xff]   ;;  %v3001_v30 = vld [vmem:[%s4185_s1 + $0x170] ss:$8 sps:$4 sm:$0xff]   ;;  %v3003_v32 = vld [vmem:[%s4185_s1 + $0x184] ss:$8 sps:$4 sm:$0xff]  }
  0x10   : > { %942 = vmatpush1.bf16.msra.mxu0 %v2972_v11  ;;  %458 = vmatprep.subr.bf16.mxu1 %v2973_v12  ;;  %v3002_v31 = vld [vmem:[%s4185_s1 + $0x270] ss:$8 sps:$4 sm:$0xff]   ;;  %v3005_v33 = vld [vmem:[%s4185_s1 + $0x284] ss:$8 sps:$4 sm:$0xff]   ;;  %v3007_v34 = vld [vmem:[%s4185_s1 + $0x180] ss:$8 sps:$4 sm:$0xff]  }
  0x11   : > { %943 = vmatprep.subr.bf16.mxu0 %v2975_v13  ;;  %v3008_v35 = vld [vmem:[%s4185_s1 + $0x280] ss:$8 sps:$4 sm:$0xff]   ;;  %v3009_v36 = vld [vmem:[%s4185_s1 + $0x194] ss:$8 sps:$4 sm:$0xff]   ;;  %s4189_s13 = smov (!%p161_p3, %s2469_s13), 1  ;;  %vm766_vm1 = vcmask 1046528  }
  0x12   : > { %v3011_v37 = vld [vmem:[%s4185_s1 + $0x294] ss:$8 sps:$4 sm:$0xff]   ;;  %v3013_v38 = vld [vmem:[%s4185_s1 + $0x190] ss:$8 sps:$4 sm:$0xff]   ;;  %v3015_v40 = vld [vmem:[%s4185_s1 + $0x1a4] ss:$8 sps:$4 sm:$0xff]  }
  0x13   : > { %459 = vmatpush1.bf16.msra.mxu1 %v2977_v14  ;;  %v3014_v39 = vld [vmem:[%s4185_s1 + $0x290] ss:$8 sps:$4 sm:$0xff]   ;;  %s2794_s21 = sshll.u32 %s4189_s13, 5  ;;  %v3017_v41 = vld [vmem:[%s4185_s1 + $0x2a4] ss:$8 sps:$4 sm:$0xff]   ;;  %vm1336_vm3 = vcmask 1045504  }
  0x14   : > { %944 = vmatpush1.bf16.msra.mxu0 %v2978_v15  ;;  %460 = vmatprep.subr.bf16.mxu1 %v2979_v16  ;;  %v3019_v42 = vld [vmem:[%s4185_s1 + $0x1a0] ss:$8 sps:$4 sm:$0xff]   ;;  %s3388_s30 = scalar_lea.vmem %s4184_s0, %s2794_s21  ;;  %v3021_v44 = vld [vmem:[%s4185_s1 + $0x1b4] ss:$8 sps:$4 sm:$0xff]   ;;  %v3025_v46 = vld [vmem:[%s4185_s1 + $0x1b0] ss:$8 sps:$4 sm:$0xff]  }
  0x15   : > { %945 = vmatprep.subr.bf16.mxu0 %v2981_v17  ;;  %v3020_v43 = vld [vmem:[%s4185_s1 + $0x2a0] ss:$8 sps:$4 sm:$0xff]   ;;  %v3023_v45 = vld [vmem:[%s4185_s1 + $0x2b4] ss:$8 sps:$4 sm:$0xff]   ;;  %v3026_v47 = vld [vmem:[%s4185_s1 + $0x2b0] ss:$8 sps:$4 sm:$0xff]  }
  0x16   : > { %v171_v48 = vld [vmem:[%s3388_s30] sm:$0xff]  ;;  %v3404_v49 = vld [vmem:[%s3388_s30 + $0x8] sm:$0xff]  ;;  %v3407_v50 = vld [vmem:[%s3388_s30 + $0x10] sm:$0xff]  ;;  %vm257_vm0 = vsmask.f32 7424  ;;  %vm1807_vm4 = vcmask 1041408  }
  0x17   : > { %461 = vmatpush1.bf16.msra.mxu1 %v2983_v18  ;;  %v207_v51 = vld [vmem:[%s3388_s30 + $0x18] sm:$0x77]  ;;  %v3027_v52 = vld [vmem:[%s4185_s1 + $0x1c4] ss:$8 sps:$4 sm:$0xff]   ;;  %v3414_v53 = vcombine.high %v171_v48, %v3404_v49  ;;  %v3031_v61 = vld [vmem:[%s4185_s1 + $0x1c0] ss:$8 sps:$4 sm:$0xff]   ;;  %v3438_v3 = vcombine.low %v171_v48, %v3404_v49 }
  0x18   : > { %946 = vmatpush1.bf16.msra.mxu0 %v2984_v19  ;;  %462 = vmatprep.subr.bf16.mxu1 %v2985_v20  ;;  %v3417_v54 = vcombine.high %v3407_v50, %v207_v51  ;;  %v3029_v55 = vld [vmem:[%s4185_s1 + $0x2c4] ss:$8 sps:$4 sm:$0xff]   ;;  %v3032_v62 = vld [vmem:[%s4185_s1 + $0x2c0] ss:$8 sps:$4 sm:$0xff]   ;;  %v3033_v4 = vld [vmem:[%s4185_s1 + $0x1d4] ss:$8 sps:$4 sm:$0xff]   ;;  %v3457_v11 = vcombine.low %v3407_v50, %v207_v51 }
  0x19   : > { %947 = vmatprep.subr.bf16.mxu0 %v2987_v21  ;;  %v727_v56 = vld [vmem:[%s3388_s30] sm:$0xee]  ;;  %v271_v57 = vshrl.u32 %v3414_v53, 16  ;;  %v273_v58 = vshll.u32 %v3414_v53, 16  ;;  %v3035_v5 = vld [vmem:[%s4185_s1 + $0x2d4] ss:$8 sps:$4 sm:$0xff]  }
  0x1a   : > { %v278_v59 = vshll.u32 %v3417_v54, 16  ;;  %v3427_v60 = vcombine.high %v727_v56, %v3404_v49  ;;  %v771_v63 = vrot.slane %v3417_v54, 1  ;;  %v3037_v8 = vld [vmem:[%s4185_s1 + $0x1d0] ss:$8 sps:$4 sm:$0xff]   ;;  %v261_v12 = vshll.u32 %v3438_v3, 16  ;;  %s3216_s21 = smov 96  }
  0x1b   : > { %463 = vmatpush1.bf16.msra.mxu1 %v2989_v22  ;;  %v275_v0 = vrot.slane %v273_v58, 1  ;;  %v3038_v9 = vld [vmem:[%s4185_s1 + $0x2d0] ss:$8 sps:$4 sm:$0xff]   ;;  %v3039_v13 = vld [vmem:[%s4185_s1 + $0x1e4] ss:$8 sps:$4 sm:$0xff]   ;;  %v259_v17 = vshrl.u32 %v3438_v3, 16  ;;  %v3475_v20 = vcombine.low %v727_v56, %v3404_v49 }
  0x1c   : > { %948 = vmatpush1.bf16.msra.mxu0 %v2990_v23  ;;  %464 = vmatprep.subr.bf16.mxu1 %v2991_v24  ;;  %v280_v1 = vrot.slane %v278_v59, 1  ;;  %v770_v2 = vrot.slane %v3427_v60, 1  ;;  %v3041_v14 = vld [vmem:[%s4185_s1 + $0x2e4] ss:$8 sps:$4 sm:$0xff]   ;;  %v3043_v15 = vld [vmem:[%s4185_s1 + $0x1e0] ss:$8 sps:$4 sm:$0xff]  }
  0x1d   : > { %949 = vmatprep.subr.bf16.mxu0 %v2993_v25  ;;  %v276_v6 = vor.u32 %v275_v0, %v271_v57  ;;  %v3044_v16 = vld [vmem:[%s4185_s1 + $0x2e0] ss:$8 sps:$4 sm:$0xff]   ;;  %v263_v18 = vrot.slane %v261_v12, 1  ;;  %v266_v19 = vshll.u32 %v3457_v11, 16  ;;  %v3045_v21 = vld [vmem:[%s4185_s1 + $0x1f4] ss:$8 sps:$4 sm:$0xff]  }
  0x1e   : > { %v772_v7 = vsel %vm766_vm1, %v770_v2, %v771_v63  ;;  %v3047_v22 = vld [vmem:[%s4185_s1 + $0x2f4] ss:$8 sps:$4 sm:$0xff]   ;;  %v3049_v23 = vld [vmem:[%s4185_s1 + $0x1f0] ss:$8 sps:$4 sm:$0xff]   ;;  %v3081_v56 = vld [vmem:[%s4185_s1 + $0x40] ss:$8 sps:$4 sm:$0xff]  }
  0x1f   : > { %465 = vmatpush1.bf16.msra.mxu1 %v2995_v26  ;;  %969 = vmatprep.mubr.bf16.mxu0 %v772_v7  ;;  %v281_v10 = vsel %vm257_vm0, %v276_v6, %v280_v1  ;;  %v3050_v24 = vld [vmem:[%s4185_s1 + $0x2f0] ss:$8 sps:$4 sm:$0xff]   ;;  %v264_v25 = vor.u32 %v263_v18, %v259_v17  ;;  %v268_v26 = vrot.slane %v266_v19, 1  ;;  %v3080_v48 = vld [vmem:[%s4185_s1 + $0x334] ss:$8 sps:$4 sm:$0xff]   ;;  %vm2033_vm5 = vcmask 1041409  }
  0x20   : > { %950 = vmatpush1.bf16.msra.mxu0 %v2996_v27  ;;  %466 = vmatprep.subr.bf16.mxu1 %v2997_v28  ;;  %v767_v27 = vrot.slane %v3475_v20, 1  ;;  %v768_v28 = vrot.slane %v3457_v11, 1  ;;  %v3075_v51 = vld [vmem:[%s4185_s1 + $0x30] ss:$8 sps:$4 sm:$0xff]   ;;  %v3084_v57 = vld [vmem:[%s4185_s1 + $0x340] ss:$8 sps:$4 sm:$0xff]  }
  0x21   : > { %951 = vmatprep.subr.bf16.mxu0 %v2999_v29  ;;  %484 = vmatprep.mubr.bf16.mxu1 %v281_v10  ;;  %v3055_v29 = vld [vmem:[%s4185_s1 + $0x4] ss:$8 sps:$4 sm:$0xff]   ;;  %v3089_v58 = vld [vmem:[%s4185_s1 + $0x54] ss:$8 sps:$4 sm:$0xff]   ;;  %v3087_v59 = vld [vmem:[%s4185_s1 + $0x50] ss:$8 sps:$4 sm:$0xff]  }
  0x22   : > { %v3098_v0 = vld [vmem:[%s4185_s1 + $0x364] ss:$8 sps:$4 sm:$0xff]   ;;  %v3093_v2 = vld [vmem:[%s4185_s1 + $0x60] ss:$8 sps:$4 sm:$0xff]   ;;  %v3101_v7 = vld [vmem:[%s4185_s1 + $0x74] ss:$8 sps:$4 sm:$0xff]  }
  0x23   : > { %467 = vmatpush1.bf16.msra.mxu1 %v3001_v30  ;;  %v3059_v30 = vld [vmem:[%s4185_s1 + $0x304] ss:$8 sps:$4 sm:$0xff]   ;;  %v3099_v10 = vld [vmem:[%s4185_s1 + $0x70] ss:$8 sps:$4 sm:$0xff]   ;;  %vm1037_vm2 = vsmask.f32 6400 }
  0x24   : > { %952 = vmatpush1.bf16.msra.mxu0 %v3002_v31  ;;  %468 = vmatprep.subr.bf16.mxu1 %v3003_v32  ;;  %v285_v31 = vshrl.u32 %v3417_v54, 16  ;;  %v3053_v32 = vld [vmem:[%s4185_s1] ss:$8 sps:$4 sm:$0xff]   ;;  %v3083_v54 = vld [vmem:[%s4185_s1 + $0x44] ss:$8 sps:$4 sm:$0xff]   ;;  %vm2035_vm6 = vcmask 1042434  }
  0x25   : > { %953 = vmatprep.subr.bf16.mxu0 %v3005_v33  ;;  %v3057_v33 = vld [vmem:[%s4185_s1 + $0x300] ss:$8 sps:$4 sm:$0xff]   ;;  %vm2037_vm7 = vcmask 1043459   ;;  %vm2039_vm8 = vcmask 1044484   ;;  %vm2041_vm9 = vcmask 1045509   ;;  %vm2043_vm10 = vcmask 1046534  }
  0x26   : > { %v3105_v19 = vld [vmem:[%s4185_s1 + $0x80] ss:$8 sps:$4 sm:$0xff]   ;;  %vm2045_vm11 = vcmask 1047559   ;;  %vm1815_vm12 = vcmask 779264   ;;  %vm2068_vm13 = vcmask 1048320   ;;  %s3217_s22 = smov 120  }
  0x27   : > { %469 = vmatpush1.bf16.msra.mxu1 %v3007_v34  ;;  %v269_v34 = vsel %vm257_vm0, %v264_v25, %v268_v26  ;;  %vm2157_vm14 = vcmask 982016   ;;  %vm2410_vm15 = vcmask 1042432   ;;  %vm2411_vm0 = vcmask 784388   ;;  %s2795_s23 = sshll.u32 %s4189_s13, 4 }
  0x28   : > { %954 = vmatpush1.bf16.msra.mxu0 %v3008_v35  ;;  %470 = vmatprep.subr.bf16.mxu1 %v3009_v36  ;;  %v769_v35 = vsel %vm766_vm1, %v767_v27, %v768_v28  ;;  %v3065_v36 = vld [vmem:[%s4185_s1 + $0x14] ss:$8 sps:$4 sm:$0xff]   ;;  %v3114_v27 = vld [vmem:[%s4185_s1 + $0x390] ss:$8 sps:$4 sm:$0xff]   ;;  %vm2406_vm1 = vcmask 1043456   ;;  %s170_s25 = scalar_lea.vmem %s4187_s3, %s2795_s23 }
  0x29   : > { %955 = vmatprep.subr.bf16.mxu0 %v3011_v37  ;;  %v3068_v37 = vld [vmem:[%s4185_s1 + $0x314] ss:$8 sps:$4 sm:$0xff]  }
  0x2b   : > { %471 = vmatpush1.bf16.msra.mxu1 %v3013_v38  ;;  %v287_v38 = vor.u32 %v285_v31, %v280_v1  ;;  %v1059_v1 = vshll.u32 %v3427_v60, 16  ;;  %v3120_v31 = vld [vmem:[%s4185_s1 + $0x3a0] ss:$8 sps:$4 sm:$0xff]  }
  0x2c   : > { %956 = vmatpush1.bf16.msra.mxu0 %v3014_v39  ;;  %472 = vmatprep.subr.bf16.mxu1 %v3015_v40  ;;  %v3063_v39 = vld [vmem:[%s4185_s1 + $0x10] ss:$8 sps:$4 sm:$0xff]   ;;  %v282_v40 = vshrl.u32 %v3457_v11, 16 }
  0x2d   : > { %957 = vmatprep.subr.bf16.mxu0 %v3017_v41  ;;  %v3066_v41 = vld [vmem:[%s4185_s1 + $0x310] ss:$8 sps:$4 sm:$0xff]  }
  0x2f   : > { %473 = vmatpush1.bf16.msra.mxu1 %v3019_v42  ;;  %v3071_v42 = vld [vmem:[%s4185_s1 + $0x24] ss:$8 sps:$4 sm:$0xff]  }
  0x30   : > { %958 = vmatpush1.bf16.msra.mxu0 %v3020_v43  ;;  %474 = vmatprep.subr.bf16.mxu1 %v3021_v44  ;;  %v3074_v43 = vld [vmem:[%s4185_s1 + $0x324] ss:$8 sps:$4 sm:$0xff]   ;;  %v3069_v44 = vld [vmem:[%s4185_s1 + $0x20] ss:$8 sps:$4 sm:$0xff]  }
  0x31   : > { %959 = vmatprep.subr.bf16.mxu0 %v3023_v45  ;;  %v284_v45 = vor.u32 %v282_v40, %v268_v26  ;;  %v3111_v26 = vld [vmem:[%s4185_s1 + $0x90] ss:$8 sps:$4 sm:$0xff]  }
  0x33   : > { %475 = vmatpush1.bf16.msra.mxu1 %v3025_v46  ;;  %v3072_v46 = vld [vmem:[%s4185_s1 + $0x320] ss:$8 sps:$4 sm:$0xff]  }
  0x34   : > { %960 = vmatpush1.bf16.msra.mxu0 %v3026_v47  ;;  %476 = vmatprep.subr.bf16.mxu1 %v3027_v52  ;;  %v3077_v47 = vld [vmem:[%s4185_s1 + $0x34] ss:$8 sps:$4 sm:$0xff]   ;;  %v3078_v52 = vld [vmem:[%s4185_s1 + $0x330] ss:$8 sps:$4 sm:$0xff]  }
  0x35   : > { %961 = vmatprep.subr.bf16.mxu0 %v3029_v55  ;;  %v3086_v55 = vld [vmem:[%s4185_s1 + $0x344] ss:$8 sps:$4 sm:$0xff]  }
  0x37   : > { %477 = vmatpush1.bf16.msra.mxu1 %v3031_v61  ;;  %v3090_v61 = vld [vmem:[%s4185_s1 + $0x350] ss:$8 sps:$4 sm:$0xff]  }
  0x38   : > { %962 = vmatpush1.bf16.msra.mxu0 %v3032_v62  ;;  %478 = vmatprep.subr.bf16.mxu1 %v3033_v4  ;;  %v1056_v62 = vshrl.u32 %v3427_v60, 16  ;;  %v3096_v4 = vld [vmem:[%s4185_s1 + $0x360] ss:$8 sps:$4 sm:$0xff]   ;;  %v3104_v60 = vld [vmem:[%s4185_s1 + $0x374] ss:$8 sps:$4 sm:$0xff]  }
  0x39   : > { %963 = vmatprep.subr.bf16.mxu0 %v3035_v5  ;;  %v998_v5 = vld [vmem:[%s3388_s30 + $0x18] sm:$0xff] }
  0x3a   : > { %v1058_v6 = vrot.slane %v1056_v62, 1  ;;  %v3667_v40 = vcombine.low %v3407_v50, %v998_v5  ;;  %v3150_v62 = vld [vmem:[%s4185_s1 + $0x3f0] ss:$8 sps:$4 sm:$0xff]  }
  0x3b   : > { %479 = vmatpush1.bf16.msra.mxu1 %v3037_v8  ;;  %v3592_v8 = vcombine.high %v3407_v50, %v998_v5  ;;  %v3155_v5 = vld [vmem:[%s4185_s1 + $0x400] ss:$8 sps:$4 sm:$0xff]  }
  0x3c   : > { %964 = vmatpush1.bf16.msra.mxu0 %v3038_v9  ;;  %480 = vmatprep.subr.bf16.mxu1 %v3039_v13  ;;  %v1061_v9 = vrot.slane %v1059_v1, 2  ;;  %v3102_v13 = vld [vmem:[%s4185_s1 + $0x370] ss:$8 sps:$4 sm:$0xff]   ;;  %v3157_v1 = vld [vmem:[%s4185_s1 + $0x404] ss:$8 sps:$4 sm:$0xff]  }
  0x3d   : > { %965 = vmatprep.subr.bf16.mxu0 %v3041_v14  ;;  %v1064_v11 = vshrl.u32 %v3592_v8, 16  ;;  %v1067_v12 = vshll.u32 %v3592_v8, 16  ;;  %v3107_v14 = vld [vmem:[%s4185_s1 + $0x84] ss:$8 sps:$4 sm:$0xff]  }
  0x3f   : > { %481 = vmatpush1.bf16.msra.mxu1 %v3043_v15  ;;  %v3110_v15 = vld [vmem:[%s4185_s1 + $0x384] ss:$8 sps:$4 sm:$0xff]   ;;  %v1066_v17 = vrot.slane %v1064_v11, 1  ;;  %v1069_v18 = vrot.slane %v1067_v12, 2 }
  0x40   : > { %966 = vmatpush1.bf16.msra.mxu0 %v3044_v16  ;;  %482 = vmatprep.subr.bf16.mxu1 %v3045_v21  ;;  %v1062_v16 = vor.u32 %v1061_v9, %v1058_v6  ;;  %v3718_v6 = vld [vmem:[%s3388_s30] sm:$0xcc] }
  0x41   : > { %967 = vmatprep.subr.bf16.mxu0 %v3047_v22  ;;  %v3611_v21 = vor.u32 %v1069_v18, %v1066_v17  ;;  %v3108_v22 = vld [vmem:[%s4185_s1 + $0x380] ss:$8 sps:$4 sm:$0xff]   ;;  %v2745_v9 = vcombine.high %v3718_v6, %v3404_v49  ;;  %v3165_v11 = vld [vmem:[%s4185_s1 + $0x424] ss:$8 sps:$4 sm:$0xff]   ;;  %v3174_v18 = vld [vmem:[%s4185_s1 + $0x454] ss:$8 sps:$4 sm:$0xff]  }
  0x42   : > { %v3169_v17 = vld [vmem:[%s4185_s1 + $0x440] ss:$8 sps:$4 sm:$0xff]  }
  0x43   : > { %483 = vmatpush1.bf16.msra.mxu1 %v3049_v23  ;;  %v3113_v23 = vld [vmem:[%s4185_s1 + $0x94] ss:$8 sps:$4 sm:$0xff]   ;;  %v1071_v25 = vsel %vm1037_vm2, %v1062_v16, %v3611_v21  ;;  %v1340_v12 = vrot.slane %v2745_v9, 2  ;;  %v3171_v16 = vld [vmem:[%s4185_s1 + $0x444] ss:$8 sps:$4 sm:$0xff]  }
  0x44   : > { %968 = vmatpush1.bf16.msra.mxu0 %v3050_v24  ;;  %674 = vmatprep.subr.bf16.mxu1 %v3055_v29  ;;  %v3116_v24 = vld [vmem:[%s4185_s1 + $0x394] ss:$8 sps:$4 sm:$0xff]   ;;  %v3122_v29 = vld [vmem:[%s4185_s1 + $0x3a4] ss:$8 sps:$4 sm:$0xff]  }
  0x45   : > { %1236 = vmatprep.subr.bf16.mxu0 %v3059_v30  ;;  %v3117_v30 = vld [vmem:[%s4185_s1 + $0xa0] ss:$8 sps:$4 sm:$0xff]  }
  0x46   : > { %485 = vmatmul.mubr.bf16.vlgmr.msra.gmra.mrb[0].mxu1 %v269_v34  ;;  %v3123_v34 = vld [vmem:[%s4185_s1 + $0xb0] ss:$8 sps:$4 sm:$0xff]  }
  0x47   : > { %970 = vmatmul.mubr.bf16.vlgmr.msra.gmra.mrb[0].mxu0 %v769_v35  ;;  %675 = vmatpush1.bf16.msra.mxu1 %v3053_v32  ;;  %v3125_v32 = vld [vmem:[%s4185_s1 + $0xb4] ss:$8 sps:$4 sm:$0xff]   ;;  %v3126_v35 = vld [vmem:[%s4185_s1 + $0x3b0] ss:$8 sps:$4 sm:$0xff]  }
  0x48   : > { %1237 = vmatpush1.bf16.msra.mxu0 %v3057_v33  ;;  %676 = vmatprep.subr.bf16.mxu1 %v3065_v36  ;;  %v3128_v33 = vld [vmem:[%s4185_s1 + $0x3b4] ss:$8 sps:$4 sm:$0xff]   ;;  %v3131_v36 = vld [vmem:[%s4185_s1 + $0xc4] ss:$8 sps:$4 sm:$0xff]  }
  0x49   : > { %1238 = vmatprep.subr.bf16.mxu0 %v3068_v37  ;;  %494 = vmatprep.mubr.bf16.mxu1 %v287_v38  ;;  %v3134_v37 = vld [vmem:[%s4185_s1 + $0x3c4] ss:$8 sps:$4 sm:$0xff]   ;;  %v3129_v38 = vld [vmem:[%s4185_s1 + $0xc0] ss:$8 sps:$4 sm:$0xff]  }
  0x4a   : > { %979 = vmatprep.mubr.bf16.mxu0 %v771_v63  ;;  %v3095_v63 = vld [vmem:[%s4185_s1 + $0x64] ss:$8 sps:$4 sm:$0xff]  }
  0x4b   : > { %677 = vmatpush1.bf16.msra.mxu1 %v3063_v39  ;;  %v3132_v39 = vld [vmem:[%s4185_s1 + $0x3c0] ss:$8 sps:$4 sm:$0xff]  }
  0x4c   : > { %1239 = vmatpush1.bf16.msra.mxu0 %v3066_v41  ;;  %678 = vmatprep.subr.bf16.mxu1 %v3071_v42  ;;  %v3137_v41 = vld [vmem:[%s4185_s1 + $0xd4] ss:$8 sps:$4 sm:$0xff]  }
  0x4d   : > { %1240 = vmatprep.subr.bf16.mxu0 %v3074_v43  ;;  %v3140_v42 = vld [vmem:[%s4185_s1 + $0x3d4] ss:$8 sps:$4 sm:$0xff]   ;;  %v1039_v43 = vshrl.u32 %v3475_v20, 16 }
  0x4e   : > { %495 = vmatmul.mubr.bf16.gmra.mrb[4].mxu1 %v284_v45  ;;  %v3135_v45 = vld [vmem:[%s4185_s1 + $0xd0] ss:$8 sps:$4 sm:$0xff]  }
  0x4f   : > { %980 = vmatmul.mubr.bf16.gmra.mrb[4].mxu0 %v768_v28  ;;  %679 = vmatpush1.bf16.msra.mxu1 %v3069_v44  ;;  %v3119_v28 = vld [vmem:[%s4185_s1 + $0xa4] ss:$8 sps:$4 sm:$0xff]   ;;  %v1042_v44 = vshll.u32 %v3475_v20, 16 }
  0x50   : > { %1241 = vmatpush1.bf16.msra.mxu0 %v3072_v46  ;;  %680 = vmatprep.subr.bf16.mxu1 %v3077_v47  ;;  %v3138_v46 = vld [vmem:[%s4185_s1 + $0x3d0] ss:$8 sps:$4 sm:$0xff]   ;;  %v1047_v47 = vshrl.u32 %v3667_v40, 16  ;;  %v3143_v20 = vld [vmem:[%s4185_s1 + $0xe4] ss:$8 sps:$4 sm:$0xff]  }
  0x51   : > { %1242 = vmatprep.subr.bf16.mxu0 %v3080_v48  ;;  %706 = vmatprep.mubr.bf16.mxu1 %v3414_v53  ;;  %v3092_v53 = vld [vmem:[%s4185_s1 + $0x354] ss:$8 sps:$4 sm:$0xff]   ;;  %v1050_v48 = vshll.u32 %v3667_v40, 16 }
  0x52   : > { %1268 = vmatprep.mubr.bf16.mxu0 %v1071_v25  ;;  %v3183_v25 = vld [vmem:[%s4185_s1 + $0x484] ss:$8 sps:$4 sm:$0xff]  }
  0x53   : > { %681 = vmatpush1.bf16.msra.mxu1 %v3075_v51  ;;  %v3146_v51 = vld [vmem:[%s4185_s1 + $0x3e4] ss:$8 sps:$4 sm:$0xff]  }
  0x54   : > { %1243 = vmatpush1.bf16.msra.mxu0 %v3078_v52  ;;  %682 = vmatprep.subr.bf16.mxu1 %v3083_v54  ;;  %v1041_v52 = vrot.slane %v1039_v43, 1  ;;  %v1044_v54 = vrot.slane %v1042_v44, 2  ;;  %v1338_v44 = vrot.slane %v3667_v40, 2 }
  0x55   : > { %1244 = vmatprep.subr.bf16.mxu0 %v3086_v55  ;;  %v3141_v55 = vld [vmem:[%s4185_s1 + $0xe0] ss:$8 sps:$4 sm:$0xff]  }
  0x57   : > { %683 = vmatpush1.bf16.msra.mxu1 %v3081_v56  ;;  %v3144_v56 = vld [vmem:[%s4185_s1 + $0x3e0] ss:$8 sps:$4 sm:$0xff]  }
  0x58   : > { %1245 = vmatpush1.bf16.msra.mxu0 %v3084_v57  ;;  %684 = vmatprep.subr.bf16.mxu1 %v3089_v58  ;;  %v1049_v57 = vrot.slane %v1047_v47, 1  ;;  %v1052_v58 = vrot.slane %v1050_v48, 2 }
  0x59   : > { %1246 = vmatprep.subr.bf16.mxu0 %v3092_v53  ;;  %v3149_v53 = vld [vmem:[%s4185_s1 + $0xf4] ss:$8 sps:$4 sm:$0xff]  }
  0x5b   : > { %685 = vmatpush1.bf16.msra.mxu1 %v3087_v59  ;;  %v3152_v59 = vld [vmem:[%s4185_s1 + $0x3f4] ss:$8 sps:$4 sm:$0xff]  }
  0x5c   : > { %1247 = vmatpush1.bf16.msra.mxu0 %v3090_v61  ;;  %686 = vmatprep.subr.bf16.mxu1 %v3095_v63  ;;  %v3147_v61 = vld [vmem:[%s4185_s1 + $0xf0] ss:$8 sps:$4 sm:$0xff]   ;;  %v1045_v63 = vor.u32 %v1044_v54, %v1041_v52 }
  0x5d   : > { %1248 = vmatprep.subr.bf16.mxu0 %v3098_v0  ;;  %v1053_v0 = vor.u32 %v1052_v58, %v1049_v57 }
  0x5f   : > { %687 = vmatpush1.bf16.msra.mxu1 %v3093_v2  ;;  %v174_v2 = vld [vmem:[%s3388_s30 + $0x18] sm:$0x33] }
  0x60   : > { %1249 = vmatpush1.bf16.msra.mxu0 %v3096_v4  ;;  %688 = vmatprep.subr.bf16.mxu1 %v3101_v7  ;;  %v1054_v4 = vsel %vm1037_vm2, %v1045_v63, %v1053_v0  ;;  %v3160_v7 = vld [vmem:[%s4185_s1 + $0x414] ss:$8 sps:$4 sm:$0xff]   ;;  %vm2407_vm2 = vcmask 785412  }
  0x61   : > { %1250 = vmatprep.subr.bf16.mxu0 %v3104_v60  ;;  %v2547_v60 = vcombine.high %v3407_v50, %v174_v2 }
  0x63   : > { %689 = vmatpush1.bf16.msra.mxu1 %v3099_v10  ;;  %v3158_v10 = vld [vmem:[%s4185_s1 + $0x410] ss:$8 sps:$4 sm:$0xff]  }
  0x64   : > { %1251 = vmatpush1.bf16.msra.mxu0 %v3102_v13  ;;  %690 = vmatprep.subr.bf16.mxu1 %v3107_v14  ;;  %v1341_v13 = vrot.slane %v3592_v8, 2  ;;  %v3163_v14 = vld [vmem:[%s4185_s1 + $0x420] ss:$8 sps:$4 sm:$0xff]   ;;  %v3166_v8 = vld [vmem:[%s4185_s1 + $0x430] ss:$8 sps:$4 sm:$0xff]  }
  0x65   : > { %1252 = vmatprep.subr.bf16.mxu0 %v3110_v15  ;;  %v3168_v15 = vld [vmem:[%s4185_s1 + $0x434] ss:$8 sps:$4 sm:$0xff]  }
  0x67   : > { %691 = vmatpush1.bf16.msra.mxu1 %v3105_v19  ;;  %v3172_v19 = vld [vmem:[%s4185_s1 + $0x450] ss:$8 sps:$4 sm:$0xff]  }
  0x68   : > { %1253 = vmatpush1.bf16.msra.mxu0 %v3108_v22  ;;  %692 = vmatprep.subr.bf16.mxu1 %v3113_v23  ;;  %v3175_v22 = vld [vmem:[%s4185_s1 + $0x460] ss:$8 sps:$4 sm:$0xff]   ;;  %v3180_v23 = vld [vmem:[%s4185_s1 + $0x474] ss:$8 sps:$4 sm:$0xff]  }
  0x69   : > { %1254 = vmatprep.subr.bf16.mxu0 %v3116_v24  ;;  %v3178_v24 = vld [vmem:[%s4185_s1 + $0x470] ss:$8 sps:$4 sm:$0xff]  }
  0x6b   : > { %693 = vmatpush1.bf16.msra.mxu1 %v3111_v26  ;;  %v3181_v26 = vld [vmem:[%s4185_s1 + $0x480] ss:$8 sps:$4 sm:$0xff]  }
  0x6c   : > { %1255 = vmatpush1.bf16.msra.mxu0 %v3114_v27  ;;  %694 = vmatprep.subr.bf16.mxu1 %v3119_v28  ;;  %v3186_v27 = vld [vmem:[%s4185_s1 + $0x494] ss:$8 sps:$4 sm:$0xff]   ;;  %v3184_v28 = vld [vmem:[%s4185_s1 + $0x490] ss:$8 sps:$4 sm:$0xff]  }
  0x6d   : > { %1256 = vmatprep.subr.bf16.mxu0 %v3122_v29  ;;  %v3189_v29 = vld [vmem:[%s4185_s1 + $0x4a4] ss:$8 sps:$4 sm:$0xff]  }
  0x6f   : > { %695 = vmatpush1.bf16.msra.mxu1 %v3117_v30  ;;  %v3187_v30 = vld [vmem:[%s4185_s1 + $0x4a0] ss:$8 sps:$4 sm:$0xff]  }
  0x70   : > { %1257 = vmatpush1.bf16.msra.mxu0 %v3120_v31  ;;  %696 = vmatprep.subr.bf16.mxu1 %v3125_v32  ;;  %v3192_v31 = vld [vmem:[%s4185_s1 + $0x4b4] ss:$8 sps:$4 sm:$0xff]   ;;  %v3190_v32 = vld [vmem:[%s4185_s1 + $0x4b0] ss:$8 sps:$4 sm:$0xff]  }
  0x71   : > { %1258 = vmatprep.subr.bf16.mxu0 %v3128_v33  ;;  %v3195_v33 = vld [vmem:[%s4185_s1 + $0x4c4] ss:$8 sps:$4 sm:$0xff]  }
  0x73   : > { %697 = vmatpush1.bf16.msra.mxu1 %v3123_v34  ;;  %v3193_v34 = vld [vmem:[%s4185_s1 + $0x4c0] ss:$8 sps:$4 sm:$0xff]  }
  0x74   : > { %1259 = vmatpush1.bf16.msra.mxu0 %v3126_v35  ;;  %698 = vmatprep.subr.bf16.mxu1 %v3131_v36  ;;  %v3198_v35 = vld [vmem:[%s4185_s1 + $0x4d4] ss:$8 sps:$4 sm:$0xff]   ;;  %v3196_v36 = vld [vmem:[%s4185_s1 + $0x4d0] ss:$8 sps:$4 sm:$0xff]  }
  0x75   : > { %1260 = vmatprep.subr.bf16.mxu0 %v3134_v37  ;;  %v3201_v37 = vld [vmem:[%s4185_s1 + $0x4e4] ss:$8 sps:$4 sm:$0xff]  }
  0x77   : > { %699 = vmatpush1.bf16.msra.mxu1 %v3129_v38  ;;  %v3199_v38 = vld [vmem:[%s4185_s1 + $0x4e0] ss:$8 sps:$4 sm:$0xff]  }
  0x78   : > { %1261 = vmatpush1.bf16.msra.mxu0 %v3132_v39  ;;  %700 = vmatprep.subr.bf16.mxu1 %v3137_v41  ;;  %v2744_v39 = vcombine.low %v3718_v6, %v3404_v49  ;;  %v3204_v41 = vld [vmem:[%s4185_s1 + $0x4f4] ss:$8 sps:$4 sm:$0xff]  }
  0x79   : > { %1262 = vmatprep.subr.bf16.mxu0 %v3140_v42  ;;  %v3202_v42 = vld [vmem:[%s4185_s1 + $0x4f0] ss:$8 sps:$4 sm:$0xff]  }
  0x7a   : > { %v1337_v43 = vrot.slane %v2744_v39, 2 }
  0x7b   : > { %701 = vmatpush1.bf16.msra.mxu1 %v3135_v45 }
  0x7c   : > { %1263 = vmatpush1.bf16.msra.mxu0 %v3138_v46  ;;  %702 = vmatprep.subr.bf16.mxu1 %v3143_v20  ;;  %v1339_v49 = vsel %vm1336_vm3, %v1337_v43, %v1338_v44 }
  0x7d   : > { %1264 = vmatprep.subr.bf16.mxu0 %v3146_v51 }
  0x7f   : > { %703 = vmatpush1.bf16.msra.mxu1 %v3141_v55 }
  0x80   : > { %1265 = vmatpush1.bf16.msra.mxu0 %v3144_v56  ;;  %704 = vmatprep.subr.bf16.mxu1 %v3149_v53 }
  0x81   : > { %1266 = vmatprep.subr.bf16.mxu0 %v3152_v59 }
  0x83   : > { %705 = vmatpush1.bf16.msra.mxu1 %v3147_v61 }
  0x84   : > { %1267 = vmatpush1.bf16.msra.mxu0 %v3150_v62  ;;  %2810 = vmatprep.subr.bf16.mxu1 %v3157_v1  ;;  %v1570_v62 = vlaneseq }
  0x85   : > { %1507 = vmatprep.subr.bf16.mxu0 %v3157_v1 }
  0x86   : > { %707 = vmatmul.mubr.bf16.vlgmr.msra.gmra.mrb[0].mxu1 %v3438_v3  ;;  %v2546_v3 = vcombine.low %v3407_v50, %v174_v2  ;;  %v1342_v50 = vsel %vm1336_vm3, %v1340_v12, %v1341_v13  ;;  %v1571_v63 = vshrl.u32 %v1570_v62, 7  ;;  %vm2412_vm3 = vmor %vm2411_vm0, %vm2410_vm15 }
  0x87   : > { %1269 = vmatmul.mubr.bf16.vlgmr.msra.gmra.mrb[0].mxu0 %v1054_v4  ;;  %2826 = vmatpush1.bf16.msra.mxu1 %v3155_v5  ;;  %v1568_v4 = vld [vmem:[%s4186_s2] sm:$0x3] }
  0x88   : > { %1508 = vmatpush1.bf16.msra.mxu0 %v3155_v5  ;;  %2811 = vmatprep.subr.bf16.mxu1 %v3160_v7  ;;  %v1572_v2 = vsub.s32 0, %v1571_v63  ;;  %v1576_v5 = vsub.s32 1, %v1571_v63 }
  0x89   : > { %1509 = vmatprep.subr.bf16.mxu0 %v3160_v7  ;;  %716 = vmatprep.mubr.bf16.mxu1 %v2547_v60 }
  0x8a   : > { %1278 = vmatprep.mubr.bf16.mxu0 %v3611_v21  ;;  %v3177_v21 = vld [vmem:[%s4185_s1 + $0x464] ss:$8 sps:$4 sm:$0xff]   ;;  %v1573_v7 = vrot.slane %v1568_v4, %v1572_v2 }
  0x8b   : > { %2827 = vmatpush1.bf16.msra.mxu1 %v3158_v10 }
  0x8c   : > { %1510 = vmatpush1.bf16.msra.mxu0 %v3158_v10  ;;  %2812 = vmatprep.subr.bf16.mxu1 %v3165_v11  ;;  %v1577_v10 = vrot.slane %v1568_v4, %v1576_v5 }
  0x8d   : > { %1511 = vmatprep.subr.bf16.mxu0 %v3165_v11 }
  0x8e   : > { %717 = vmatmul.mubr.bf16.gmra.mrb[4].mxu1 %v2546_v3 }
  0x8f   : > { %1279 = vmatmul.mubr.bf16.gmra.mrb[4].mxu0 %v1053_v0  ;;  %2828 = vmatpush1.bf16.msra.mxu1 %v3163_v14  ;;  %v3215_v0 = vmov 1983009808  }
  0x90   : > { %1512 = vmatpush1.bf16.msra.mxu0 %v3163_v14  ;;  %2813 = vmatprep.subr.bf16.mxu1 %v3168_v15  ;;  %v1607_v1 = vunpack.c.l.s4 %v3215_v0 }
  0x91   : > { %1513 = vmatprep.subr.bf16.mxu0 %v3168_v15  ;;  %1539 = vmatprep.mubr.bf16.mxu0 %v1342_v50 }
  0x92   : > { %1549 = vmatprep.mubr.bf16.mxu1 %v1341_v13  ;;  %v1608_v6 = vunpack.c.0.s8 %v1607_v1 }
  0x93   : > { %2829 = vmatpush1.bf16.msra.mxu1 %v3166_v8 }
  0x94   : > { %1514 = vmatpush1.bf16.msra.mxu0 %v3166_v8  ;;  %2814 = vmatprep.subr.bf16.mxu1 %v3171_v16  ;;  %v3825_v14 = vsub.s32 %v1608_v6, %v1571_v63 }
  0x95   : > { %1515 = vmatprep.subr.bf16.mxu0 %v3171_v16 }
  0x97   : > { %2830 = vmatpush1.bf16.msra.mxu1 %v3169_v17 }
  0x98   : > { %1516 = vmatpush1.bf16.msra.mxu0 %v3169_v17  ;;  %2815 = vmatprep.subr.bf16.mxu1 %v3174_v18 }
  0x99   : > { %1517 = vmatprep.subr.bf16.mxu0 %v3174_v18 }
  0x9b   : > { %2831 = vmatpush1.bf16.msra.mxu1 %v3172_v19 }
  0x9c   : > { %1518 = vmatpush1.bf16.msra.mxu0 %v3172_v19  ;;  %2816 = vmatprep.subr.bf16.mxu1 %v3177_v21 }
  0x9d   : > { %1519 = vmatprep.subr.bf16.mxu0 %v3177_v21 }
  0x9f   : > { %2832 = vmatpush1.bf16.msra.mxu1 %v3175_v22 }
  0xa0   : > { %1520 = vmatpush1.bf16.msra.mxu0 %v3175_v22  ;;  %2817 = vmatprep.subr.bf16.mxu1 %v3180_v23 }
  0xa1   : > { %1521 = vmatprep.subr.bf16.mxu0 %v3180_v23 }
  0xa3   : > { %2833 = vmatpush1.bf16.msra.mxu1 %v3178_v24 }
  0xa4   : > { %1522 = vmatpush1.bf16.msra.mxu0 %v3178_v24  ;;  %2818 = vmatprep.subr.bf16.mxu1 %v3183_v25 }
  0xa5   : > { %1523 = vmatprep.subr.bf16.mxu0 %v3183_v25 }
  0xa7   : > { %2834 = vmatpush1.bf16.msra.mxu1 %v3181_v26 }
  0xa8   : > { %1524 = vmatpush1.bf16.msra.mxu0 %v3181_v26  ;;  %2819 = vmatprep.subr.bf16.mxu1 %v3186_v27 }
  0xa9   : > { %1525 = vmatprep.subr.bf16.mxu0 %v3186_v27 }
  0xab   : > { %2835 = vmatpush1.bf16.msra.mxu1 %v3184_v28 }
  0xac   : > { %1526 = vmatpush1.bf16.msra.mxu0 %v3184_v28  ;;  %2820 = vmatprep.subr.bf16.mxu1 %v3189_v29 }
  0xad   : > { %1527 = vmatprep.subr.bf16.mxu0 %v3189_v29 }
  0xaf   : > { %2836 = vmatpush1.bf16.msra.mxu1 %v3187_v30 }
  0xb0   : > { %1528 = vmatpush1.bf16.msra.mxu0 %v3187_v30  ;;  %2821 = vmatprep.subr.bf16.mxu1 %v3192_v31 }
  0xb1   : > { %1529 = vmatprep.subr.bf16.mxu0 %v3192_v31 }
  0xb3   : > { %2837 = vmatpush1.bf16.msra.mxu1 %v3190_v32 }
  0xb4   : > { %1530 = vmatpush1.bf16.msra.mxu0 %v3190_v32  ;;  %2822 = vmatprep.subr.bf16.mxu1 %v3195_v33 }
  0xb5   : > { %1531 = vmatprep.subr.bf16.mxu0 %v3195_v33 }
  0xb7   : > { %2838 = vmatpush1.bf16.msra.mxu1 %v3193_v34 }
  0xb8   : > { %1532 = vmatpush1.bf16.msra.mxu0 %v3193_v34  ;;  %2823 = vmatprep.subr.bf16.mxu1 %v3198_v35 }
  0xb9   : > { %1533 = vmatprep.subr.bf16.mxu0 %v3198_v35 }
  0xbb   : > { %2839 = vmatpush1.bf16.msra.mxu1 %v3196_v36 }
  0xbc   : > { %1534 = vmatpush1.bf16.msra.mxu0 %v3196_v36  ;;  %2824 = vmatprep.subr.bf16.mxu1 %v3201_v37 }
  0xbd   : > { %1535 = vmatprep.subr.bf16.mxu0 %v3201_v37 }
  0xbf   : > { %2840 = vmatpush1.bf16.msra.mxu1 %v3199_v38 }
  0xc0   : > { %1536 = vmatpush1.bf16.msra.mxu0 %v3199_v38  ;;  %2825 = vmatprep.subr.bf16.mxu1 %v3204_v41 }
  0xc1   : > { %1537 = vmatprep.subr.bf16.mxu0 %v3204_v41 }
  0xc3   : > { %2841 = vmatpush1.bf16.msra.mxu1 %v3202_v42 }
  0xc4   : > { %1538 = vmatpush1.bf16.msra.mxu0 %v3202_v42 }
  0xc6   : > { %1550 = vmatmul.mubr.bf16.vlgmr.msra.gmra.mrb[8].mxu1 %v1338_v44 }
  0xc7   : > { %1540 = vmatmul.mubr.bf16.vlgmr.msra.gmra.mrb[0].mxu0 %v1339_v49 }
 0x159   : > { %v708_v45 = vpop.f32.mrb[0].mxu1 }
 0x15a   : > { %v710_v46 = vpop.f32.mrb[1].mxu1 }
 0x15b   : > { %v712_v47 = vpop.f32.mrb[2].mxu1 }
 0x15c   : > { %v714_v48 = vpop.f32.mrb[3].mxu1 }
 0x161   : > { %v718_v20 = vpop.f32.mrb[4].mxu1 }
 0x162   : > { %v1280_v51 = vpop.f32.mrb[4].mxu0  ;;  %v720_v54 = vpop.f32.mrb[5].mxu1 }
 0x163   : > { %v2846_v52 = vadd.f32 %v1280_v51, %v718_v20  ;;  %v1282_v55 = vpop.f32.mrb[5].mxu0  ;;  %v722_v57 = vpop.f32.mrb[6].mxu1 }
 0x164   : > { %v2848_v56 = vadd.f32 %v1282_v55, %v720_v54  ;;  %v1284_v40 = vpop.f32.mrb[6].mxu0  ;;  %v724_v53 = vpop.f32.mrb[7].mxu1 }
 0x165   : > { %v2850_v58 = vadd.f32 %v1284_v40, %v722_v57  ;;  %v1286_v59 = vpop.f32.mrb[7].mxu0 }
 0x166   : > { %v2852_v61 = vadd.f32 %v1286_v59, %v724_v53 }
 0x199   : > { %v1551_v9 = vpop.f32.mrb[8].mxu1 }
 0x19a   : > { %v1541_v60 = vpop.f32.mrb[0].mxu0  ;;  %v2847_v3 = vadd.f32 %v2846_v52, %v1551_v9  ;;  %v1553_v13 = vpop.f32.mrb[9].mxu1 }
 0x19b   : > { %v2842_v11 = vadd.f32 %v1541_v60, %v708_v45  ;;  %v1543_v12 = vpop.f32.mrb[1].mxu0  ;;  %v2849_v50 = vadd.f32 %v2848_v56, %v1553_v13  ;;  %v1555_v16 = vpop.f32.mrb[10].mxu1 }
 0x19c   : > { %v2843_v15 = vadd.f32 %v1543_v12, %v710_v46  ;;  %v1545_v8 = vpop.f32.mrb[2].mxu0  ;;  %v1584_v18 = vadd.f32 %v2847_v3, %v1573_v7  ;;  %v2851_v21 = vadd.f32 %v2850_v58, %v1555_v16  ;;  %v1557_v23 = vpop.f32.mrb[11].mxu1 }
 0x19d   : > { %v1580_v17 = vadd.f32 %v2842_v11, %v1573_v7  ;;  %v2844_v19 = vadd.f32 %v1545_v8, %v712_v47  ;;  %v1547_v22 = vpop.f32.mrb[3].mxu0  ;;  %v1585_v25 = vadd.f32 %v2849_v50, %v1577_v10  ;;  %v2853_v27 = vadd.f32 %v2852_v61, %v1557_v23 }
 0x19e   : > { %v1581_v24 = vadd.f32 %v2843_v15, %v1577_v10  ;;  %v2845_v26 = vadd.f32 %v1547_v22, %v714_v48  ;;  %v1592_v29 = vmax.f32 %v1584_v18, 0.0  ;;  %v1586_v31 = vadd.f32 %v2851_v21, %v1573_v7 }
 0x19f   : > { %v1588_v28 = vmax.f32 %v1580_v17, 0.0  ;;  %v1582_v30 = vadd.f32 %v2844_v19, %v1573_v7  ;;  %v1593_v33 = vmax.f32 %v1585_v25, 0.0  ;;  %v1587_v35 = vadd.f32 %v2853_v27, %v1577_v10 }
 0x1a0   : > { %v1589_v32 = vmax.f32 %v1581_v24, 0.0  ;;  %v1583_v34 = vadd.f32 %v2845_v26, %v1577_v10  ;;  %v1594_v37 = vmax.f32 %v1586_v31, 0.0 }
 0x1a1   : > { %v1590_v36 = vmax.f32 %v1582_v30, 0.0  ;;  %v1640_v41 = vcombine.low %v1592_v29, %v1593_v33  ;;  %v1641_v42 = vcombine.high %v1592_v29, %v1593_v33  ;;  %v1595_v44 = vmax.f32 %v1587_v35, 0.0 }
 0x1a2   : > { %v1604_v38 = vcombine.low %v1588_v28, %v1589_v32  ;;  %v1605_v39 = vcombine.high %v1588_v28, %v1589_v32  ;;  %v1591_v43 = vmax.f32 %v1583_v34, 0.0 }
 0x1a3   : > { %v3828_v47 = vcombine.low %v1594_v37, %v1595_v44  ;;  %v1648_v57 = vrot.slane %v1640_v41, %v3825_v14  ;;  %v1655_v2 = vrot.slane %v1641_v42, %v3825_v14 }
 0x1a4   : > { %v1612_v49 = vrot.slane %v1604_v38, %v3825_v14  ;;  %v1622_v45 = vcombine.low %v1590_v36, %v1591_v43  ;;  %v1623_v46 = vcombine.high %v1590_v36, %v1591_v43  ;;  %v1619_v20 = vrot.slane %v1605_v39, %v3825_v14 }
 0x1a5   : > { %v1656_v61 = vcombine.high %v1648_v57, %v1648_v57  ;;  %v3857_v7 = vrot.slane %v1648_v57, %v3825_v14  ;;  %v1657_v10 = vcombine.high %v1655_v2, %v1655_v2  ;;  %v3862_v13 = vrot.slane %v1655_v2, %v3825_v14 }
 0x1a6   : > { %v1620_v48 = vcombine.high %v1612_v49, %v1612_v49  ;;  %v3835_v52 = vrot.slane %v1612_v49, %v3825_v14  ;;  %v3838_v54 = vrot.slane %v1619_v20, %v3825_v14  ;;  %v1621_v55 = vcombine.high %v1619_v20, %v1619_v20 }
 0x1a7   : > { %v3854_v4 = vrot.slane %v1656_v61, %v3825_v14  ;;  %v1921_v15 = vsel %vm1807_vm4, %v3857_v7, -inf  ;;  %v3867_v16 = vrot.slane %v1657_v10, %v3825_v14  ;;  %v1949_v22 = vsel %vm1807_vm4, %v3862_v13, -inf }
 0x1a8   : > { %v3832_v51 = vrot.slane %v1620_v48, %v3825_v14  ;;  %v1808_v40 = vsel %vm1807_vm4, %v3835_v52, -inf  ;;  %v1837_v58 = vsel %vm1807_vm4, %v3838_v54, -inf  ;;  %v3848_v53 = vrot.slane %v1621_v55, %v3825_v14 }
 0x1a9   : > { %v1809_v62 = vrot.slane %v1808_v40, 4  ;;  %v1838_v63 = vrot.slane %v1837_v58, 4  ;;  %v1935_v11 = vsel %vm1807_vm4, %v3854_v4, -inf  ;;  %v1922_v18 = vrot.slane %v1921_v15, 4 }
 0x1aa   : > { %v1823_v56 = vsel %vm1807_vm4, %v3832_v51, -inf  ;;  %v1851_v1 = vsel %vm1807_vm4, %v3848_v53, -inf  ;;  %v1936_v17 = vrot.slane %v1935_v11, 4  ;;  %v1963_v26 = vsel %vm1807_vm4, %v3867_v16, -inf }
 0x1ab   : > { %v1824_v59 = vrot.slane %v1823_v56, 4  ;;  %v1810_v5 = vmax.f32 %v1808_v40, %v1809_v62  ;;  %v1839_v6 = vmax.f32 %v1837_v58, %v1838_v63  ;;  %v1852_v60 = vrot.slane %v1851_v1, 4 }
 0x1ac   : > { %v1937_v25 = vmax.f32 %v1935_v11, %v1936_v17  ;;  %v1923_v27 = vmax.f32 %v1921_v15, %v1922_v18  ;;  %v1950_v28 = vrot.slane %v1949_v22, 4  ;;  %v1630_v29 = vrot.slane %v1622_v45, %v3825_v14 }
 0x1ad   : > { %v1825_v0 = vmax.f32 %v1823_v56, %v1824_v59  ;;  %v1811_v3 = vrot.slane %v1810_v5, 2  ;;  %v1840_v12 = vrot.slane %v1839_v6, 2  ;;  %v1853_v50 = vmax.f32 %v1851_v1, %v1852_v60 }
 0x1ae   : > { %v1637_v32 = vrot.slane %v1623_v46, %v3825_v14  ;;  %v1964_v34 = vrot.slane %v1963_v26, 4  ;;  %v1638_v35 = vcombine.high %v1630_v29, %v1630_v29  ;;  %v1938_v37 = vrot.slane %v1937_v25, 2 }
 0x1af   : > { %v1826_v9 = vrot.slane %v1825_v0, 2  ;;  %v1812_v19 = vmax.f32 %v1810_v5, %v1811_v3  ;;  %v1841_v21 = vmax.f32 %v1839_v6, %v1840_v12  ;;  %v1854_v23 = vrot.slane %v1853_v50, 2 }
 0x1b0   : > { %v1639_v38 = vcombine.high %v1637_v32, %v1637_v32  ;;  %v3878_v39 = vrot.slane %v1630_v29, %v3825_v14  ;;  %v1924_v41 = vrot.slane %v1923_v27, 2  ;;  %v1951_v42 = vmax.f32 %v1949_v22, %v1950_v28 }
 0x1b1   : > { %v1827_v8 = vmax.f32 %v1825_v0, %v1826_v9  ;;  %v1813_v30 = vrot.slane %v1812_v19, 1  ;;  %v1842_v31 = vrot.slane %v1841_v21, 1  ;;  %v1855_v33 = vmax.f32 %v1853_v50, %v1854_v23 }
 0x1b2   : > { %v3881_v43 = vrot.slane %v1638_v35, %v3825_v14  ;;  %v3884_v44 = vrot.slane %v1637_v32, %v3825_v14  ;;  %v1665_v46 = vrot.slane %v3828_v47, %v3825_v14  ;;  %v1965_v48 = vmax.f32 %v1963_v26, %v1964_v34 }
 0x1b3   : > { %v1828_v24 = vrot.slane %v1827_v8, 1  ;;  %v3886_v49 = vmax.f32 %v1812_v19, %v1813_v30  ;;  %v3888_v45 = vmax.f32 %v1841_v21, %v1842_v31  ;;  %v3893_v20 = vrot.slane %v1639_v38, %v3825_v14 }
 0x1b4   : > { %v1865_v55 = vsel %vm1807_vm4, %v3878_v39, -inf  ;;  %v1879_v56 = vsel %vm1807_vm4, %v3881_v43, -inf  ;;  %v1939_v40 = vmax.f32 %v1937_v25, %v1938_v37  ;;  %v1856_v61 = vrot.slane %v1855_v33, 1 }
 0x1b5   : > { %v3875_v36 = vmax.f32 %v1827_v8, %v1828_v24  ;;  %v1866_v58 = vrot.slane %v1865_v55, 4  ;;  %v1880_v59 = vrot.slane %v1879_v56, 4  ;;  %v1925_v62 = vmax.f32 %v1923_v27, %v1924_v41 }
 0x1b6   : > { %v1952_v47 = vrot.slane %v1951_v42, 2  ;;  %v1893_v63 = vsel %vm1807_vm4, %v3884_v44, -inf  ;;  %v1666_v5 = vcombine.high %v1665_v46, %v1665_v46  ;;  %v1966_v60 = vrot.slane %v1965_v48, 2 }
 0x1b7   : > { %v2034_v57 = vsel %vm2033_vm5, %v3875_v36, %v3886_v49  ;;  %v1867_v0 = vmax.f32 %v1865_v55, %v1866_v58  ;;  %v1881_v1 = vmax.f32 %v1879_v56, %v1880_v59  ;;  %v1894_v2 = vrot.slane %v1893_v63, 4 }
 0x1b8   : > { %v2036_v6 = vsel %vm2035_vm6, %v3888_v45, %v2034_v57  ;;  %v1907_v9 = vsel %vm1807_vm4, %v3893_v20, -inf  ;;  %v3909_v10 = vrot.slane %v1665_v46, %v3825_v14  ;;  %v1940_v11 = vrot.slane %v1939_v40, 1 }
 0x1b9   : > { %v1868_v3 = vrot.slane %v1867_v0, 2  ;;  %v1882_v12 = vrot.slane %v1881_v1, 2  ;;  %v1895_v15 = vmax.f32 %v1893_v63, %v1894_v2  ;;  %v3911_v50 = vmax.f32 %v1855_v33, %v1856_v61 }
 0x1ba   : > { %v1926_v8 = vrot.slane %v1925_v62, 1  ;;  %v1953_v17 = vmax.f32 %v1951_v42, %v1952_v47  ;;  %v1908_v18 = vrot.slane %v1907_v9, 4  ;;  %v3914_v23 = vrot.slane %v1666_v5, %v3825_v14 }
 0x1bb   : > { %v1869_v19 = vmax.f32 %v1867_v0, %v1868_v3  ;;  %v1883_v21 = vmax.f32 %v1881_v1, %v1882_v12  ;;  %v1896_v22 = vrot.slane %v1895_v15, 2  ;;  %v2038_v24 = vsel %vm2037_vm7, %v3911_v50, %v2036_v6 }
 0x1bc   : > { %v1967_v25 = vmax.f32 %v1965_v48, %v1966_v60  ;;  %v1909_v26 = vmax.f32 %v1907_v9, %v1908_v18  ;;  %v1977_v27 = vsel %vm1807_vm4, %v3909_v10, -inf  ;;  %v3920_v28 = vmax.f32 %v1939_v40, %v1940_v11 }
 0x1bd   : > { %v1870_v29 = vrot.slane %v1869_v19, 1  ;;  %v1884_v30 = vrot.slane %v1883_v21, 1  ;;  %v1897_v31 = vmax.f32 %v1895_v15, %v1896_v22  ;;  %v1954_v32 = vrot.slane %v1953_v17, 1 }
 0x1be   : > { %v1910_v33 = vrot.slane %v1909_v26, 2  ;;  %v1978_v34 = vrot.slane %v1977_v27, 4  ;;  %v1991_v14 = vsel %vm1807_vm4, %v3914_v23, -inf  ;;  %v3924_v35 = vmax.f32 %v1925_v62, %v1926_v8  ;;  %vm2408_vm4 = vmor %vm2407_vm2, %vm2406_vm1 }
 0x1bf   : > { %v3926_v37 = vmax.f32 %v1869_v19, %v1870_v29  ;;  %v1898_v38 = vrot.slane %v1897_v31, 1  ;;  %v1992_v41 = vrot.slane %v1991_v14, 4  ;;  %v1968_v42 = vrot.slane %v1967_v25, 1 }
 0x1c0   : > { %v3928_v46 = vmax.f32 %v1883_v21, %v1884_v30  ;;  %v1911_v48 = vmax.f32 %v1909_v26, %v1910_v33  ;;  %v1979_v55 = vmax.f32 %v1977_v27, %v1978_v34  ;;  %v2054_v56 = vsel %vm2033_vm5, %v3920_v28, %v3924_v35 }
 0x1c1   : > { %v3933_v57 = vmax.f32 %v1897_v31, %v1898_v38  ;;  %v2040_v40 = vsel %vm2039_vm8, %v3926_v37, %v2038_v24  ;;  %v1993_v58 = vmax.f32 %v1991_v14, %v1992_v41  ;;  %v3937_v59 = vmax.f32 %v1953_v17, %v1954_v32 }
 0x1c2   : > { %v1912_v61 = vrot.slane %v1911_v48, 1  ;;  %v2042_v62 = vsel %vm2041_vm9, %v3928_v46, %v2040_v40  ;;  %v1980_v47 = vrot.slane %v1979_v55, 2  ;;  %v3947_v6 = vmax.f32 %v1967_v25, %v1968_v42 }
 0x1c3   : > { %v2044_v63 = vsel %vm2043_vm10, %v3933_v57, %v2042_v62  ;;  %v1994_v0 = vrot.slane %v1993_v58, 2  ;;  %v2055_v5 = vsel %vm2035_vm6, %v3937_v59, %v2054_v56  ;;  %v1682_v19 = vcombine.high %v3832_v51, %v3832_v51 }
 0x1c4   : > { %v3943_v1 = vmax.f32 %v1911_v48, %v1912_v61  ;;  %v1981_v2 = vmax.f32 %v1979_v55, %v1980_v47  ;;  %v2056_v12 = vsel %vm2037_vm7, %v3947_v6, %v2055_v5  ;;  %v1674_v21 = vcombine.high %v3835_v52, %v3835_v52 }
 0x1c5   : > { %v1995_v60 = vmax.f32 %v1993_v58, %v1994_v0  ;;  %v1830_v22 = vsel %vm1815_vm12, %v1682_v19, -inf  ;;  %v1746_v24 = vcombine.high %v3854_v4, %v3854_v4  ;;  %v1690_v25 = vcombine.high %v3838_v54, %v3838_v54 }
 0x1c6   : > { %v1982_v9 = vrot.slane %v1981_v2, 1  ;;  %v3951_v11 = vsel %vm2045_vm11, %v3943_v1, %v2044_v63  ;;  %v1816_v26 = vsel %vm1815_vm12, %v1674_v21, -inf  ;;  %v1738_v27 = vcombine.high %v3857_v7, %v3857_v7 }
 0x1c7   : > { %v1996_v3 = vrot.slane %v1995_v60, 1  ;;  %2069 = vrot.lane.b32.xlu0 %v3951_v11, %s3216_s21  ;;  %v1698_v51 = vcombine.high %v3848_v53, %v3848_v53  ;;  %v1831_v29 = vrot.slane %v1830_v22, 4  ;;  %v1942_v52 = vsel %vm1815_vm12, %v1746_v24, -inf }
 0x1c8   : > { %v3956_v15 = vmax.f32 %v1981_v2, %v1982_v9  ;;  %v1817_v30 = vrot.slane %v1816_v26, 4  ;;  %v1844_v31 = vsel %vm1815_vm12, %v1690_v25, -inf  ;;  %v1754_v4 = vcombine.high %v3862_v13, %v3862_v13 }
 0x1c9   : > { %v3958_v8 = vmax.f32 %v1995_v60, %v1996_v3  ;;  %v1928_v32 = vsel %vm1815_vm12, %v1738_v27, -inf  ;;  %v1832_v54 = vmax.f32 %v1830_v22, %v1831_v29  ;;  %v1858_v33 = vsel %vm1815_vm12, %v1698_v51, -inf }
 0x1ca   : > { %v2057_v17 = vsel %vm2039_vm8, %v3956_v15, %v2056_v12  ;;  %v1943_v34 = vrot.slane %v1942_v52, 4  ;;  %v1706_v7 = vcombine.high %v3878_v39, %v3878_v39  ;;  %v1845_v14 = vrot.slane %v1844_v31, 4 }
 0x1cb   : > { %v3964_v18 = vsel %vm2041_vm9, %v3958_v8, %v2057_v17  ;;  %v1762_v53 = vcombine.high %v3867_v16, %v3867_v16  ;;  %v1818_v38 = vmax.f32 %v1816_v26, %v1817_v30  ;;  %v1929_v41 = vrot.slane %v1928_v32, 4 }
 0x1cc   : > { %2071 = vrot.lane.b32.xlu0 %v3964_v18, %s3216_s21  ;;  %v1956_v42 = vsel %vm1815_vm12, %v1754_v4, -inf  ;;  %v1859_v48 = vrot.slane %v1858_v33, 4  ;;  %v1714_v13 = vcombine.high %v3881_v43, %v3881_v43  ;;  %v1833_v55 = vrot.slane %v1832_v54, 2 }
 0x1cd   : > { %v1944_v56 = vmax.f32 %v1942_v52, %v1943_v34  ;;  %v1872_v40 = vsel %vm1815_vm12, %v1706_v7, -inf  ;;  %v1770_v58 = vcombine.high %v3909_v10, %v3909_v10  ;;  %v1846_v39 = vmax.f32 %v1844_v31, %v1845_v14 }
 0x1ce   : > { %v1957_v61 = vrot.slane %v1956_v42, 4  ;;  %v1970_v62 = vsel %vm1815_vm12, %v1762_v53, -inf  ;;  %v1819_v16 = vrot.slane %v1818_v38, 2  ;;  %v1930_v47 = vmax.f32 %v1928_v32, %v1929_v41 }
 0x1cf   : > { %v1722_v63 = vcombine.high %v3884_v44, %v3884_v44  ;;  %v1860_v0 = vmax.f32 %v1858_v33, %v1859_v48  ;;  %v1873_v2 = vrot.slane %v1872_v40, 4  ;;  %v1886_v43 = vsel %vm1815_vm12, %v1714_v13, -inf }
 0x1d0   : > { %v1778_v5 = vcombine.high %v3914_v23, %v3914_v23  ;;  %v1834_v60 = vmax.f32 %v1832_v54, %v1833_v55  ;;  %v1945_v9 = vrot.slane %v1944_v56, 2  ;;  %v1971_v3 = vrot.slane %v1970_v62, 4 }
 0x1d1   : > { %v1984_v10 = vsel %vm1815_vm12, %v1770_v58, -inf  ;;  %v1847_v12 = vrot.slane %v1846_v39, 2  ;;  %v1958_v17 = vmax.f32 %v1956_v42, %v1957_v61  ;;  %v1730_v19 = vcombine.high %v3893_v20, %v3893_v20 }
 0x1d2   : > { %v1820_v21 = vmax.f32 %v1818_v38, %v1819_v16  ;;  %v1931_v22 = vrot.slane %v1930_v47, 2  ;;  %v1887_v44 = vrot.slane %v1886_v43, 4  ;;  %v1900_v24 = vsel %vm1815_vm12, %v1722_v63, -inf }
 0x1d3   : > { %v1861_v25 = vrot.slane %v1860_v0, 2  ;;  %v1874_v26 = vmax.f32 %v1872_v40, %v1873_v2  ;;  %v1985_v27 = vrot.slane %v1984_v10, 4  ;;  %v1998_v23 = vsel %vm1815_vm12, %v1778_v5, -inf }
 0x1d4   : > { %v1835_v51 = vrot.slane %v1834_v60, 1  ;;  %v1946_v29 = vmax.f32 %v1944_v56, %v1945_v9  ;;  %v1972_v52 = vmax.f32 %v1970_v62, %v1971_v3  ;;  %v1848_v30 = vmax.f32 %v1846_v39, %v1847_v12 }
 0x1d5   : > { %v1959_v31 = vrot.slane %v1958_v17, 2  ;;  %v1901_v4 = vrot.slane %v1900_v24, 4  ;;  %v1914_v32 = vsel %vm1815_vm12, %v1730_v19, -inf  ;;  %v1821_v54 = vrot.slane %v1820_v21, 1 }
 0x1d6   : > { %v1932_v20 = vmax.f32 %v1930_v47, %v1931_v22  ;;  %v1888_v33 = vmax.f32 %v1886_v43, %v1887_v44  ;;  %v1999_v34 = vrot.slane %v1998_v23, 4  ;;  %v1862_v7 = vmax.f32 %v1860_v0, %v1861_v25 }
 0x1d7   : > { %v1875_v14 = vrot.slane %v1874_v26, 2  ;;  %v1986_v53 = vmax.f32 %v1984_v10, %v1985_v27  ;;  %v4009_v38 = vmax.f32 %v1834_v60, %v1835_v51  ;;  %v1915_v41 = vrot.slane %v1914_v32, 4 }
 0x1d8   : > { %v1947_v42 = vrot.slane %v1946_v29, 1  ;;  %v1973_v48 = vrot.slane %v1972_v52, 2  ;;  %v1849_v13 = vrot.slane %v1848_v30, 1  ;;  %v1960_v55 = vmax.f32 %v1958_v17, %v1959_v31 }
 0x1d9   : > { %v1902_v56 = vmax.f32 %v1900_v24, %v1901_v4  ;;  %v4011_v40 = vmax.f32 %v1820_v21, %v1821_v54  ;;  %v1933_v58 = vrot.slane %v1932_v20, 1  ;;  %v1889_v39 = vrot.slane %v1888_v33, 2 }
 0x1da   : > { %v2000_v61 = vmax.f32 %v1998_v23, %v1999_v34  ;;  %v1876_v62 = vmax.f32 %v1874_v26, %v1875_v14  ;;  %v1863_v16 = vrot.slane %v1862_v7, 1  ;;  %v1987_v47 = vrot.slane %v1986_v53, 2 }
 0x1db   : > { %v1916_v63 = vmax.f32 %v1914_v32, %v1915_v41  ;;  %v2047_v0 = vsel %vm2033_vm5, %v4009_v38, %v4011_v40  ;;  %v4016_v2 = vmax.f32 %v1946_v29, %v1947_v42  ;;  %v1974_v43 = vmax.f32 %v1972_v52, %v1973_v48 }
 0x1dc   : > { %v4018_v5 = vmax.f32 %v1848_v30, %v1849_v13  ;;  %v1903_v60 = vrot.slane %v1902_v56, 2  ;;  %v1961_v9 = vrot.slane %v1960_v55, 1  ;;  %v1890_v3 = vmax.f32 %v1888_v33, %v1889_v39 }
 0x1dd   : > { %v4020_v10 = vmax.f32 %v1932_v20, %v1933_v58  ;;  %v2001_v12 = vrot.slane %v2000_v61, 2  ;;  %v1877_v17 = vrot.slane %v1876_v62, 1  ;;  %v1988_v21 = vmax.f32 %v1986_v53, %v1987_v47 }
 0x1de   : > { %v2048_v19 = vsel %vm2035_vm6, %v4018_v5, %v2047_v0  ;;  %v4024_v22 = vmax.f32 %v1862_v7, %v1863_v16  ;;  %v1917_v44 = vrot.slane %v1916_v63, 2  ;;  %v1975_v24 = vrot.slane %v1974_v43, 1 }
 0x1df   : > { %v2059_v25 = vsel %vm2033_vm5, %v4016_v2, %v4020_v10  ;;  %v1904_v26 = vmax.f32 %v1902_v56, %v1903_v60  ;;  %v4029_v27 = vmax.f32 %v1960_v55, %v1961_v9  ;;  %v1891_v51 = vrot.slane %v1890_v3, 1 }
 0x1e0   : > { %v2049_v23 = vsel %vm2037_vm7, %v4024_v22, %v2048_v19  ;;  %v2002_v29 = vmax.f32 %v2000_v61, %v2001_v12  ;;  %v4033_v52 = vmax.f32 %v1876_v62, %v1877_v17  ;;  %v1989_v30 = vrot.slane %v1988_v21, 1 }
 0x1e1   : > { %v2060_v31 = vsel %vm2035_vm6, %v4029_v27, %v2059_v25  ;;  %v1918_v4 = vmax.f32 %v1916_v63, %v1917_v44  ;;  %v4037_v32 = vmax.f32 %v1974_v43, %v1975_v24  ;;  %v1905_v54 = vrot.slane %v1904_v26, 1 }
 0x1e2   : > { %v2050_v20 = vsel %vm2039_vm8, %v4033_v52, %v2049_v23  ;;  %v4041_v33 = vmax.f32 %v1890_v3, %v1891_v51  ;;  %v2003_v7 = vrot.slane %v2002_v29, 1  ;;  %v4045_v53 = vmax.f32 %v1988_v21, %v1989_v30 }
 0x1e3   : > { %v2061_v34 = vsel %vm2037_vm7, %v4037_v32, %v2060_v31  ;;  %v1919_v41 = vrot.slane %v1918_v4, 1  ;;  %v4049_v48 = vmax.f32 %v1904_v26, %v1905_v54  ;;  %v2095_v63 = vrot.slane %v3964_v18, 3 }
 0x1e4   : > { %v2051_v42 = vsel %vm2041_vm9, %v4041_v33, %v2050_v20  ;;  %v2062_v13 = vsel %vm2039_vm8, %v4045_v53, %v2061_v34  ;;  %v4053_v55 = vmax.f32 %v2002_v29, %v2003_v7  ;;  %v2097_v12 = vrot.slane %v3964_v18, 4 }
 0x1e5   : > { %v2052_v56 = vsel %vm2043_vm10, %v4049_v48, %v2051_v42  ;;  %v4057_v58 = vmax.f32 %v1918_v4, %v1919_v41  ;;  %v2091_v21 = vrot.slane %v3964_v18, 1  ;;  %v2077_v25 = vrot.slane %v3951_v11, 1 }
 0x1e6   : > { %v2063_v61 = vsel %vm2041_vm9, %v4053_v55, %v2062_v13  ;;  %v2093_v51 = vrot.slane %v3964_v18, 2  ;;  %v2079_v31 = vrot.slane %v3951_v11, 2  ;;  %v2087_v20 = vrot.slane %v3951_v11, 6 }
 0x1e7   : > { %v2053_v16 = vsel %vm2045_vm11, %v4057_v58, %v2052_v56  ;;  %v2089_v13 = vrot.slane %v3951_v11, 7 }
 0x239   : > { %v2070_v14 = vpop.permute.xlu0 %2069 }
 0x23a   : > { %v2073_v43 = vsel %vm2068_vm13, %v2070_v14, %v2053_v16  ;;  %v2081_v14 = vrot.slane %v3951_v11, 3 }
 0x23b   : > { %v2890_v3 = vpack.i.bf16 %v2073_v43, %v3951_v11  ;;  %v2078_v44 = vrot.slane %v2073_v43, 1  ;;  %v2080_v29 = vrot.slane %v2073_v43, 2  ;;  %v2088_v4 = vrot.slane %v2073_v43, 6 }
 0x23c   : > { %v2082_v34 = vrot.slane %v2073_v43, 3  ;;  %v2090_v41 = vrot.slane %v2073_v43, 7  ;;  %v2084_v56 = vrot.slane %v2073_v43, 4 }
 0x23d   : > { %v2915_v23 = vpack.i.bf16 %v2078_v44, %v2077_v25  ;;  %v2920_v54 = vpack.i.bf16 %v2080_v29, %v2079_v31  ;;  %v2940_v7 = vpack.i.bf16 %v2088_v4, %v2087_v20 }
 0x23e   : > { %v2072_v39 = vpop.permute.xlu0 %2071  ;;  %v2925_v42 = vpack.i.bf16 %v2082_v34, %v2081_v14 }
 0x23f   : > { %v2074_v62 = vsel %vm2068_vm13, %v2072_v39, %v2063_v61  ;;  %v2945_v39 = vpack.i.bf16 %v2090_v41, %v2089_v13  ;;  %v2083_v61 = vrot.slane %v3951_v11, 4 }
 0x240   : > { %v2885_v47 = vpack.i.bf16 %v2074_v62, %v3964_v18  ;;  %v2096_v0 = vrot.slane %v2074_v62, 3  ;;  %v2098_v9 = vrot.slane %v2074_v62, 4  ;;  %v2092_v17 = vrot.slane %v2074_v62, 1 }
 0x241   : > { %v2094_v26 = vrot.slane %v2074_v62, 2  ;;  %v2930_v16 = vpack.i.bf16 %v2084_v56, %v2083_v61 }
 0x242   : > { %2886 = vrot.lane.b32.xlu0 %v2885_v47, %s3217_s22  ;;  %v2905_v60 = vpack.i.bf16 %v2096_v0, %v2095_v63  ;;  %v2910_v19 = vpack.i.bf16 %v2098_v9, %v2097_v12  ;;  %v2895_v24 = vpack.i.bf16 %v2092_v17, %v2091_v21  ;;  %v2086_v47 = vrot.slane %v2073_v43, 5 }
 0x243   : > { %v2900_v30 = vpack.i.bf16 %v2094_v26, %v2093_v51  ;;  %v2085_v63 = vrot.slane %v3951_v11, 5  ;;  %v2099_v9 = vrot.slane %v3964_v18, 5 }
 0x244   : > { %2906 = vrot.lane.b32.xlu1 %v2905_v60, %s3217_s22  ;;  %v2100_v60 = vrot.slane %v2074_v62, 5 }
 0x245   : > { %v2935_v0 = vpack.i.bf16 %v2086_v47, %v2085_v63 }
 0x246   : > { %2891 = vrot.lane.b32.xlu0 %v2890_v3, %s3217_s22  ;;  %v2950_v3 = vpack.i.bf16 %v2100_v60, %v2099_v9 }
 0x248   : > { %2911 = vrot.lane.b32.xlu1 %v2910_v19, %s3217_s22 }
 0x24a   : > { %2896 = vrot.lane.b32.xlu0 %v2895_v24, %s3217_s22 }
 0x24c   : > { %2916 = vrot.lane.b32.xlu1 %v2915_v23, %s3217_s22 }
 0x24e   : > { %2901 = vrot.lane.b32.xlu0 %v2900_v30, %s3217_s22 }
 0x250   : > { %2921 = vrot.lane.b32.xlu1 %v2920_v54, %s3217_s22 }
 0x252   : > { %2941 = vrot.lane.b32.xlu0 %v2940_v7, %s3217_s22 }
 0x254   : > { %2926 = vrot.lane.b32.xlu1 %v2925_v42, %s3217_s22 }
 0x256   : > { %2946 = vrot.lane.b32.xlu0 %v2945_v39, %s3217_s22 }
 0x258   : > { %2931 = vrot.lane.b32.xlu1 %v2930_v16, %s3217_s22 }
 0x25c   : > { %2936 = vrot.lane.b32.xlu1 %v2935_v0, %s3217_s22 }
 0x260   : > { %2951 = vrot.lane.b32.xlu1 %v2950_v3, %s3217_s22 }
 0x2b4   : > { %v2887_v12 = vpop.permute.xlu0 %2886 }
 0x2b5   : > { %v2889_v17 = vunpack.i.h.bf16 %v2887_v12  ;;  %v2888_v19 = vunpack.i.l.bf16 %v2887_v12 }
 0x2b6   : > { %v2907_v21 = vpop.permute.xlu1 %2906 }
 0x2b7   : > { %v2909_v44 = vunpack.i.h.bf16 %v2907_v21  ;;  %v2908_v43 = vunpack.i.l.bf16 %v2907_v21  ;;  %v2166_v25 = vsel %vm2157_vm14, %v2888_v19, %v2889_v17  ;;  %v2217_v29 = vmax.f32 %v4020_v10, %v2889_v17 }
 0x2b8   : > { %v2892_v24 = vpop.permute.xlu0 %2891  ;;  %v2216_v30 = vmax.f32 %v3924_v35, %v2166_v25 }
 0x2b9   : > { %v2169_v11 = vsel %vm2157_vm14, %v2908_v43, %v2909_v44  ;;  %v2894_v62 = vunpack.i.h.bf16 %v2892_v24  ;;  %v2893_v26 = vunpack.i.l.bf16 %v2892_v24  ;;  %v2223_v31 = vmax.f32 %v4037_v32, %v2909_v44 }
 0x2ba   : > { %v2912_v23 = vpop.permute.xlu1 %2911  ;;  %v2222_v4 = vmax.f32 %v3947_v6, %v2169_v11  ;;  %v4101_v39 = vpack.c.bf16 %v2217_v29, %v2216_v30 }
 0x2bb   : > { %v2914_v51 = vunpack.i.h.bf16 %v2912_v23  ;;  %v2913_v18 = vunpack.i.l.bf16 %v2912_v23  ;;  %v2158_v20 = vsel %vm2157_vm14, %v2893_v26, %v2894_v62  ;;  %v2201_v32 = vmax.f32 %v4011_v40, %v2894_v62 }
 0x2bc   : > { %v2897_v54 = vpop.permute.xlu0 %2896  ;;  %v2807_v35 = vpack.c.bf16 %v2223_v31, %v2222_v4  ;;  %v2200_v6 = vmax.f32 %v3886_v49, %v2158_v20 }
 0x2bd   : > { %v2899_v34 = vunpack.i.h.bf16 %v2897_v54  ;;  %v2898_v7 = vunpack.i.l.bf16 %v2897_v54  ;;  %v2170_v14 = vsel %vm2157_vm14, %v2913_v18, %v2914_v51  ;;  %v2225_v16 = vmax.f32 %v4045_v53, %v2914_v51 }
 0x2be   : > { %v2917_v41 = vpop.permute.xlu1 %2916  ;;  %v2224_v0 = vmax.f32 %v3956_v15, %v2170_v14  ;;  %v2348_v44 = vunpack.c.l.b16 %v2807_v35  ;;  %v2349_v43 = vunpack.c.h.b16 %v2807_v35  ;;  %v2796_v24 = vpack.c.bf16 %v2201_v32, %v2200_v6 }
 0x2bf   : > { %v2219_v42 = vmax.f32 %v4016_v2, %v2899_v34  ;;  %v2167_v13 = vsel %vm2157_vm14, %v2898_v7, %v2899_v34  ;;  %v2919_v56 = vunpack.i.h.bf16 %v2917_v41  ;;  %v2918_v10 = vunpack.i.l.bf16 %v2917_v41 }
 0x2c0   : > { %v2902_v61 = vpop.permute.xlu0 %2901  ;;  %v2218_v47 = vmax.f32 %v3920_v28, %v2167_v13  ;;  %v2343_v15 = vunpack.c.h.b16 %v4101_v39  ;;  %v4119_v4 = vrot.slane %v2348_v44, 5  ;;  %v4121_v54 = vrot.slane %v2349_v43, 5 }
 0x2c1   : > { %v2203_v63 = vmax.f32 %v4009_v38, %v2919_v56  ;;  %v2159_v2 = vsel %vm2157_vm14, %v2918_v10, %v2919_v56  ;;  %v2904_v9 = vunpack.i.h.bf16 %v2902_v61  ;;  %v2903_v3 = vunpack.i.l.bf16 %v2902_v61 }
 0x2c2   : > { %v2202_v60 = vmax.f32 %v3875_v36, %v2159_v2  ;;  %v2922_v12 = vpop.permute.xlu1 %2921  ;;  %v2805_v17 = vpack.c.bf16 %v2219_v42, %v2218_v47  ;;  %v2342_v38 = vunpack.c.l.b16 %v4101_v39  ;;  %v2808_v36 = vpack.c.bf16 %v2225_v16, %v2224_v0 }
 0x2c3   : > { %v2924_v40 = vunpack.i.h.bf16 %v2922_v12  ;;  %v2221_v49 = vmax.f32 %v4029_v27, %v2904_v9  ;;  %v2168_v53 = vsel %vm2157_vm14, %v2903_v3, %v2904_v9  ;;  %v2923_v21 = vunpack.i.l.bf16 %v2922_v12 }
 0x2c4   : > { %v2797_v19 = vpack.c.bf16 %v2203_v63, %v2202_v60  ;;  %v2942_v28 = vpop.permute.xlu0 %2941  ;;  %v2344_v25 = vunpack.c.l.b16 %v2805_v17  ;;  %v2220_v11 = vmax.f32 %v3937_v59, %v2168_v53  ;;  %v2345_v26 = vunpack.c.h.b16 %v2805_v17 }
 0x2c5   : > { %v2205_v23 = vmax.f32 %v4018_v5, %v2924_v40  ;;  %v2160_v27 = vsel %vm2157_vm14, %v2923_v21, %v2924_v40  ;;  %v2944_v51 = vunpack.i.h.bf16 %v2942_v28  ;;  %v2326_v20 = vunpack.c.l.b16 %v2796_v24 }
 0x2c6   : > { %v2927_v62 = vpop.permute.xlu1 %2926  ;;  %v2328_v18 = vunpack.c.l.b16 %v2797_v19  ;;  %v2329_v29 = vunpack.c.h.b16 %v2797_v19  ;;  %v2806_v30 = vpack.c.bf16 %v2221_v49, %v2220_v11  ;;  %v2204_v31 = vmax.f32 %v3888_v45, %v2160_v27 }
 0x2c7   : > { %v2943_v34 = vunpack.i.l.bf16 %v2942_v28  ;;  %v2350_v7 = vunpack.c.l.b16 %v2808_v36  ;;  %v2351_v59 = vunpack.c.h.b16 %v2808_v36  ;;  %v2929_v56 = vunpack.i.h.bf16 %v2927_v62 }
 0x2c8   : > { %v2346_v14 = vunpack.c.l.b16 %v2806_v30  ;;  %v2347_v41 = vunpack.c.h.b16 %v2806_v30  ;;  %v2798_v5 = vpack.c.bf16 %v2205_v23, %v2204_v31  ;;  %v2928_v10 = vunpack.i.l.bf16 %v2927_v62  ;;  %v2947_v6 = vpop.permute.xlu0 %2946 }
 0x2c9   : > { %v2164_v13 = vsel %vm2157_vm14, %v2943_v34, %v2944_v51  ;;  %v2382_v39 = vrot.slane %v2344_v25, 7  ;;  %v2392_v35 = vrot.slane %v2345_v26, 7  ;;  %v2354_v32 = vrot.slane %v2328_v18, 7 }
 0x2ca   : > { %v2932_v42 = vpop.permute.xlu1 %2931  ;;  %v2368_v45 = vrot.slane %v2329_v29, 7  ;;  %v2384_v61 = vrot.slane %v2346_v14, 6  ;;  %v2213_v16 = vmax.f32 %v4049_v48, %v2944_v51  ;;  %v2212_v47 = vmax.f32 %v3933_v57, %v2164_v13 }
 0x2cb   : > { %v2161_v63 = vsel %vm2157_vm14, %v2928_v10, %v2929_v56  ;;  %v2394_v2 = vrot.slane %v2347_v41, 6  ;;  %v2330_v0 = vunpack.c.l.b16 %v2798_v5  ;;  %v2207_v60 = vmax.f32 %v4024_v22, %v2929_v56 }
 0x2cc   : > { %v2206_v9 = vmax.f32 %v3911_v50, %v2161_v63  ;;  %v2327_v12 = vunpack.c.h.b16 %v2796_v24  ;;  %v4129_v17 = vrot.slane %v2350_v7, 4  ;;  %v2331_v40 = vunpack.c.h.b16 %v2798_v5 }
 0x2cd   : > { %v2949_v19 = vunpack.i.h.bf16 %v2947_v6  ;;  %v4131_v49 = vrot.slane %v2351_v59, 4  ;;  %v2383_v48 = vsel %vm2033_vm5, %v2382_v39, %v2342_v38  ;;  %v2393_v57 = vsel %vm2033_vm5, %v2392_v35, %v2343_v15 }
 0x2ce   : > { %v2937_v3 = vpop.permute.xlu1 %2936  ;;  %v2355_v53 = vsel %vm2033_vm5, %v2354_v32, %v2326_v20  ;;  %v2369_v21 = vsel %vm2033_vm5, %v2368_v45, %v2327_v12  ;;  %v2802_v28 = vpack.c.bf16 %v2213_v16, %v2212_v47  ;;  %v2948_v22 = vunpack.i.l.bf16 %v2947_v6 }
 0x2cf   : > { %v2934_v44 = vunpack.i.h.bf16 %v2932_v42  ;;  %v2385_v50 = vsel %vm2035_vm6, %v2384_v61, %v2383_v48  ;;  %v2395_v43 = vsel %vm2035_vm6, %v2394_v2, %v2393_v57  ;;  %v2356_v24 = vrot.slane %v2330_v0, 6 }
 0x2d0   : > { %v2799_v36 = vpack.c.bf16 %v2207_v60, %v2206_v9  ;;  %v2370_v11 = vrot.slane %v2331_v40, 6  ;;  %v2165_v62 = vsel %vm2157_vm14, %v2948_v22, %v2949_v19  ;;  %v2933_v38 = vunpack.i.l.bf16 %v2932_v42 }
 0x2d1   : > { %v2939_v26 = vunpack.i.h.bf16 %v2937_v3  ;;  %v2215_v15 = vmax.f32 %v4057_v58, %v2949_v19  ;;  %v2214_v23 = vmax.f32 %v3943_v1, %v2165_v62  ;;  %v2209_v27 = vmax.f32 %v4033_v52, %v2934_v44 }
 0x2d2   : > { %v2952_v25 = vpop.permute.xlu1 %2951  ;;  %v2938_v51 = vunpack.i.l.bf16 %v2937_v3  ;;  %v2338_v18 = vunpack.c.l.b16 %v2802_v28  ;;  %v2162_v29 = vsel %vm2157_vm14, %v2933_v38, %v2934_v44  ;;  %v2339_v20 = vunpack.c.h.b16 %v2802_v28 }
 0x2d3   : > { %v2954_v30 = vunpack.i.h.bf16 %v2952_v25  ;;  %v2953_v31 = vunpack.i.l.bf16 %v2952_v25  ;;  %v2332_v34 = vunpack.c.l.b16 %v2799_v36  ;;  %v2333_v7 = vunpack.c.h.b16 %v2799_v36 }
 0x2d4   : > { %v2208_v59 = vmax.f32 %v3926_v37, %v2162_v29  ;;  %v2211_v14 = vmax.f32 %v4041_v33, %v2939_v26  ;;  %v2163_v58 = vsel %vm2157_vm14, %v2938_v51, %v2939_v26  ;;  %v2387_v41 = vsel %vm2037_vm7, %v4119_v4, %v2385_v50 }
 0x2d5   : > { %v2227_v1 = vmax.f32 %v4053_v55, %v2954_v30  ;;  %v2171_v52 = vsel %vm2157_vm14, %v2953_v31, %v2954_v30  ;;  %v2803_v42 = vpack.c.bf16 %v2215_v15, %v2214_v23  ;;  %v2210_v13 = vmax.f32 %v3928_v46, %v2163_v58 }
 0x2d6   : > { %v2800_v5 = vpack.c.bf16 %v2209_v27, %v2208_v59  ;;  %v2397_v37 = vsel %vm2037_vm7, %v4121_v54, %v2395_v43  ;;  %v2357_v33 = vsel %vm2035_vm6, %v2356_v24, %v2355_v53  ;;  %v2371_v56 = vsel %vm2035_vm6, %v2370_v11, %v2369_v21 }
 0x2d7   : > { %v2226_v55 = vmax.f32 %v3958_v8, %v2171_v52  ;;  %v2358_v10 = vrot.slane %v2332_v34, 5  ;;  %v2372_v39 = vrot.slane %v2333_v7, 5  ;;  %v2364_v4 = vrot.slane %v2338_v18, 2 }
 0x2d8   : > { %v2334_v35 = vunpack.c.l.b16 %v2800_v5  ;;  %v2335_v32 = vunpack.c.h.b16 %v2800_v5  ;;  %v2378_v45 = vrot.slane %v2339_v20, 2  ;;  %v2801_v6 = vpack.c.bf16 %v2211_v14, %v2210_v13 }
 0x2d9   : > { %v2809_v61 = vpack.c.bf16 %v2227_v1, %v2226_v55  ;;  %v2340_v46 = vunpack.c.l.b16 %v2803_v42  ;;  %v2341_v16 = vunpack.c.h.b16 %v2803_v42  ;;  %v2359_v9 = vsel %vm2037_vm7, %v2358_v10, %v2357_v33 }
 0x2da   : > { %v2360_v47 = vrot.slane %v2334_v35, 4  ;;  %v2374_v63 = vrot.slane %v2335_v32, 4  ;;  %v2336_v2 = vunpack.c.l.b16 %v2801_v6  ;;  %v2337_v54 = vunpack.c.h.b16 %v2801_v6 }
 0x2db   : > { %v2352_v0 = vunpack.c.l.b16 %v2809_v61  ;;  %v2353_v60 = vunpack.c.h.b16 %v2809_v61  ;;  %v2373_v8 = vsel %vm2037_vm7, %v2372_v39, %v2371_v56  ;;  %v2389_v3 = vsel %vm2039_vm8, %v4129_v17, %v2387_v41 }
 0x2dc   : > { %v2399_v12 = vsel %vm2039_vm8, %v4131_v49, %v2397_v37  ;;  %v2362_v40 = vrot.slane %v2336_v2, 3  ;;  %v2376_v19 = vrot.slane %v2337_v54, 3  ;;  %v2366_v53 = vrot.slane %v2340_v46, 1 }
 0x2dd   : > { %v2390_v48 = vrot.slane %v2352_v0, 3  ;;  %v2400_v57 = vrot.slane %v2353_v60, 3  ;;  %v2380_v21 = vrot.slane %v2341_v16, 1  ;;  %v2361_v28 = vsel %vm2039_vm8, %v2360_v47, %v2359_v9 }
 0x2de   : > { %v2375_v22 = vsel %vm2039_vm8, %v2374_v63, %v2373_v8  ;;  %v2363_v44 = vsel %vm2041_vm9, %v2362_v40, %v2361_v28 }
 0x2df   : > { %v2377_v50 = vsel %vm2041_vm9, %v2376_v19, %v2375_v22  ;;  %v2391_v17 = vsel %vm2041_vm9, %v2390_v48, %v2389_v3  ;;  %v2401_v49 = vsel %vm2041_vm9, %v2400_v57, %v2399_v12  ;;  %v2365_v43 = vsel %vm2043_vm10, %v2364_v4, %v2363_v44 }
 0x2e0   : > { %v2379_v24 = vsel %vm2043_vm10, %v2378_v45, %v2377_v50  ;;  %v2403_v36 = vpack.c.b16 %v2401_v49, %v2391_v17  ;;  %v2367_v25 = vsel %vm2045_vm11, %v2366_v53, %v2365_v43 }
 0x2e1   : > { %v2381_v11 = vsel %vm2045_vm11, %v2380_v21, %v2379_v24 }
 0x2e2   : > { %v2402_v62 = vpack.c.b16 %v2381_v11, %v2367_v25  ;;  %2413 = vst.msk [vmem:[%s170_s25 + $0x8] sm:$0x77] %vm2412_vm3, %v2403_v36 }
 0x2e4   : > { %2409 = vst.msk [vmem:[%s170_s25] sm:$0xff] %vm2408_vm4, %v2402_v62 }
 0x2e5 PF: > { %s13_s12 = sadd.s32 1, %s3213_s12  }
 0x2e6   : > { %p10_p4 = scmp.ge.s32.totalorder %s13_s12, 4  }
 0x2e8   :  { %12 = sbr.rel (!%p10_p4) target bundleno = 1 (0x1), region = 66 }

// kernel: cnn_forward.5
= control target key start
LH: loop header
LB: loop body
LE: loop exit
PB: predicated region body
PF: predicated region fallthrough
CT: control target
= control target key end

     0   :  { %v1144_v41 = vmov 0.0   ;;  %vm1145_vm0 = vmmov 0   ;;  %vm462_vm1 = vcmask 261120   ;;  %s1432_s1 = inlined_call_operand.vmem [shape: bf16[800,128], index: 1, kind: input, shape index: {}]   ;;  %s1433_s0 = inlined_call_operand.vmem [shape: bf16[8,800], index: 0, kind: input, shape index: {}]   ;;  %s1434_s3 = inlined_call_operand.vmem [shape: bf16[128,128], index: 3, kind: input, shape index: {}]   ;;  %s1435_s5 = inlined_call_operand.vmem [shape: bf16[128,128], index: 5, kind: input, shape index: {}]   ;;  %s1436_s2 = inlined_call_operand.vmem [shape: f32[1,128], index: 2, kind: input, shape index: {}]   ;;  %s1437_s4 = inlined_call_operand.vmem [shape: f32[1,128], index: 4, kind: input, shape index: {}]   ;;  %s1438_s6 = inlined_call_operand.vmem [shape: f32[1,128], index: 6, kind: input, shape index: {}]   ;;  %s1439_s7 = inlined_call_operand.vmem [shape: f32[8,128], index: 7, kind: output, shape index: {}]  }
   0x1   :  { %v1071_v0 = vld [vmem:[%s1432_s1 + $0x40] sm:$0xff]   ;;  %v1075_v4 = vld [vmem:[%s1432_s1 + $0x48] sm:$0xff]   ;;  %v1079_v8 = vld [vmem:[%s1432_s1 + $0x50] sm:$0xff]  }
   0x2   :  { %v1072_v1 = vld [vmem:[%s1432_s1] sm:$0xff]   ;;  %934 = vmatprep.subr.bf16.mxu0 %v1071_v0  ;;  %v1076_v5 = vld [vmem:[%s1432_s1 + $0x8] sm:$0xff]   ;;  %v1080_v9 = vld [vmem:[%s1432_s1 + $0x10] sm:$0xff]  }
   0x3   :  { %v1073_v2 = vld [vmem:[%s1432_s1 + $0xc0] sm:$0xff]   ;;  %935 = vmatpush3.bf16.msra.mxu0 %v1072_v1  ;;  %v1077_v6 = vld [vmem:[%s1432_s1 + $0xc8] sm:$0xff]   ;;  %v1081_v10 = vld [vmem:[%s1432_s1 + $0xd0] sm:$0xff]  }
   0x4   :  { %v1074_v3 = vld [vmem:[%s1432_s1 + $0x80] sm:$0xff]   ;;  %956 = vmatprep.subr.bf16.mxu1 %v1073_v2  ;;  %936 = vmatprep.subr.bf16.mxu0 %v1075_v4  ;;  %v1078_v7 = vld [vmem:[%s1432_s1 + $0x88] sm:$0xff]   ;;  %v1082_v11 = vld [vmem:[%s1432_s1 + $0x90] sm:$0xff]  }
   0x5   :  { %957 = vmatpush3.bf16.msra.mxu1 %v1074_v3  ;;  %v1083_v12 = vld [vmem:[%s1432_s1 + $0x58] sm:$0xff]   ;;  %v1087_v16 = vld [vmem:[%s1432_s1 + $0x60] sm:$0xff]   ;;  %v1091_v20 = vld [vmem:[%s1432_s1 + $0x68] sm:$0xff]  }
   0x6   :  { %958 = vmatprep.subr.bf16.mxu1 %v1077_v6  ;;  %v1084_v13 = vld [vmem:[%s1432_s1 + $0x18] sm:$0xff]   ;;  %v1088_v17 = vld [vmem:[%s1432_s1 + $0x20] sm:$0xff]   ;;  %v1092_v21 = vld [vmem:[%s1432_s1 + $0x28] sm:$0xff]  }
   0x7   :  { %937 = vmatpush3.bf16.msra.mxu0 %v1076_v5  ;;  %v1085_v14 = vld [vmem:[%s1432_s1 + $0xd8] sm:$0xff]   ;;  %v1089_v18 = vld [vmem:[%s1432_s1 + $0xe0] sm:$0xff]   ;;  %v1093_v22 = vld [vmem:[%s1432_s1 + $0xe8] sm:$0xff]  }
   0x8   :  { %938 = vmatprep.subr.bf16.mxu0 %v1079_v8  ;;  %v1086_v15 = vld [vmem:[%s1432_s1 + $0x98] sm:$0xff]   ;;  %v1090_v19 = vld [vmem:[%s1432_s1 + $0xa0] sm:$0xff]   ;;  %v1094_v23 = vld [vmem:[%s1432_s1 + $0xa8] sm:$0xff]  }
   0x9   :  { %959 = vmatpush3.bf16.msra.mxu1 %v1078_v7  ;;  %v1095_v24 = vld [vmem:[%s1432_s1 + $0x70] sm:$0xff]   ;;  %v1099_v28 = vld [vmem:[%s1432_s1 + $0x78] sm:$0xff]   ;;  %v27_v31 = vld [vmem:[%s1433_s0] sm:$0xff] }
   0xa   :  { %960 = vmatprep.subr.bf16.mxu1 %v1081_v10  ;;  %v1096_v25 = vld [vmem:[%s1432_s1 + $0x30] sm:$0xff]   ;;  %v1100_v29 = vld [vmem:[%s1432_s1 + $0x38] sm:$0xff]   ;;  %v858_v32 = vcombine.low %v27_v31, %v27_v31  ;;  %v859_v33 = vcombine.high %v27_v31, %v27_v31  ;;  %v1106_v35 = vld [vmem:[%s1432_s1 + $0x140] sm:$0xff]  }
   0xb   :  { %939 = vmatpush3.bf16.msra.mxu0 %v1080_v9  ;;  %v1097_v26 = vld [vmem:[%s1432_s1 + $0xf0] sm:$0xff]   ;;  %v1101_v30 = vld [vmem:[%s1432_s1 + $0xf8] sm:$0xff]   ;;  %v28_v36 = vld [vmem:[%s1433_s0 + $0x8] sm:$0xff] }
   0xc   :  { %940 = vmatprep.subr.bf16.mxu0 %v1083_v12  ;;  %v1098_v27 = vld [vmem:[%s1432_s1 + $0xb0] sm:$0xff]   ;;  %v1105_v34 = vld [vmem:[%s1432_s1 + $0xb8] sm:$0xff]   ;;  %498 = vmatprep.mubr.bf16.mxu0 %v859_v33  ;;  %v860_v37 = vcombine.low %v28_v36, %v28_v36  ;;  %v861_v38 = vcombine.high %v28_v36, %v28_v36  ;;  %v1109_v39 = vld [vmem:[%s1432_s1 + $0x100] sm:$0xff]  }
   0xd   :  { %961 = vmatpush3.bf16.msra.mxu1 %v1082_v11  ;;  %v1110_v40 = vld [vmem:[%s1432_s1 + $0x148] sm:$0xff]   ;;  %v1112_v43 = vld [vmem:[%s1432_s1 + $0x150] sm:$0xff]   ;;  %v1114_v45 = vld [vmem:[%s1432_s1 + $0x158] sm:$0xff]  }
   0xe   :  { %962 = vmatprep.subr.bf16.mxu1 %v1085_v14  ;;  %538 = vmatprep.mubr.bf16.mxu1 %v861_v38  ;;  %v1111_v42 = vld [vmem:[%s1432_s1 + $0x108] sm:$0xff]   ;;  %v1113_v44 = vld [vmem:[%s1432_s1 + $0x110] sm:$0xff]   ;;  %v1115_v46 = vld [vmem:[%s1432_s1 + $0x118] sm:$0xff]  }
   0xf   :  { %941 = vmatpush3.bf16.msra.mxu0 %v1084_v13  ;;  %v1116_v47 = vld [vmem:[%s1432_s1 + $0x160] sm:$0xff]   ;;  %v1118_v50 = vld [vmem:[%s1432_s1 + $0x168] sm:$0xff]   ;;  %v29_v51 = vld [vmem:[%s1433_s0 + $0x10] sm:$0xff] }
  0x10   :  { %942 = vmatprep.subr.bf16.mxu0 %v1087_v16  ;;  %v1122_v48 = vld [vmem:[%s1432_s1 + $0x180] sm:$0xff]   ;;  %v863_v52 = vcombine.high %v29_v51, %v29_v51  ;;  %v1127_v53 = vld [vmem:[%s1432_s1 + $0x188] sm:$0xff]   ;;  %v1104_v54 = vld [vmem:[%s1433_s0 + $0x18] ss:$0 sps:$4 sm:$0xff]   ;;  %v862_v60 = vcombine.low %v29_v51, %v29_v51 }
  0x11   :  { %963 = vmatpush3.bf16.msra.mxu1 %v1086_v15  ;;  %v1117_v49 = vld [vmem:[%s1432_s1 + $0x120] sm:$0xff]   ;;  %v1119_v55 = vld [vmem:[%s1432_s1 + $0x128] sm:$0xff]   ;;  %v1120_v56 = vld [vmem:[%s1432_s1 + $0x170] sm:$0xff]  }
  0x12   :  { %964 = vmatprep.subr.bf16.mxu1 %v1089_v18  ;;  %v1121_v57 = vld [vmem:[%s1432_s1 + $0x130] sm:$0xff]   ;;  %v1123_v58 = vld [vmem:[%s1432_s1 + $0x178] sm:$0xff]   ;;  %v1128_v61 = vld [vmem:[%s1434_s3] sm:$0xff]  }
  0x13   :  { %943 = vmatpush3.bf16.msra.mxu0 %v1088_v17  ;;  %v1124_v59 = vld [vmem:[%s1432_s1 + $0x138] sm:$0xff]   ;;  %v1129_v62 = vld [vmem:[%s1434_s3 + $0x8] sm:$0xff]   ;;  %v1130_v63 = vld [vmem:[%s1434_s3 + $0x10] sm:$0xff]  }
  0x14   :  { %944 = vmatprep.subr.bf16.mxu0 %v1091_v20  ;;  %v1131_v0 = vld [vmem:[%s1434_s3 + $0x18] sm:$0xff]   ;;  %v1132_v1 = vld [vmem:[%s1434_s3 + $0x20] sm:$0xff]   ;;  %v1133_v2 = vld [vmem:[%s1434_s3 + $0x28] sm:$0xff]  }
  0x15   :  { %965 = vmatpush3.bf16.msra.mxu1 %v1090_v19  ;;  %v1134_v3 = vld [vmem:[%s1434_s3 + $0x30] sm:$0xff]   ;;  %v1135_v4 = vld [vmem:[%s1434_s3 + $0x38] sm:$0xff]   ;;  %v1136_v5 = vld [vmem:[%s1435_s5] sm:$0xff]  }
  0x16   :  { %966 = vmatprep.subr.bf16.mxu1 %v1093_v22  ;;  %v1137_v6 = vld [vmem:[%s1435_s5 + $0x8] sm:$0xff]   ;;  %v1138_v7 = vld [vmem:[%s1435_s5 + $0x10] sm:$0xff]   ;;  %v1139_v8 = vld [vmem:[%s1435_s5 + $0x18] sm:$0xff]  }
  0x17   :  { %945 = vmatpush3.bf16.msra.mxu0 %v1092_v21  ;;  %v1140_v9 = vld [vmem:[%s1435_s5 + $0x20] sm:$0xff]   ;;  %v1141_v10 = vld [vmem:[%s1435_s5 + $0x28] sm:$0xff]   ;;  %v1143_v38 = vld [vmem:[%s1435_s5 + $0x38] sm:$0xff]  }
  0x18   :  { %946 = vmatprep.subr.bf16.mxu0 %v1095_v24  ;;  %v857_v12 = vld [vmem:[%s1436_s2] ss:$0 sm:$0xff] }
  0x19   :  { %967 = vmatpush3.bf16.msra.mxu1 %v1094_v23 }
  0x1a   :  { %968 = vmatprep.subr.bf16.mxu1 %v1097_v26 }
  0x1b   :  { %947 = vmatpush3.bf16.msra.mxu0 %v1096_v25 }
  0x1c   :  { %948 = vmatprep.subr.bf16.mxu0 %v1099_v28 }
  0x1d   :  { %969 = vmatpush3.bf16.msra.mxu1 %v1098_v27 }
  0x1e   :  { %970 = vmatprep.subr.bf16.mxu1 %v1101_v30 }
  0x1f   :  { %949 = vmatpush3.bf16.msra.mxu0 %v1100_v29 }
  0x20   :  { %978 = vmatprep.subr.bf16.mxu0 %v1106_v35 }
  0x21   :  { %971 = vmatpush3.bf16.msra.mxu1 %v1105_v34 }
  0x22   :  { %499 = vmatmul.mubr.bf16.vlgmr.msra.gmra.mrb[0].mxu0 %v858_v32  ;;  %1021 = vmatprep.subr.bf16.mxu1 %v1144_v41 }
  0x23   :  { %979 = vmatpush3.bf16.msra.mxu0 %v1109_v39  ;;  %578 = vmatprep.mubr.bf16.mxu0 %v863_v52  ;;  %v916_v39 = vld [vmem:[%s1437_s4] ss:$0 sm:$0xff] }
  0x24   :  { %539 = vmatmul.mubr.bf16.vlgmr.msra.gmra.mrb[0].mxu1 %v860_v37  ;;  %980 = vmatprep.subr.bf16.mxu0 %v1110_v40  ;;  %v1142_v37 = vld [vmem:[%s1435_s5 + $0x30] sm:$0xff]  }
  0x25   :  { %1025 = vmatprep.mubr.msk.bf16.mxu1 %vm1145_vm0, %v1144_v41  ;;  %1022 = vmatpush3.bf16.msra.mxu1 %v1122_v48 }
  0x26   :  { %1023 = vmatprep.subr.bf16.mxu1 %v1144_v41 }
  0x27   :  { %981 = vmatpush3.bf16.msra.mxu0 %v1111_v42 }
  0x28   :  { %982 = vmatprep.subr.bf16.mxu0 %v1112_v43 }
  0x29   :  { %1024 = vmatpush3.bf16.msra.mxu1 %v1127_v53 }
  0x2a   :  { %1029 = vmatprep.subr.bf16.mxu1 %v1144_v41 }
  0x2b   :  { %983 = vmatpush3.bf16.msra.mxu0 %v1113_v44 }
  0x2c   :  { %984 = vmatprep.subr.bf16.mxu0 %v1114_v45  ;;  %1026 = vmatmul.mubr.msk.bf16.vlgmr.msra.gmra.mrb[4].mxu1 %vm462_vm1, %v1104_v54 }
  0x2d   :  { %1045 = vmatprep.mubr.msk.bf16.mxu1 %vm1145_vm0, %v1144_v41  ;;  %1030 = vmatpush3.bf16.msra.mxu1 %v1128_v61 }
  0x2e   :  { %1031 = vmatprep.subr.bf16.mxu1 %v1144_v41 }
  0x2f   :  { %985 = vmatpush3.bf16.msra.mxu0 %v1115_v46 }
  0x30   :  { %986 = vmatprep.subr.bf16.mxu0 %v1116_v47 }
  0x31   :  { %1032 = vmatpush3.bf16.msra.mxu1 %v1129_v62 }
  0x32   :  { %1033 = vmatprep.subr.bf16.mxu1 %v1144_v41 }
  0x33   :  { %987 = vmatpush3.bf16.msra.mxu0 %v1117_v49 }
  0x34   :  { %988 = vmatprep.subr.bf16.mxu0 %v1118_v50 }
  0x35   :  { %1034 = vmatpush3.bf16.msra.mxu1 %v1130_v63 }
  0x36   :  { %1035 = vmatprep.subr.bf16.mxu1 %v1144_v41 }
  0x37   :  { %989 = vmatpush3.bf16.msra.mxu0 %v1119_v55 }
  0x38   :  { %990 = vmatprep.subr.bf16.mxu0 %v1120_v56 }
  0x39   :  { %1036 = vmatpush3.bf16.msra.mxu1 %v1131_v0 }
  0x3a   :  { %1037 = vmatprep.subr.bf16.mxu1 %v1144_v41 }
  0x3b   :  { %991 = vmatpush3.bf16.msra.mxu0 %v1121_v57 }
  0x3c   :  { %992 = vmatprep.subr.bf16.mxu0 %v1123_v58 }
  0x3d   :  { %1038 = vmatpush3.bf16.msra.mxu1 %v1132_v1 }
  0x3e   :  { %1039 = vmatprep.subr.bf16.mxu1 %v1144_v41 }
  0x3f   :  { %993 = vmatpush3.bf16.msra.mxu0 %v1124_v59 }
  0x40   :  { %1049 = vmatprep.subr.bf16.mxu0 %v1144_v41 }
  0x41   :  { %1040 = vmatpush3.bf16.msra.mxu1 %v1133_v2 }
  0x42   :  { %579 = vmatmul.mubr.bf16.vlgmr.msra.gmra.mrb[4].mxu0 %v862_v60  ;;  %1041 = vmatprep.subr.bf16.mxu1 %v1144_v41 }
  0x43   :  { %1065 = vmatprep.mubr.msk.bf16.mxu0 %vm1145_vm0, %v1144_v41  ;;  %1050 = vmatpush3.bf16.msra.mxu0 %v1136_v5 }
  0x44   :  { %1051 = vmatprep.subr.bf16.mxu0 %v1144_v41 }
  0x45   :  { %1042 = vmatpush3.bf16.msra.mxu1 %v1134_v3 }
  0x46   :  { %1043 = vmatprep.subr.bf16.mxu1 %v1144_v41 }
  0x47   :  { %1052 = vmatpush3.bf16.msra.mxu0 %v1137_v6 }
  0x48   :  { %1053 = vmatprep.subr.bf16.mxu0 %v1144_v41 }
  0x49   :  { %1044 = vmatpush3.bf16.msra.mxu1 %v1135_v4 }
  0x4b   :  { %1054 = vmatpush3.bf16.msra.mxu0 %v1138_v7 }
  0x4c   :  { %1055 = vmatprep.subr.bf16.mxu0 %v1144_v41 }
  0x4f   :  { %1056 = vmatpush3.bf16.msra.mxu0 %v1139_v8 }
  0x50   :  { %1057 = vmatprep.subr.bf16.mxu0 %v1144_v41 }
  0x53   :  { %1058 = vmatpush3.bf16.msra.mxu0 %v1140_v9 }
  0x54   :  { %1059 = vmatprep.subr.bf16.mxu0 %v1144_v41 }
  0x57   :  { %1060 = vmatpush3.bf16.msra.mxu0 %v1141_v10 }
  0x58   :  { %1061 = vmatprep.subr.bf16.mxu0 %v1144_v41 }
  0x5b   :  { %1062 = vmatpush3.bf16.msra.mxu0 %v1142_v37 }
  0x5c   :  { %1063 = vmatprep.subr.bf16.mxu0 %v1144_v41  ;;  %v925_v41 = vld [vmem:[%s1438_s6] ss:$0 sm:$0xff] }
  0x5f   :  { %1064 = vmatpush3.bf16.msra.mxu0 %v1143_v38 }
  0xf5   :  { %v950_v11 = vpop.f32.mrb[0].mxu0 }
  0xf6   :  { %v951_v13 = vpop.f32.mrb[1].mxu0 }
  0xf7   :  { %v952_v14 = vadd.f32 %v951_v13, %v950_v11  ;;  %v953_v15 = vpop.f32.mrb[2].mxu0  ;;  %v972_v16 = vpop.f32.mrb[0].mxu1 }
  0xf8   :  { %v954_v17 = vpop.f32.mrb[3].mxu0  ;;  %v973_v19 = vpop.f32.mrb[1].mxu1 }
  0xf9   :  { %v501_v18 = vadd.f32 %v952_v14, %v857_v12  ;;  %v974_v20 = vadd.f32 %v973_v19, %v972_v16  ;;  %v975_v21 = vpop.f32.mrb[2].mxu1 }
  0xfa   :  { %v976_v22 = vpop.f32.mrb[3].mxu1 }
  0xfb   :  { %v541_v23 = vadd.f32 %v974_v20, %v501_v18 }
  0xff   :  { %v620_v24 = vpop.f32.mrb[4].mxu1 }
 0x100   :  { %v1027_v25 = vpop.f32.mrb[5].mxu1 }
 0x101   :  { %v623_v26 = vpop.f32.mrb[6].mxu1 }
 0x102   :  { %v1028_v27 = vpop.f32.mrb[7].mxu1 }
 0x115   :  { %v994_v28 = vpop.f32.mrb[4].mxu0 }
 0x116   :  { %v995_v29 = vpop.f32.mrb[5].mxu0 }
 0x117   :  { %v996_v30 = vadd.f32 %v995_v29, %v994_v28  ;;  %v997_v31 = vpop.f32.mrb[6].mxu0 }
 0x118   :  { %v998_v32 = vpop.f32.mrb[7].mxu0 }
 0x119   :  { %v581_v33 = vadd.f32 %v996_v30, %v541_v23 }
 0x11b   :  { %v621_v34 = vadd.f32 %v620_v24, %v581_v33 }
 0x11d   :  { %v626_v35 = vmax.f32 %v621_v34, 0.0 }
 0x11f   :  { %v627_v36 = vpack.c.bf16 %v626_v35, %v626_v35 }
 0x121   :  { %1046 = vmatmul.mubr.bf16.vlgmr.msra.gmra.mrb[8].mxu1 %v627_v36 }
 0x1f4   :  { %v733_v40 = vpop.f32.mrb[8].mxu1 }
 0x1f5   :  { %v734_v42 = vadd.f32 %v916_v39, %v733_v40  ;;  %v1047_v43 = vpop.f32.mrb[9].mxu1 }
 0x1f6   :  { %v736_v44 = vpop.f32.mrb[10].mxu1 }
 0x1f7   :  { %v739_v45 = vmax.f32 %v734_v42, 0.0  ;;  %v1048_v46 = vpop.f32.mrb[11].mxu1 }
 0x1f9   :  { %v740_v47 = vpack.c.bf16 %v739_v45, %v739_v45 }
 0x1fb   :  { %1066 = vmatmul.mubr.bf16.vlgmr.msra.gmra.mrb[8].mxu0 %v740_v47 }
 0x2ce   :  { %v846_v48 = vpop.f32.mrb[8].mxu0 }
 0x2cf   :  { %v847_v49 = vadd.f32 %v925_v41, %v846_v48  ;;  %v1067_v50 = vpop.f32.mrb[9].mxu0 }
 0x2d0   :  { %v849_v51 = vpop.f32.mrb[10].mxu0 }
 0x2d1   :  { %852 = vst [vmem:[%s1439_s7] sm:$0xff] %v847_v49  ;;  %v1068_v52 = vpop.f32.mrb[11].mxu0 }

</bundles_post_ra>
